<compile_context>
chip_gen: v6e
topology: v6e:2x2x1
jax: 0.10.0
libtpu: 0.0.40
codegen_flags: <defaults>
</compile_context>

<pallas_src>
import functools
import math

import jax
import jax.numpy as jnp
from jax.experimental import pallas as pl
from jax.experimental.pallas import tpu as pltpu


# ----------------------------------------------------------------------------
# In-kernel helpers
# ----------------------------------------------------------------------------
def _layernorm(x, gamma, beta, eps=1e-5):
    # x: (T, D); gamma/beta: (1, D). Matches nn.LayerNorm (biased variance).
    mu = jnp.mean(x, axis=-1, keepdims=True)
    var = jnp.mean((x - mu) ** 2, axis=-1, keepdims=True)
    return (x - mu) * jax.lax.rsqrt(var + eps) * gamma + beta


def _gelu_tanh(x):
    c = math.sqrt(2.0 / math.pi)
    return 0.5 * x * (1.0 + jnp.tanh(c * (x + 0.044715 * x * x * x)))


# ----------------------------------------------------------------------------
# Fused ViT kernel: patch embed -> L encoder layers -> classifier head
# (one grid step == one image)
# ----------------------------------------------------------------------------
def vit_fused_kernel(
        patches_ref,              # (1, SP, K)  bf16, zero rows for cls/pad
        pw_ref,                   # (K, D)      bf16  conv-as-matmul weight
        base_ref,                 # (SP, D)     f32   cls + pos (+ conv bias)
        wqkv_ref,                 # (L, D, 3D)  bf16  packed QKV (scale folded)
        wo_ref,                   # (L, D, D)   bf16  out projection
        w1_ref,                   # (L, D, M)   bf16  MLP up
        w2_ref,                   # (L, M, D)   bf16  MLP down
        lvec_ref,                 # (L, 8, VW)  f32   packed per-layer vectors
        hw_ref,                   # (D, CP)     bf16  classifier weight (lane pad)
        hvec_ref,                 # (8, HVW)    f32   head LN gamma/beta + bias
        out_ref,                  # (1, SP, CP) f32   logits for every row
        *, num_heads, num_layers, n_patches):
    bf16 = jnp.bfloat16
    SP, D = base_ref.shape
    M = w1_ref.shape[-1]
    CP = out_ref.shape[-1]
    H = num_heads
    Dh = D // H
    NEG = jnp.float32(-1e30)

    # ---- patch embedding + cls token + position embedding ------------------
    # patches are zero-padded / ordered host-side so this is one dense matmul
    # plus one add (base carries cls+pos+conv-bias).
    x = jnp.dot(patches_ref[0], pw_ref[...],
                preferred_element_type=jnp.float32) + base_ref[...]   # (SP, D)

    # Key-validity mask generated in-kernel: keys 0..n_patches (cls + patches)
    # are valid, padded rows are masked out.
    kidx = jax.lax.broadcasted_iota(jnp.int32, (SP, SP), 1)
    kvalid = kidx <= n_patches

    # ---- transformer encoder (unrolled layer loop) --------------------------
    for l in range(num_layers):
        lv = lvec_ref[l]                          # (8, VW) f32
        ln1_g = lv[0:1, :D]
        ln1_b = lv[1:2, :D]
        bqkv = lv[2:3, :3 * D]
        bo = lv[3:4, :D]
        ln2_g = lv[4:5, :D]
        ln2_b = lv[5:6, :D]
        b1 = lv[6:7, :M]
        b2 = lv[7:8, :D]

        # -- multi-head self-attention ----------------------------------------
        xn = _layernorm(x, ln1_g, ln1_b).astype(bf16)
        # Fused QKV projection: one lane-dense (SP, D) x (D, 3D) MXU op.
        qkv = jnp.dot(xn, wqkv_ref[l],
                      preferred_element_type=jnp.float32) + bqkv      # (SP, 3D)

        heads = []
        for h in range(H):
            # 1/sqrt(Dh) is already folded into the Q columns of wqkv.
            qh = qkv[:, h * Dh:(h + 1) * Dh].astype(bf16)             # (SP, Dh)
            kh = qkv[:, D + h * Dh:D + (h + 1) * Dh].astype(bf16)
            vh = qkv[:, 2 * D + h * Dh:2 * D + (h + 1) * Dh].astype(bf16)

            s = jnp.einsum('qd,kd->qk', qh, kh,
                           preferred_element_type=jnp.float32)        # (SP, SP)
            s = jnp.where(kvalid, s, NEG)
            s = s - jnp.max(s, axis=-1, keepdims=True)
            p = jnp.exp(s)
            p = p / jnp.sum(p, axis=-1, keepdims=True)                # exact softmax
            heads.append(jnp.dot(p.astype(bf16), vh,
                                 preferred_element_type=jnp.float32))  # (SP, Dh)

        # One dense out-projection on the concatenated heads (K = D).
        o = jnp.concatenate(heads, axis=-1).astype(bf16)              # (SP, D)
        attn = jnp.dot(o, wo_ref[l],
                       preferred_element_type=jnp.float32) + bo
        y = x + attn                                                  # residual 1

        # -- MLP ----------------------------------------------------------------
        yn = _layernorm(y, ln2_g, ln2_b).astype(bf16)
        h1 = jnp.dot(yn, w1_ref[l], preferred_element_type=jnp.float32) + b1
        h1 = _gelu_tanh(h1).astype(bf16)
        h2 = jnp.dot(h1, w2_ref[l], preferred_element_type=jnp.float32) + b2
        x = y + h2                                                    # residual 2

    # ---- classifier head (LayerNorm + Linear, lane padded) ------------------
    hv = hvec_ref[...]
    tn = _layernorm(x, hv[0:1, :D], hv[1:2, :D]).astype(bf16)
    out_ref[0] = (jnp.dot(tn, hw_ref[...],
                          preferred_element_type=jnp.float32) + hv[2:3, :CP])


# ----------------------------------------------------------------------------
# Host-side glue: patch extraction, parameter init, forward wrapper
# ----------------------------------------------------------------------------
def extract_patches(x, patch_size):
    # NCHW -> (B, num_patches, C*P*P); features ordered (C, P, P) row-major to
    # match a flattened Conv2d weight.
    B, C, Hh, Ww = x.shape
    P = patch_size
    gh, gw = Hh // P, Ww // P
    x = x.reshape(B, C, gh, P, gw, P)
    x = x.transpose(0, 2, 4, 1, 3, 5)          # (B, gh, gw, C, P, P)
    return x.reshape(B, gh * gw, C * P * P)


def init_params(key, *, inc, patch_size, img_size, emb_dim, num_heads,
                mlp_size, num_layers, num_classes, num_classes_pad=128):
    N = (img_size // patch_size) ** 2
    K = inc * patch_size * patch_size
    D, M, L, H = emb_dim, mlp_size, num_layers, num_heads
    Dh = D // H
    VW = max(3 * D, M)                 # per-layer vector-slab lane width
    HVW = max(D, num_classes_pad)      # head vector-slab lane width

    keys = jax.random.split(key, 8)

    def nrm(k, shape, scale=0.02):
        return scale * jax.random.normal(k, shape, jnp.float32)

    # Packed QKV weight (== in_proj_weight.T per layer).  The 1/sqrt(Dh)
    # attention scale is folded into the Q columns (the Q bias is zero so no
    # bias scaling is needed; if it were nonzero it would be scaled too).
    wqkv = nrm(keys[0], (L, D, 3 * D))
    wqkv = wqkv.at[:, :, :D].multiply(1.0 / math.sqrt(Dh))

    # Per-layer small-vector slab (one sublane-dense (8, VW) tile per layer):
    #   row 0: ln1 gamma    row 1: ln1 beta    row 2: qkv bias (len 3D)
    #   row 3: out-proj bias row 4: ln2 gamma  row 5: ln2 beta
    #   row 6: mlp bias 1 (len M)              row 7: mlp bias 2 (len D)
    lvec = jnp.zeros((L, 8, VW), jnp.float32)
    lvec = lvec.at[:, 0, :D].set(1.0)     # ln1 gamma
    lvec = lvec.at[:, 4, :D].set(1.0)     # ln2 gamma
    # all biases / betas initialized to zero

    head_w = jnp.zeros((D, num_classes_pad), jnp.float32)
    head_w = head_w.at[:, :num_classes].set(nrm(keys[1], (D, num_classes)))

    # Head vector slab: row 0 = head LN gamma, row 1 = head LN beta,
    # row 2 = classifier bias (lane padded), rows 3..7 unused.
    hvec = jnp.zeros((8, HVW), jnp.float32)
    hvec = hvec.at[0, :D].set(1.0)

    return {
        "num_classes": num_classes,
        "patch_w": nrm(keys[2], (K, D)).astype(jnp.bfloat16),
        "patch_b": jnp.zeros((D,), jnp.float32),
        "cls": jax.random.normal(keys[3], (D,), jnp.float32),
        "pos": jax.random.normal(keys[4], (N + 1, D), jnp.float32),
        "wqkv": wqkv.astype(jnp.bfloat16),
        "wo": nrm(keys[5], (L, D, D)).astype(jnp.bfloat16),
        "w1": nrm(keys[6], (L, D, M)).astype(jnp.bfloat16),
        "w2": nrm(keys[7], (L, M, D)).astype(jnp.bfloat16),
        "lvec": lvec,
        "head_w": head_w.astype(jnp.bfloat16),
        "hvec": hvec,
    }


def vit_forward(x, params, *, patch_size, num_heads):
    B, C_in, Himg, Wimg = x.shape
    P = patch_size
    N = (Himg // P) * (Wimg // P)          # patches per image
    SP = ((N + 1 + 7) // 8) * 8            # padded sequence length (5 -> 8)
    D = params["pos"].shape[-1]
    L = params["wqkv"].shape[0]
    M = params["w1"].shape[-1]
    K = C_in * P * P
    CP = params["head_w"].shape[-1]
    VW = params["lvec"].shape[-1]
    HVW = params["hvec"].shape[-1]

    # ---- host prep: padded patch slab + additive base ----------------------
    patches = extract_patches(x, P)                               # (B, N, K)
    pp = jnp.zeros((B, SP, K), jnp.float32).at[:, 1:N + 1, :].set(patches)
    pp = pp.astype(jnp.bfloat16)                                  # cls/pad rows = 0

    base = jnp.zeros((SP, D), jnp.float32)
    base = base.at[0].set(params["cls"] + params["pos"][0])
    base = base.at[1:N + 1].set(params["pos"][1:] + params["patch_b"][None, :])

    kernel = functools.partial(vit_fused_kernel, num_heads=num_heads,
                               num_layers=L, n_patches=N)
    c2 = lambda b: (0, 0)
    c3 = lambda b: (0, 0, 0)

    out = pl.pallas_call(
        kernel,
        out_shape=jax.ShapeDtypeStruct((B, SP, CP), jnp.float32),
        grid=(B,),
        in_specs=[
            pl.BlockSpec((1, SP, K), lambda b: (b, 0, 0)),   # patches (per image)
            pl.BlockSpec((K, D), c2),                        # patch weight
            pl.BlockSpec((SP, D), c2),                       # base (cls+pos+bias)
            pl.BlockSpec((L, D, 3 * D), c3),                 # packed QKV weights
            pl.BlockSpec((L, D, D), c3),                     # out-proj weights
            pl.BlockSpec((L, D, M), c3),                     # MLP up weights
            pl.BlockSpec((L, M, D), c3),                     # MLP down weights
            pl.BlockSpec((L, 8, VW), c3),                    # per-layer vector slab
            pl.BlockSpec((D, CP), c2),                       # head weight (lane pad)
            pl.BlockSpec((8, HVW), c2),                      # head vector slab
        ],
        out_specs=pl.BlockSpec((1, SP, CP), lambda b: (b, 0, 0)),
        compiler_params=pltpu.CompilerParams(
            dimension_semantics=("parallel",)),               # one image per core
    )(pp, params["patch_w"], base, params["wqkv"], params["wo"],
      params["w1"], params["w2"], params["lvec"],
      params["head_w"], params["hvec"])

    # Class-token row of every image, drop the lane padding.
    return out[:, 0, :params["num_classes"]]


if __name__ == "__main__":
    # Small shapes consistent with the module: 4 patches, seq_len = 5 (pad 8).
    B, INC, IMG, P = 2, 3, 32, 16
    EMB, HEADS, MLP, LAYERS, NCLS = 128, 4, 256, 2, 8

    key = jax.random.PRNGKey(0)
    k_x, k_p = jax.random.split(key)
    x = jax.random.normal(k_x, (B, INC, IMG, IMG), jnp.float32)

    params = init_params(k_p, inc=INC, patch_size=P, img_size=IMG,
                         emb_dim=EMB, num_heads=HEADS, mlp_size=MLP,
                         num_layers=LAYERS, num_classes=NCLS)

    out = vit_forward(x, params, patch_size=P, num_heads=HEADS)
    out = jax.block_until_ready(out)
    assert out.shape == (B, NCLS), out.shape
    print("KERNEL_OK")
</pallas_src>

<mosaic_0001>
module attributes {stable_mosaic.version = 11 : i64} {
  func.func @vit_fused_kernel(%arg0: i32, %arg1: memref<1x8x768xbf16, #tpu.memory_space<vmem>>, %arg2: memref<768x128xbf16, #tpu.memory_space<vmem>>, %arg3: memref<8x128xf32, #tpu.memory_space<vmem>>, %arg4: memref<2x128x384xbf16, #tpu.memory_space<vmem>>, %arg5: memref<2x128x128xbf16, #tpu.memory_space<vmem>>, %arg6: memref<2x128x256xbf16, #tpu.memory_space<vmem>>, %arg7: memref<2x256x128xbf16, #tpu.memory_space<vmem>>, %arg8: memref<2x8x384xf32, #tpu.memory_space<vmem>>, %arg9: memref<128x128xbf16, #tpu.memory_space<vmem>>, %arg10: memref<8x128xf32, #tpu.memory_space<vmem>>, %arg11: memref<1x8x128xf32, #tpu.memory_space<vmem>>) attributes {dimension_semantics = [#tpu.dimension_semantics<parallel>], iteration_bounds = array<i64: 2>, scalar_prefetch = 0 : i64, scratch_operands = 0 : i64, tpu.core_type = #tpu.core_type<tc>, window_params = [{transform_indices = @transform_0, window_bounds = array<i64: 1, 8, 768>}, {pipeline_mode = #tpu.pipeline_mode<synchronous>, transform_indices = @transform_1, window_bounds = array<i64: 768, 128>}, {pipeline_mode = #tpu.pipeline_mode<synchronous>, transform_indices = @transform_2, window_bounds = array<i64: 8, 128>}, {pipeline_mode = #tpu.pipeline_mode<synchronous>, transform_indices = @transform_3, window_bounds = array<i64: 2, 128, 384>}, {pipeline_mode = #tpu.pipeline_mode<synchronous>, transform_indices = @transform_4, window_bounds = array<i64: 2, 128, 128>}, {pipeline_mode = #tpu.pipeline_mode<synchronous>, transform_indices = @transform_5, window_bounds = array<i64: 2, 128, 256>}, {pipeline_mode = #tpu.pipeline_mode<synchronous>, transform_indices = @transform_6, window_bounds = array<i64: 2, 256, 128>}, {pipeline_mode = #tpu.pipeline_mode<synchronous>, transform_indices = @transform_7, window_bounds = array<i64: 2, 8, 384>}, {pipeline_mode = #tpu.pipeline_mode<synchronous>, transform_indices = @transform_8, window_bounds = array<i64: 128, 128>}, {pipeline_mode = #tpu.pipeline_mode<synchronous>, transform_indices = @transform_9, window_bounds = array<i64: 8, 128>}, {transform_indices = @transform_10, window_bounds = array<i64: 1, 8, 128>}]} {
    %c0 = arith.constant 0 : index
    %c0_0 = arith.constant 0 : index
    %c0_1 = arith.constant 0 : index
    %0 = vector.load %arg1[%c0, %c0_0, %c0_1] : memref<1x8x768xbf16, #tpu.memory_space<vmem>>, vector<1x8x768xbf16>
    %1 = vector.shape_cast %0 : vector<1x8x768xbf16> to vector<8x768xbf16>
    %c0_2 = arith.constant 0 : index
    %c0_3 = arith.constant 0 : index
    %2 = vector.load %arg2[%c0_2, %c0_3] : memref<768x128xbf16, #tpu.memory_space<vmem>>, vector<768x128xbf16>
    %cst = arith.constant dense<0.000000e+00> : vector<8x128xf32>
    %3 = tpu.matmul %1, %2, %cst {dimension_numbers = #tpu.dot_dimension_numbers<[1], [0], [0], [1], [0, 0, 1, 1], [], []>} : vector<8x768xbf16>, vector<768x128xbf16>, vector<8x128xf32> -> vector<8x128xf32>
    %c0_4 = arith.constant 0 : index
    %c0_5 = arith.constant 0 : index
    %4 = vector.load %arg3[%c0_4, %c0_5] : memref<8x128xf32, #tpu.memory_space<vmem>>, vector<8x128xf32>
    %5 = arith.addf %3, %4 : vector<8x128xf32>
    %6 = tpu.iota {dimensions = array<i32: 1>} : vector<8x8xi32>
    %c4_i32 = arith.constant 4 : i32
    %7 = vector.broadcast %c4_i32 : i32 to vector<8x8xi32>
    %8 = arith.cmpi sle, %6, %7 : vector<8x8xi32>
    %c0_6 = arith.constant 0 : index
    %c0_7 = arith.constant 0 : index
    %c0_8 = arith.constant 0 : index
    %9 = vector.load %arg8[%c0_6, %c0_7, %c0_8] : memref<2x8x384xf32, #tpu.memory_space<vmem>>, vector<1x8x384xf32>
    %10 = vector.shape_cast %9 : vector<1x8x384xf32> to vector<8x384xf32>
    %11 = vector.extract_strided_slice %10 {offsets = [0, 0], sizes = [1, 128], strides = [1, 1]} : vector<8x384xf32> to vector<1x128xf32>
    %12 = vector.extract_strided_slice %10 {offsets = [1, 0], sizes = [1, 128], strides = [1, 1]} : vector<8x384xf32> to vector<1x128xf32>
    %13 = vector.extract_strided_slice %10 {offsets = [2, 0], sizes = [1, 384], strides = [1, 1]} : vector<8x384xf32> to vector<1x384xf32>
    %14 = vector.extract_strided_slice %10 {offsets = [3, 0], sizes = [1, 128], strides = [1, 1]} : vector<8x384xf32> to vector<1x128xf32>
    %15 = vector.extract_strided_slice %10 {offsets = [4, 0], sizes = [1, 128], strides = [1, 1]} : vector<8x384xf32> to vector<1x128xf32>
    %16 = vector.extract_strided_slice %10 {offsets = [5, 0], sizes = [1, 128], strides = [1, 1]} : vector<8x384xf32> to vector<1x128xf32>
    %17 = vector.extract_strided_slice %10 {offsets = [6, 0], sizes = [1, 256], strides = [1, 1]} : vector<8x384xf32> to vector<1x256xf32>
    %18 = vector.extract_strided_slice %10 {offsets = [7, 0], sizes = [1, 128], strides = [1, 1]} : vector<8x384xf32> to vector<1x128xf32>
    %cst_9 = arith.constant dense<0.000000e+00> : vector<8xf32>
    %19 = vector.multi_reduction <add>, %5, %cst_9 [1] : vector<8x128xf32> to vector<8xf32>
    %20 = vector.shape_cast %19 : vector<8xf32> to vector<8x1xf32>
    %cst_10 = arith.constant 1.280000e+02 : f32
    %21 = vector.broadcast %cst_10 : f32 to vector<8x1xf32>
    %22 = arith.divf %20, %21 : vector<8x1xf32>
    %23 = vector.broadcast %22 : vector<8x1xf32> to vector<8x128xf32>
    %24 = arith.subf %5, %23 : vector<8x128xf32>
    %25 = arith.mulf %24, %24 : vector<8x128xf32>
    %cst_11 = arith.constant dense<0.000000e+00> : vector<8xf32>
    %26 = vector.multi_reduction <add>, %25, %cst_11 [1] : vector<8x128xf32> to vector<8xf32>
    %27 = vector.shape_cast %26 : vector<8xf32> to vector<8x1xf32>
    %cst_12 = arith.constant 1.280000e+02 : f32
    %28 = vector.broadcast %cst_12 : f32 to vector<8x1xf32>
    %29 = arith.divf %27, %28 : vector<8x1xf32>
    %30 = vector.broadcast %22 : vector<8x1xf32> to vector<8x128xf32>
    %31 = arith.subf %5, %30 : vector<8x128xf32>
    %cst_13 = arith.constant 9.99999974E-6 : f32
    %32 = vector.broadcast %cst_13 : f32 to vector<8x1xf32>
    %33 = arith.addf %29, %32 : vector<8x1xf32>
    %34 = math.rsqrt %33 : vector<8x1xf32>
    %35 = vector.broadcast %34 : vector<8x1xf32> to vector<8x128xf32>
    %36 = arith.mulf %31, %35 : vector<8x128xf32>
    %37 = vector.broadcast %11 : vector<1x128xf32> to vector<8x128xf32>
    %38 = arith.mulf %36, %37 : vector<8x128xf32>
    %39 = vector.broadcast %12 : vector<1x128xf32> to vector<8x128xf32>
    %40 = arith.addf %38, %39 : vector<8x128xf32>
    %41 = arith.truncf %40 : vector<8x128xf32> to vector<8x128xbf16>
    %c0_14 = arith.constant 0 : index
    %c0_15 = arith.constant 0 : index
    %c0_16 = arith.constant 0 : index
    %42 = vector.load %arg4[%c0_14, %c0_15, %c0_16] : memref<2x128x384xbf16, #tpu.memory_space<vmem>>, vector<1x128x384xbf16>
    %43 = vector.shape_cast %42 : vector<1x128x384xbf16> to vector<128x384xbf16>
    %cst_17 = arith.constant dense<0.000000e+00> : vector<8x384xf32>
    %44 = tpu.matmul %41, %43, %cst_17 {dimension_numbers = #tpu.dot_dimension_numbers<[1], [0], [0], [1], [0, 0, 1, 1], [], []>} : vector<8x128xbf16>, vector<128x384xbf16>, vector<8x384xf32> -> vector<8x384xf32>
    %45 = vector.broadcast %13 : vector<1x384xf32> to vector<8x384xf32>
    %46 = arith.addf %44, %45 : vector<8x384xf32>
    %47 = vector.extract_strided_slice %46 {offsets = [0, 0], sizes = [8, 32], strides = [1, 1]} : vector<8x384xf32> to vector<8x32xf32>
    %48 = arith.truncf %47 : vector<8x32xf32> to vector<8x32xbf16>
    %49 = vector.extract_strided_slice %46 {offsets = [0, 128], sizes = [8, 32], strides = [1, 1]} : vector<8x384xf32> to vector<8x32xf32>
    %50 = arith.truncf %49 : vector<8x32xf32> to vector<8x32xbf16>
    %51 = vector.extract_strided_slice %46 {offsets = [0, 256], sizes = [8, 32], strides = [1, 1]} : vector<8x384xf32> to vector<8x32xf32>
    %52 = arith.truncf %51 : vector<8x32xf32> to vector<8x32xbf16>
    "tpu.trace_start"() <{level = 10 : i32, message = "qd,kd->qk"}> : () -> ()
    %cst_18 = arith.constant dense<0.000000e+00> : vector<8x8xf32>
    %53 = tpu.matmul %48, %50, %cst_18 {dimension_numbers = #tpu.dot_dimension_numbers<[1], [1], [0], [0], [0, 0, 1, 0], [], []>} : vector<8x32xbf16>, vector<8x32xbf16>, vector<8x8xf32> -> vector<8x8xf32>
    %cst_19 = arith.constant -1.000000e+30 : f32
    "tpu.trace_stop"() : () -> ()
    %54 = vector.broadcast %cst_19 : f32 to vector<8x8xf32>
    %55 = arith.select %8, %53, %54 : vector<8x8xi1>, vector<8x8xf32>
    %cst_20 = arith.constant dense<0xFF800000> : vector<8xf32>
    %56 = vector.multi_reduction <maximumf>, %55, %cst_20 [1] : vector<8x8xf32> to vector<8xf32>
    %57 = vector.shape_cast %56 : vector<8xf32> to vector<8x1xf32>
    %58 = vector.broadcast %57 : vector<8x1xf32> to vector<8x8xf32>
    %59 = arith.subf %55, %58 : vector<8x8xf32>
    %60 = math.exp %59 : vector<8x8xf32>
    %cst_21 = arith.constant dense<0.000000e+00> : vector<8xf32>
    %61 = vector.multi_reduction <add>, %60, %cst_21 [1] : vector<8x8xf32> to vector<8xf32>
    %62 = vector.shape_cast %61 : vector<8xf32> to vector<8x1xf32>
    %63 = vector.broadcast %62 : vector<8x1xf32> to vector<8x8xf32>
    %64 = arith.divf %60, %63 : vector<8x8xf32>
    %65 = arith.truncf %64 : vector<8x8xf32> to vector<8x8xbf16>
    %cst_22 = arith.constant dense<0.000000e+00> : vector<8x32xf32>
    %66 = tpu.matmul %65, %52, %cst_22 {dimension_numbers = #tpu.dot_dimension_numbers<[1], [0], [0], [1], [0, 0, 1, 1], [], []>} : vector<8x8xbf16>, vector<8x32xbf16>, vector<8x32xf32> -> vector<8x32xf32>
    %67 = vector.extract_strided_slice %46 {offsets = [0, 32], sizes = [8, 32], strides = [1, 1]} : vector<8x384xf32> to vector<8x32xf32>
    %68 = arith.truncf %67 : vector<8x32xf32> to vector<8x32xbf16>
    %69 = vector.extract_strided_slice %46 {offsets = [0, 160], sizes = [8, 32], strides = [1, 1]} : vector<8x384xf32> to vector<8x32xf32>
    %70 = arith.truncf %69 : vector<8x32xf32> to vector<8x32xbf16>
    %71 = vector.extract_strided_slice %46 {offsets = [0, 288], sizes = [8, 32], strides = [1, 1]} : vector<8x384xf32> to vector<8x32xf32>
    %72 = arith.truncf %71 : vector<8x32xf32> to vector<8x32xbf16>
    "tpu.trace_start"() <{level = 10 : i32, message = "qd,kd->qk"}> : () -> ()
    %cst_23 = arith.constant dense<0.000000e+00> : vector<8x8xf32>
    %73 = tpu.matmul %68, %70, %cst_23 {dimension_numbers = #tpu.dot_dimension_numbers<[1], [1], [0], [0], [0, 0, 1, 0], [], []>} : vector<8x32xbf16>, vector<8x32xbf16>, vector<8x8xf32> -> vector<8x8xf32>
    %cst_24 = arith.constant -1.000000e+30 : f32
    "tpu.trace_stop"() : () -> ()
    %74 = vector.broadcast %cst_24 : f32 to vector<8x8xf32>
    %75 = arith.select %8, %73, %74 : vector<8x8xi1>, vector<8x8xf32>
    %cst_25 = arith.constant dense<0xFF800000> : vector<8xf32>
    %76 = vector.multi_reduction <maximumf>, %75, %cst_25 [1] : vector<8x8xf32> to vector<8xf32>
    %77 = vector.shape_cast %76 : vector<8xf32> to vector<8x1xf32>
    %78 = vector.broadcast %77 : vector<8x1xf32> to vector<8x8xf32>
    %79 = arith.subf %75, %78 : vector<8x8xf32>
    %80 = math.exp %79 : vector<8x8xf32>
    %cst_26 = arith.constant dense<0.000000e+00> : vector<8xf32>
    %81 = vector.multi_reduction <add>, %80, %cst_26 [1] : vector<8x8xf32> to vector<8xf32>
    %82 = vector.shape_cast %81 : vector<8xf32> to vector<8x1xf32>
    %83 = vector.broadcast %82 : vector<8x1xf32> to vector<8x8xf32>
    %84 = arith.divf %80, %83 : vector<8x8xf32>
    %85 = arith.truncf %84 : vector<8x8xf32> to vector<8x8xbf16>
    %cst_27 = arith.constant dense<0.000000e+00> : vector<8x32xf32>
    %86 = tpu.matmul %85, %72, %cst_27 {dimension_numbers = #tpu.dot_dimension_numbers<[1], [0], [0], [1], [0, 0, 1, 1], [], []>} : vector<8x8xbf16>, vector<8x32xbf16>, vector<8x32xf32> -> vector<8x32xf32>
    %87 = vector.extract_strided_slice %46 {offsets = [0, 64], sizes = [8, 32], strides = [1, 1]} : vector<8x384xf32> to vector<8x32xf32>
    %88 = arith.truncf %87 : vector<8x32xf32> to vector<8x32xbf16>
    %89 = vector.extract_strided_slice %46 {offsets = [0, 192], sizes = [8, 32], strides = [1, 1]} : vector<8x384xf32> to vector<8x32xf32>
    %90 = arith.truncf %89 : vector<8x32xf32> to vector<8x32xbf16>
    %91 = vector.extract_strided_slice %46 {offsets = [0, 320], sizes = [8, 32], strides = [1, 1]} : vector<8x384xf32> to vector<8x32xf32>
    %92 = arith.truncf %91 : vector<8x32xf32> to vector<8x32xbf16>
    "tpu.trace_start"() <{level = 10 : i32, message = "qd,kd->qk"}> : () -> ()
    %cst_28 = arith.constant dense<0.000000e+00> : vector<8x8xf32>
    %93 = tpu.matmul %88, %90, %cst_28 {dimension_numbers = #tpu.dot_dimension_numbers<[1], [1], [0], [0], [0, 0, 1, 0], [], []>} : vector<8x32xbf16>, vector<8x32xbf16>, vector<8x8xf32> -> vector<8x8xf32>
    %cst_29 = arith.constant -1.000000e+30 : f32
    "tpu.trace_stop"() : () -> ()
    %94 = vector.broadcast %cst_29 : f32 to vector<8x8xf32>
    %95 = arith.select %8, %93, %94 : vector<8x8xi1>, vector<8x8xf32>
    %cst_30 = arith.constant dense<0xFF800000> : vector<8xf32>
    %96 = vector.multi_reduction <maximumf>, %95, %cst_30 [1] : vector<8x8xf32> to vector<8xf32>
    %97 = vector.shape_cast %96 : vector<8xf32> to vector<8x1xf32>
    %98 = vector.broadcast %97 : vector<8x1xf32> to vector<8x8xf32>
    %99 = arith.subf %95, %98 : vector<8x8xf32>
    %100 = math.exp %99 : vector<8x8xf32>
    %cst_31 = arith.constant dense<0.000000e+00> : vector<8xf32>
    %101 = vector.multi_reduction <add>, %100, %cst_31 [1] : vector<8x8xf32> to vector<8xf32>
    %102 = vector.shape_cast %101 : vector<8xf32> to vector<8x1xf32>
    %103 = vector.broadcast %102 : vector<8x1xf32> to vector<8x8xf32>
    %104 = arith.divf %100, %103 : vector<8x8xf32>
    %105 = arith.truncf %104 : vector<8x8xf32> to vector<8x8xbf16>
    %cst_32 = arith.constant dense<0.000000e+00> : vector<8x32xf32>
    %106 = tpu.matmul %105, %92, %cst_32 {dimension_numbers = #tpu.dot_dimension_numbers<[1], [0], [0], [1], [0, 0, 1, 1], [], []>} : vector<8x8xbf16>, vector<8x32xbf16>, vector<8x32xf32> -> vector<8x32xf32>
    %107 = vector.extract_strided_slice %46 {offsets = [0, 96], sizes = [8, 32], strides = [1, 1]} : vector<8x384xf32> to vector<8x32xf32>
    %108 = arith.truncf %107 : vector<8x32xf32> to vector<8x32xbf16>
    %109 = vector.extract_strided_slice %46 {offsets = [0, 224], sizes = [8, 32], strides = [1, 1]} : vector<8x384xf32> to vector<8x32xf32>
    %110 = arith.truncf %109 : vector<8x32xf32> to vector<8x32xbf16>
    %111 = vector.extract_strided_slice %46 {offsets = [0, 352], sizes = [8, 32], strides = [1, 1]} : vector<8x384xf32> to vector<8x32xf32>
    %112 = arith.truncf %111 : vector<8x32xf32> to vector<8x32xbf16>
    "tpu.trace_start"() <{level = 10 : i32, message = "qd,kd->qk"}> : () -> ()
    %cst_33 = arith.constant dense<0.000000e+00> : vector<8x8xf32>
    %113 = tpu.matmul %108, %110, %cst_33 {dimension_numbers = #tpu.dot_dimension_numbers<[1], [1], [0], [0], [0, 0, 1, 0], [], []>} : vector<8x32xbf16>, vector<8x32xbf16>, vector<8x8xf32> -> vector<8x8xf32>
    %cst_34 = arith.constant -1.000000e+30 : f32
    "tpu.trace_stop"() : () -> ()
    %114 = vector.broadcast %cst_34 : f32 to vector<8x8xf32>
    %115 = arith.select %8, %113, %114 : vector<8x8xi1>, vector<8x8xf32>
    %cst_35 = arith.constant dense<0xFF800000> : vector<8xf32>
    %116 = vector.multi_reduction <maximumf>, %115, %cst_35 [1] : vector<8x8xf32> to vector<8xf32>
    %117 = vector.shape_cast %116 : vector<8xf32> to vector<8x1xf32>
    %118 = vector.broadcast %117 : vector<8x1xf32> to vector<8x8xf32>
    %119 = arith.subf %115, %118 : vector<8x8xf32>
    %120 = math.exp %119 : vector<8x8xf32>
    %cst_36 = arith.constant dense<0.000000e+00> : vector<8xf32>
    %121 = vector.multi_reduction <add>, %120, %cst_36 [1] : vector<8x8xf32> to vector<8xf32>
    %122 = vector.shape_cast %121 : vector<8xf32> to vector<8x1xf32>
    %123 = vector.broadcast %122 : vector<8x1xf32> to vector<8x8xf32>
    %124 = arith.divf %120, %123 : vector<8x8xf32>
    %125 = arith.truncf %124 : vector<8x8xf32> to vector<8x8xbf16>
    %cst_37 = arith.constant dense<0.000000e+00> : vector<8x32xf32>
    %126 = tpu.matmul %125, %112, %cst_37 {dimension_numbers = #tpu.dot_dimension_numbers<[1], [0], [0], [1], [0, 0, 1, 1], [], []>} : vector<8x8xbf16>, vector<8x32xbf16>, vector<8x32xf32> -> vector<8x32xf32>
    %127 = tpu.concatenate %66, %86, %106, %126 in 1 : vector<8x32xf32>, vector<8x32xf32>, vector<8x32xf32>, vector<8x32xf32> -> vector<8x128xf32>
    %128 = arith.truncf %127 : vector<8x128xf32> to vector<8x128xbf16>
    %c0_38 = arith.constant 0 : index
    %c0_39 = arith.constant 0 : index
    %c0_40 = arith.constant 0 : index
    %129 = vector.load %arg5[%c0_38, %c0_39, %c0_40] : memref<2x128x128xbf16, #tpu.memory_space<vmem>>, vector<1x128x128xbf16>
    %130 = vector.shape_cast %129 : vector<1x128x128xbf16> to vector<128x128xbf16>
    %cst_41 = arith.constant dense<0.000000e+00> : vector<8x128xf32>
    %131 = tpu.matmul %128, %130, %cst_41 {dimension_numbers = #tpu.dot_dimension_numbers<[1], [0], [0], [1], [0, 0, 1, 1], [], []>} : vector<8x128xbf16>, vector<128x128xbf16>, vector<8x128xf32> -> vector<8x128xf32>
    %132 = vector.broadcast %14 : vector<1x128xf32> to vector<8x128xf32>
    %133 = arith.addf %131, %132 : vector<8x128xf32>
    %134 = arith.addf %5, %133 : vector<8x128xf32>
    %cst_42 = arith.constant dense<0.000000e+00> : vector<8xf32>
    %135 = vector.multi_reduction <add>, %134, %cst_42 [1] : vector<8x128xf32> to vector<8xf32>
    %136 = vector.shape_cast %135 : vector<8xf32> to vector<8x1xf32>
    %cst_43 = arith.constant 1.280000e+02 : f32
    %137 = vector.broadcast %cst_43 : f32 to vector<8x1xf32>
    %138 = arith.divf %136, %137 : vector<8x1xf32>
    %139 = vector.broadcast %138 : vector<8x1xf32> to vector<8x128xf32>
    %140 = arith.subf %134, %139 : vector<8x128xf32>
    %141 = arith.mulf %140, %140 : vector<8x128xf32>
    %cst_44 = arith.constant dense<0.000000e+00> : vector<8xf32>
    %142 = vector.multi_reduction <add>, %141, %cst_44 [1] : vector<8x128xf32> to vector<8xf32>
    %143 = vector.shape_cast %142 : vector<8xf32> to vector<8x1xf32>
    %cst_45 = arith.constant 1.280000e+02 : f32
    %144 = vector.broadcast %cst_45 : f32 to vector<8x1xf32>
    %145 = arith.divf %143, %144 : vector<8x1xf32>
    %146 = vector.broadcast %138 : vector<8x1xf32> to vector<8x128xf32>
    %147 = arith.subf %134, %146 : vector<8x128xf32>
    %cst_46 = arith.constant 9.99999974E-6 : f32
    %148 = vector.broadcast %cst_46 : f32 to vector<8x1xf32>
    %149 = arith.addf %145, %148 : vector<8x1xf32>
    %150 = math.rsqrt %149 : vector<8x1xf32>
    %151 = vector.broadcast %150 : vector<8x1xf32> to vector<8x128xf32>
    %152 = arith.mulf %147, %151 : vector<8x128xf32>
    %153 = vector.broadcast %15 : vector<1x128xf32> to vector<8x128xf32>
    %154 = arith.mulf %152, %153 : vector<8x128xf32>
    %155 = vector.broadcast %16 : vector<1x128xf32> to vector<8x128xf32>
    %156 = arith.addf %154, %155 : vector<8x128xf32>
    %157 = arith.truncf %156 : vector<8x128xf32> to vector<8x128xbf16>
    %c0_47 = arith.constant 0 : index
    %c0_48 = arith.constant 0 : index
    %c0_49 = arith.constant 0 : index
    %158 = vector.load %arg6[%c0_47, %c0_48, %c0_49] : memref<2x128x256xbf16, #tpu.memory_space<vmem>>, vector<1x128x256xbf16>
    %159 = vector.shape_cast %158 : vector<1x128x256xbf16> to vector<128x256xbf16>
    %cst_50 = arith.constant dense<0.000000e+00> : vector<8x256xf32>
    %160 = tpu.matmul %157, %159, %cst_50 {dimension_numbers = #tpu.dot_dimension_numbers<[1], [0], [0], [1], [0, 0, 1, 1], [], []>} : vector<8x128xbf16>, vector<128x256xbf16>, vector<8x256xf32> -> vector<8x256xf32>
    %161 = vector.broadcast %17 : vector<1x256xf32> to vector<8x256xf32>
    %162 = arith.addf %160, %161 : vector<8x256xf32>
    %cst_51 = arith.constant 5.000000e-01 : f32
    %163 = vector.broadcast %cst_51 : f32 to vector<8x256xf32>
    %164 = arith.mulf %163, %162 : vector<8x256xf32>
    %cst_52 = arith.constant 4.471500e-02 : f32
    %165 = vector.broadcast %cst_52 : f32 to vector<8x256xf32>
    %166 = arith.mulf %165, %162 : vector<8x256xf32>
    %167 = arith.mulf %166, %162 : vector<8x256xf32>
    %168 = arith.mulf %167, %162 : vector<8x256xf32>
    %169 = arith.addf %162, %168 : vector<8x256xf32>
    %cst_53 = arith.constant 0.797884583 : f32
    %170 = vector.broadcast %cst_53 : f32 to vector<8x256xf32>
    %171 = arith.mulf %170, %169 : vector<8x256xf32>
    %172 = math.tanh %171 : vector<8x256xf32>
    %cst_54 = arith.constant 1.000000e+00 : f32
    %173 = vector.broadcast %cst_54 : f32 to vector<8x256xf32>
    %174 = arith.addf %173, %172 : vector<8x256xf32>
    %175 = arith.mulf %164, %174 : vector<8x256xf32>
    %176 = arith.truncf %175 : vector<8x256xf32> to vector<8x256xbf16>
    %c0_55 = arith.constant 0 : index
    %c0_56 = arith.constant 0 : index
    %c0_57 = arith.constant 0 : index
    %177 = vector.load %arg7[%c0_55, %c0_56, %c0_57] : memref<2x256x128xbf16, #tpu.memory_space<vmem>>, vector<1x256x128xbf16>
    %178 = vector.shape_cast %177 : vector<1x256x128xbf16> to vector<256x128xbf16>
    %cst_58 = arith.constant dense<0.000000e+00> : vector<8x128xf32>
    %179 = tpu.matmul %176, %178, %cst_58 {dimension_numbers = #tpu.dot_dimension_numbers<[1], [0], [0], [1], [0, 0, 1, 1], [], []>} : vector<8x256xbf16>, vector<256x128xbf16>, vector<8x128xf32> -> vector<8x128xf32>
    %180 = vector.broadcast %18 : vector<1x128xf32> to vector<8x128xf32>
    %181 = arith.addf %179, %180 : vector<8x128xf32>
    %182 = arith.addf %134, %181 : vector<8x128xf32>
    %c1 = arith.constant 1 : index
    %c0_59 = arith.constant 0 : index
    %c0_60 = arith.constant 0 : index
    %183 = vector.load %arg8[%c1, %c0_59, %c0_60] : memref<2x8x384xf32, #tpu.memory_space<vmem>>, vector<1x8x384xf32>
    %184 = vector.shape_cast %183 : vector<1x8x384xf32> to vector<8x384xf32>
    %185 = vector.extract_strided_slice %184 {offsets = [0, 0], sizes = [1, 128], strides = [1, 1]} : vector<8x384xf32> to vector<1x128xf32>
    %186 = vector.extract_strided_slice %184 {offsets = [1, 0], sizes = [1, 128], strides = [1, 1]} : vector<8x384xf32> to vector<1x128xf32>
    %187 = vector.extract_strided_slice %184 {offsets = [2, 0], sizes = [1, 384], strides = [1, 1]} : vector<8x384xf32> to vector<1x384xf32>
    %188 = vector.extract_strided_slice %184 {offsets = [3, 0], sizes = [1, 128], strides = [1, 1]} : vector<8x384xf32> to vector<1x128xf32>
    %189 = vector.extract_strided_slice %184 {offsets = [4, 0], sizes = [1, 128], strides = [1, 1]} : vector<8x384xf32> to vector<1x128xf32>
    %190 = vector.extract_strided_slice %184 {offsets = [5, 0], sizes = [1, 128], strides = [1, 1]} : vector<8x384xf32> to vector<1x128xf32>
    %191 = vector.extract_strided_slice %184 {offsets = [6, 0], sizes = [1, 256], strides = [1, 1]} : vector<8x384xf32> to vector<1x256xf32>
    %192 = vector.extract_strided_slice %184 {offsets = [7, 0], sizes = [1, 128], strides = [1, 1]} : vector<8x384xf32> to vector<1x128xf32>
    %cst_61 = arith.constant dense<0.000000e+00> : vector<8xf32>
    %193 = vector.multi_reduction <add>, %182, %cst_61 [1] : vector<8x128xf32> to vector<8xf32>
    %194 = vector.shape_cast %193 : vector<8xf32> to vector<8x1xf32>
    %cst_62 = arith.constant 1.280000e+02 : f32
    %195 = vector.broadcast %cst_62 : f32 to vector<8x1xf32>
    %196 = arith.divf %194, %195 : vector<8x1xf32>
    %197 = vector.broadcast %196 : vector<8x1xf32> to vector<8x128xf32>
    %198 = arith.subf %182, %197 : vector<8x128xf32>
    %199 = arith.mulf %198, %198 : vector<8x128xf32>
    %cst_63 = arith.constant dense<0.000000e+00> : vector<8xf32>
    %200 = vector.multi_reduction <add>, %199, %cst_63 [1] : vector<8x128xf32> to vector<8xf32>
    %201 = vector.shape_cast %200 : vector<8xf32> to vector<8x1xf32>
    %cst_64 = arith.constant 1.280000e+02 : f32
    %202 = vector.broadcast %cst_64 : f32 to vector<8x1xf32>
    %203 = arith.divf %201, %202 : vector<8x1xf32>
    %204 = vector.broadcast %196 : vector<8x1xf32> to vector<8x128xf32>
    %205 = arith.subf %182, %204 : vector<8x128xf32>
    %cst_65 = arith.constant 9.99999974E-6 : f32
    %206 = vector.broadcast %cst_65 : f32 to vector<8x1xf32>
    %207 = arith.addf %203, %206 : vector<8x1xf32>
    %208 = math.rsqrt %207 : vector<8x1xf32>
    %209 = vector.broadcast %208 : vector<8x1xf32> to vector<8x128xf32>
    %210 = arith.mulf %205, %209 : vector<8x128xf32>
    %211 = vector.broadcast %185 : vector<1x128xf32> to vector<8x128xf32>
    %212 = arith.mulf %210, %211 : vector<8x128xf32>
    %213 = vector.broadcast %186 : vector<1x128xf32> to vector<8x128xf32>
    %214 = arith.addf %212, %213 : vector<8x128xf32>
    %215 = arith.truncf %214 : vector<8x128xf32> to vector<8x128xbf16>
    %c1_66 = arith.constant 1 : index
    %c0_67 = arith.constant 0 : index
    %c0_68 = arith.constant 0 : index
    %216 = vector.load %arg4[%c1_66, %c0_67, %c0_68] : memref<2x128x384xbf16, #tpu.memory_space<vmem>>, vector<1x128x384xbf16>
    %217 = vector.shape_cast %216 : vector<1x128x384xbf16> to vector<128x384xbf16>
    %cst_69 = arith.constant dense<0.000000e+00> : vector<8x384xf32>
    %218 = tpu.matmul %215, %217, %cst_69 {dimension_numbers = #tpu.dot_dimension_numbers<[1], [0], [0], [1], [0, 0, 1, 1], [], []>} : vector<8x128xbf16>, vector<128x384xbf16>, vector<8x384xf32> -> vector<8x384xf32>
    %219 = vector.broadcast %187 : vector<1x384xf32> to vector<8x384xf32>
    %220 = arith.addf %218, %219 : vector<8x384xf32>
    %221 = vector.extract_strided_slice %220 {offsets = [0, 0], sizes = [8, 32], strides = [1, 1]} : vector<8x384xf32> to vector<8x32xf32>
    %222 = arith.truncf %221 : vector<8x32xf32> to vector<8x32xbf16>
    %223 = vector.extract_strided_slice %220 {offsets = [0, 128], sizes = [8, 32], strides = [1, 1]} : vector<8x384xf32> to vector<8x32xf32>
    %224 = arith.truncf %223 : vector<8x32xf32> to vector<8x32xbf16>
    %225 = vector.extract_strided_slice %220 {offsets = [0, 256], sizes = [8, 32], strides = [1, 1]} : vector<8x384xf32> to vector<8x32xf32>
    %226 = arith.truncf %225 : vector<8x32xf32> to vector<8x32xbf16>
    "tpu.trace_start"() <{level = 10 : i32, message = "qd,kd->qk"}> : () -> ()
    %cst_70 = arith.constant dense<0.000000e+00> : vector<8x8xf32>
    %227 = tpu.matmul %222, %224, %cst_70 {dimension_numbers = #tpu.dot_dimension_numbers<[1], [1], [0], [0], [0, 0, 1, 0], [], []>} : vector<8x32xbf16>, vector<8x32xbf16>, vector<8x8xf32> -> vector<8x8xf32>
    %cst_71 = arith.constant -1.000000e+30 : f32
    "tpu.trace_stop"() : () -> ()
    %228 = vector.broadcast %cst_71 : f32 to vector<8x8xf32>
    %229 = arith.select %8, %227, %228 : vector<8x8xi1>, vector<8x8xf32>
    %cst_72 = arith.constant dense<0xFF800000> : vector<8xf32>
    %230 = vector.multi_reduction <maximumf>, %229, %cst_72 [1] : vector<8x8xf32> to vector<8xf32>
    %231 = vector.shape_cast %230 : vector<8xf32> to vector<8x1xf32>
    %232 = vector.broadcast %231 : vector<8x1xf32> to vector<8x8xf32>
    %233 = arith.subf %229, %232 : vector<8x8xf32>
    %234 = math.exp %233 : vector<8x8xf32>
    %cst_73 = arith.constant dense<0.000000e+00> : vector<8xf32>
    %235 = vector.multi_reduction <add>, %234, %cst_73 [1] : vector<8x8xf32> to vector<8xf32>
    %236 = vector.shape_cast %235 : vector<8xf32> to vector<8x1xf32>
    %237 = vector.broadcast %236 : vector<8x1xf32> to vector<8x8xf32>
    %238 = arith.divf %234, %237 : vector<8x8xf32>
    %239 = arith.truncf %238 : vector<8x8xf32> to vector<8x8xbf16>
    %cst_74 = arith.constant dense<0.000000e+00> : vector<8x32xf32>
    %240 = tpu.matmul %239, %226, %cst_74 {dimension_numbers = #tpu.dot_dimension_numbers<[1], [0], [0], [1], [0, 0, 1, 1], [], []>} : vector<8x8xbf16>, vector<8x32xbf16>, vector<8x32xf32> -> vector<8x32xf32>
    %241 = vector.extract_strided_slice %220 {offsets = [0, 32], sizes = [8, 32], strides = [1, 1]} : vector<8x384xf32> to vector<8x32xf32>
    %242 = arith.truncf %241 : vector<8x32xf32> to vector<8x32xbf16>
    %243 = vector.extract_strided_slice %220 {offsets = [0, 160], sizes = [8, 32], strides = [1, 1]} : vector<8x384xf32> to vector<8x32xf32>
    %244 = arith.truncf %243 : vector<8x32xf32> to vector<8x32xbf16>
    %245 = vector.extract_strided_slice %220 {offsets = [0, 288], sizes = [8, 32], strides = [1, 1]} : vector<8x384xf32> to vector<8x32xf32>
    %246 = arith.truncf %245 : vector<8x32xf32> to vector<8x32xbf16>
    "tpu.trace_start"() <{level = 10 : i32, message = "qd,kd->qk"}> : () -> ()
    %cst_75 = arith.constant dense<0.000000e+00> : vector<8x8xf32>
    %247 = tpu.matmul %242, %244, %cst_75 {dimension_numbers = #tpu.dot_dimension_numbers<[1], [1], [0], [0], [0, 0, 1, 0], [], []>} : vector<8x32xbf16>, vector<8x32xbf16>, vector<8x8xf32> -> vector<8x8xf32>
    %cst_76 = arith.constant -1.000000e+30 : f32
    "tpu.trace_stop"() : () -> ()
    %248 = vector.broadcast %cst_76 : f32 to vector<8x8xf32>
    %249 = arith.select %8, %247, %248 : vector<8x8xi1>, vector<8x8xf32>
    %cst_77 = arith.constant dense<0xFF800000> : vector<8xf32>
    %250 = vector.multi_reduction <maximumf>, %249, %cst_77 [1] : vector<8x8xf32> to vector<8xf32>
    %251 = vector.shape_cast %250 : vector<8xf32> to vector<8x1xf32>
    %252 = vector.broadcast %251 : vector<8x1xf32> to vector<8x8xf32>
    %253 = arith.subf %249, %252 : vector<8x8xf32>
    %254 = math.exp %253 : vector<8x8xf32>
    %cst_78 = arith.constant dense<0.000000e+00> : vector<8xf32>
    %255 = vector.multi_reduction <add>, %254, %cst_78 [1] : vector<8x8xf32> to vector<8xf32>
    %256 = vector.shape_cast %255 : vector<8xf32> to vector<8x1xf32>
    %257 = vector.broadcast %256 : vector<8x1xf32> to vector<8x8xf32>
    %258 = arith.divf %254, %257 : vector<8x8xf32>
    %259 = arith.truncf %258 : vector<8x8xf32> to vector<8x8xbf16>
    %cst_79 = arith.constant dense<0.000000e+00> : vector<8x32xf32>
    %260 = tpu.matmul %259, %246, %cst_79 {dimension_numbers = #tpu.dot_dimension_numbers<[1], [0], [0], [1], [0, 0, 1, 1], [], []>} : vector<8x8xbf16>, vector<8x32xbf16>, vector<8x32xf32> -> vector<8x32xf32>
    %261 = vector.extract_strided_slice %220 {offsets = [0, 64], sizes = [8, 32], strides = [1, 1]} : vector<8x384xf32> to vector<8x32xf32>
    %262 = arith.truncf %261 : vector<8x32xf32> to vector<8x32xbf16>
    %263 = vector.extract_strided_slice %220 {offsets = [0, 192], sizes = [8, 32], strides = [1, 1]} : vector<8x384xf32> to vector<8x32xf32>
    %264 = arith.truncf %263 : vector<8x32xf32> to vector<8x32xbf16>
    %265 = vector.extract_strided_slice %220 {offsets = [0, 320], sizes = [8, 32], strides = [1, 1]} : vector<8x384xf32> to vector<8x32xf32>
    %266 = arith.truncf %265 : vector<8x32xf32> to vector<8x32xbf16>
    "tpu.trace_start"() <{level = 10 : i32, message = "qd,kd->qk"}> : () -> ()
    %cst_80 = arith.constant dense<0.000000e+00> : vector<8x8xf32>
    %267 = tpu.matmul %262, %264, %cst_80 {dimension_numbers = #tpu.dot_dimension_numbers<[1], [1], [0], [0], [0, 0, 1, 0], [], []>} : vector<8x32xbf16>, vector<8x32xbf16>, vector<8x8xf32> -> vector<8x8xf32>
    %cst_81 = arith.constant -1.000000e+30 : f32
    "tpu.trace_stop"() : () -> ()
    %268 = vector.broadcast %cst_81 : f32 to vector<8x8xf32>
    %269 = arith.select %8, %267, %268 : vector<8x8xi1>, vector<8x8xf32>
    %cst_82 = arith.constant dense<0xFF800000> : vector<8xf32>
    %270 = vector.multi_reduction <maximumf>, %269, %cst_82 [1] : vector<8x8xf32> to vector<8xf32>
    %271 = vector.shape_cast %270 : vector<8xf32> to vector<8x1xf32>
    %272 = vector.broadcast %271 : vector<8x1xf32> to vector<8x8xf32>
    %273 = arith.subf %269, %272 : vector<8x8xf32>
    %274 = math.exp %273 : vector<8x8xf32>
    %cst_83 = arith.constant dense<0.000000e+00> : vector<8xf32>
    %275 = vector.multi_reduction <add>, %274, %cst_83 [1] : vector<8x8xf32> to vector<8xf32>
    %276 = vector.shape_cast %275 : vector<8xf32> to vector<8x1xf32>
    %277 = vector.broadcast %276 : vector<8x1xf32> to vector<8x8xf32>
    %278 = arith.divf %274, %277 : vector<8x8xf32>
    %279 = arith.truncf %278 : vector<8x8xf32> to vector<8x8xbf16>
    %cst_84 = arith.constant dense<0.000000e+00> : vector<8x32xf32>
    %280 = tpu.matmul %279, %266, %cst_84 {dimension_numbers = #tpu.dot_dimension_numbers<[1], [0], [0], [1], [0, 0, 1, 1], [], []>} : vector<8x8xbf16>, vector<8x32xbf16>, vector<8x32xf32> -> vector<8x32xf32>
    %281 = vector.extract_strided_slice %220 {offsets = [0, 96], sizes = [8, 32], strides = [1, 1]} : vector<8x384xf32> to vector<8x32xf32>
    %282 = arith.truncf %281 : vector<8x32xf32> to vector<8x32xbf16>
    %283 = vector.extract_strided_slice %220 {offsets = [0, 224], sizes = [8, 32], strides = [1, 1]} : vector<8x384xf32> to vector<8x32xf32>
    %284 = arith.truncf %283 : vector<8x32xf32> to vector<8x32xbf16>
    %285 = vector.extract_strided_slice %220 {offsets = [0, 352], sizes = [8, 32], strides = [1, 1]} : vector<8x384xf32> to vector<8x32xf32>
    %286 = arith.truncf %285 : vector<8x32xf32> to vector<8x32xbf16>
    "tpu.trace_start"() <{level = 10 : i32, message = "qd,kd->qk"}> : () -> ()
    %cst_85 = arith.constant dense<0.000000e+00> : vector<8x8xf32>
    %287 = tpu.matmul %282, %284, %cst_85 {dimension_numbers = #tpu.dot_dimension_numbers<[1], [1], [0], [0], [0, 0, 1, 0], [], []>} : vector<8x32xbf16>, vector<8x32xbf16>, vector<8x8xf32> -> vector<8x8xf32>
    %cst_86 = arith.constant -1.000000e+30 : f32
    "tpu.trace_stop"() : () -> ()
    %288 = vector.broadcast %cst_86 : f32 to vector<8x8xf32>
    %289 = arith.select %8, %287, %288 : vector<8x8xi1>, vector<8x8xf32>
    %cst_87 = arith.constant dense<0xFF800000> : vector<8xf32>
    %290 = vector.multi_reduction <maximumf>, %289, %cst_87 [1] : vector<8x8xf32> to vector<8xf32>
    %291 = vector.shape_cast %290 : vector<8xf32> to vector<8x1xf32>
    %292 = vector.broadcast %291 : vector<8x1xf32> to vector<8x8xf32>
    %293 = arith.subf %289, %292 : vector<8x8xf32>
    %294 = math.exp %293 : vector<8x8xf32>
    %cst_88 = arith.constant dense<0.000000e+00> : vector<8xf32>
    %295 = vector.multi_reduction <add>, %294, %cst_88 [1] : vector<8x8xf32> to vector<8xf32>
    %296 = vector.shape_cast %295 : vector<8xf32> to vector<8x1xf32>
    %297 = vector.broadcast %296 : vector<8x1xf32> to vector<8x8xf32>
    %298 = arith.divf %294, %297 : vector<8x8xf32>
    %299 = arith.truncf %298 : vector<8x8xf32> to vector<8x8xbf16>
    %cst_89 = arith.constant dense<0.000000e+00> : vector<8x32xf32>
    %300 = tpu.matmul %299, %286, %cst_89 {dimension_numbers = #tpu.dot_dimension_numbers<[1], [0], [0], [1], [0, 0, 1, 1], [], []>} : vector<8x8xbf16>, vector<8x32xbf16>, vector<8x32xf32> -> vector<8x32xf32>
    %301 = tpu.concatenate %240, %260, %280, %300 in 1 : vector<8x32xf32>, vector<8x32xf32>, vector<8x32xf32>, vector<8x32xf32> -> vector<8x128xf32>
    %302 = arith.truncf %301 : vector<8x128xf32> to vector<8x128xbf16>
    %c1_90 = arith.constant 1 : index
    %c0_91 = arith.constant 0 : index
    %c0_92 = arith.constant 0 : index
    %303 = vector.load %arg5[%c1_90, %c0_91, %c0_92] : memref<2x128x128xbf16, #tpu.memory_space<vmem>>, vector<1x128x128xbf16>
    %304 = vector.shape_cast %303 : vector<1x128x128xbf16> to vector<128x128xbf16>
    %cst_93 = arith.constant dense<0.000000e+00> : vector<8x128xf32>
    %305 = tpu.matmul %302, %304, %cst_93 {dimension_numbers = #tpu.dot_dimension_numbers<[1], [0], [0], [1], [0, 0, 1, 1], [], []>} : vector<8x128xbf16>, vector<128x128xbf16>, vector<8x128xf32> -> vector<8x128xf32>
    %306 = vector.broadcast %188 : vector<1x128xf32> to vector<8x128xf32>
    %307 = arith.addf %305, %306 : vector<8x128xf32>
    %308 = arith.addf %182, %307 : vector<8x128xf32>
    %cst_94 = arith.constant dense<0.000000e+00> : vector<8xf32>
    %309 = vector.multi_reduction <add>, %308, %cst_94 [1] : vector<8x128xf32> to vector<8xf32>
    %310 = vector.shape_cast %309 : vector<8xf32> to vector<8x1xf32>
    %cst_95 = arith.constant 1.280000e+02 : f32
    %311 = vector.broadcast %cst_95 : f32 to vector<8x1xf32>
    %312 = arith.divf %310, %311 : vector<8x1xf32>
    %313 = vector.broadcast %312 : vector<8x1xf32> to vector<8x128xf32>
    %314 = arith.subf %308, %313 : vector<8x128xf32>
    %315 = arith.mulf %314, %314 : vector<8x128xf32>
    %cst_96 = arith.constant dense<0.000000e+00> : vector<8xf32>
    %316 = vector.multi_reduction <add>, %315, %cst_96 [1] : vector<8x128xf32> to vector<8xf32>
    %317 = vector.shape_cast %316 : vector<8xf32> to vector<8x1xf32>
    %cst_97 = arith.constant 1.280000e+02 : f32
    %318 = vector.broadcast %cst_97 : f32 to vector<8x1xf32>
    %319 = arith.divf %317, %318 : vector<8x1xf32>
    %320 = vector.broadcast %312 : vector<8x1xf32> to vector<8x128xf32>
    %321 = arith.subf %308, %320 : vector<8x128xf32>
    %cst_98 = arith.constant 9.99999974E-6 : f32
    %322 = vector.broadcast %cst_98 : f32 to vector<8x1xf32>
    %323 = arith.addf %319, %322 : vector<8x1xf32>
    %324 = math.rsqrt %323 : vector<8x1xf32>
    %325 = vector.broadcast %324 : vector<8x1xf32> to vector<8x128xf32>
    %326 = arith.mulf %321, %325 : vector<8x128xf32>
    %327 = vector.broadcast %189 : vector<1x128xf32> to vector<8x128xf32>
    %328 = arith.mulf %326, %327 : vector<8x128xf32>
    %329 = vector.broadcast %190 : vector<1x128xf32> to vector<8x128xf32>
    %330 = arith.addf %328, %329 : vector<8x128xf32>
    %331 = arith.truncf %330 : vector<8x128xf32> to vector<8x128xbf16>
    %c1_99 = arith.constant 1 : index
    %c0_100 = arith.constant 0 : index
    %c0_101 = arith.constant 0 : index
    %332 = vector.load %arg6[%c1_99, %c0_100, %c0_101] : memref<2x128x256xbf16, #tpu.memory_space<vmem>>, vector<1x128x256xbf16>
    %333 = vector.shape_cast %332 : vector<1x128x256xbf16> to vector<128x256xbf16>
    %cst_102 = arith.constant dense<0.000000e+00> : vector<8x256xf32>
    %334 = tpu.matmul %331, %333, %cst_102 {dimension_numbers = #tpu.dot_dimension_numbers<[1], [0], [0], [1], [0, 0, 1, 1], [], []>} : vector<8x128xbf16>, vector<128x256xbf16>, vector<8x256xf32> -> vector<8x256xf32>
    %335 = vector.broadcast %191 : vector<1x256xf32> to vector<8x256xf32>
    %336 = arith.addf %334, %335 : vector<8x256xf32>
    %cst_103 = arith.constant 5.000000e-01 : f32
    %337 = vector.broadcast %cst_103 : f32 to vector<8x256xf32>
    %338 = arith.mulf %337, %336 : vector<8x256xf32>
    %cst_104 = arith.constant 4.471500e-02 : f32
    %339 = vector.broadcast %cst_104 : f32 to vector<8x256xf32>
    %340 = arith.mulf %339, %336 : vector<8x256xf32>
    %341 = arith.mulf %340, %336 : vector<8x256xf32>
    %342 = arith.mulf %341, %336 : vector<8x256xf32>
    %343 = arith.addf %336, %342 : vector<8x256xf32>
    %cst_105 = arith.constant 0.797884583 : f32
    %344 = vector.broadcast %cst_105 : f32 to vector<8x256xf32>
    %345 = arith.mulf %344, %343 : vector<8x256xf32>
    %346 = math.tanh %345 : vector<8x256xf32>
    %cst_106 = arith.constant 1.000000e+00 : f32
    %347 = vector.broadcast %cst_106 : f32 to vector<8x256xf32>
    %348 = arith.addf %347, %346 : vector<8x256xf32>
    %349 = arith.mulf %338, %348 : vector<8x256xf32>
    %350 = arith.truncf %349 : vector<8x256xf32> to vector<8x256xbf16>
    %c1_107 = arith.constant 1 : index
    %c0_108 = arith.constant 0 : index
    %c0_109 = arith.constant 0 : index
    %351 = vector.load %arg7[%c1_107, %c0_108, %c0_109] : memref<2x256x128xbf16, #tpu.memory_space<vmem>>, vector<1x256x128xbf16>
    %352 = vector.shape_cast %351 : vector<1x256x128xbf16> to vector<256x128xbf16>
    %cst_110 = arith.constant dense<0.000000e+00> : vector<8x128xf32>
    %353 = tpu.matmul %350, %352, %cst_110 {dimension_numbers = #tpu.dot_dimension_numbers<[1], [0], [0], [1], [0, 0, 1, 1], [], []>} : vector<8x256xbf16>, vector<256x128xbf16>, vector<8x128xf32> -> vector<8x128xf32>
    %354 = vector.broadcast %192 : vector<1x128xf32> to vector<8x128xf32>
    %355 = arith.addf %353, %354 : vector<8x128xf32>
    %356 = arith.addf %308, %355 : vector<8x128xf32>
    %c0_111 = arith.constant 0 : index
    %c0_112 = arith.constant 0 : index
    %357 = vector.load %arg10[%c0_111, %c0_112] : memref<8x128xf32, #tpu.memory_space<vmem>>, vector<8x128xf32>
    %358 = vector.extract_strided_slice %357 {offsets = [0, 0], sizes = [1, 128], strides = [1, 1]} : vector<8x128xf32> to vector<1x128xf32>
    %359 = vector.extract_strided_slice %357 {offsets = [1, 0], sizes = [1, 128], strides = [1, 1]} : vector<8x128xf32> to vector<1x128xf32>
    %cst_113 = arith.constant dense<0.000000e+00> : vector<8xf32>
    %360 = vector.multi_reduction <add>, %356, %cst_113 [1] : vector<8x128xf32> to vector<8xf32>
    %361 = vector.shape_cast %360 : vector<8xf32> to vector<8x1xf32>
    %cst_114 = arith.constant 1.280000e+02 : f32
    %362 = vector.broadcast %cst_114 : f32 to vector<8x1xf32>
    %363 = arith.divf %361, %362 : vector<8x1xf32>
    %364 = vector.broadcast %363 : vector<8x1xf32> to vector<8x128xf32>
    %365 = arith.subf %356, %364 : vector<8x128xf32>
    %366 = arith.mulf %365, %365 : vector<8x128xf32>
    %cst_115 = arith.constant dense<0.000000e+00> : vector<8xf32>
    %367 = vector.multi_reduction <add>, %366, %cst_115 [1] : vector<8x128xf32> to vector<8xf32>
    %368 = vector.shape_cast %367 : vector<8xf32> to vector<8x1xf32>
    %cst_116 = arith.constant 1.280000e+02 : f32
    %369 = vector.broadcast %cst_116 : f32 to vector<8x1xf32>
    %370 = arith.divf %368, %369 : vector<8x1xf32>
    %371 = vector.broadcast %363 : vector<8x1xf32> to vector<8x128xf32>
    %372 = arith.subf %356, %371 : vector<8x128xf32>
    %cst_117 = arith.constant 9.99999974E-6 : f32
    %373 = vector.broadcast %cst_117 : f32 to vector<8x1xf32>
    %374 = arith.addf %370, %373 : vector<8x1xf32>
    %375 = math.rsqrt %374 : vector<8x1xf32>
    %376 = vector.broadcast %375 : vector<8x1xf32> to vector<8x128xf32>
    %377 = arith.mulf %372, %376 : vector<8x128xf32>
    %378 = vector.broadcast %358 : vector<1x128xf32> to vector<8x128xf32>
    %379 = arith.mulf %377, %378 : vector<8x128xf32>
    %380 = vector.broadcast %359 : vector<1x128xf32> to vector<8x128xf32>
    %381 = arith.addf %379, %380 : vector<8x128xf32>
    %382 = arith.truncf %381 : vector<8x128xf32> to vector<8x128xbf16>
    %c0_118 = arith.constant 0 : index
    %c0_119 = arith.constant 0 : index
    %383 = vector.load %arg9[%c0_118, %c0_119] : memref<128x128xbf16, #tpu.memory_space<vmem>>, vector<128x128xbf16>
    %cst_120 = arith.constant dense<0.000000e+00> : vector<8x128xf32>
    %384 = tpu.matmul %382, %383, %cst_120 {dimension_numbers = #tpu.dot_dimension_numbers<[1], [0], [0], [1], [0, 0, 1, 1], [], []>} : vector<8x128xbf16>, vector<128x128xbf16>, vector<8x128xf32> -> vector<8x128xf32>
    %385 = vector.extract_strided_slice %357 {offsets = [2, 0], sizes = [1, 128], strides = [1, 1]} : vector<8x128xf32> to vector<1x128xf32>
    %386 = vector.broadcast %385 : vector<1x128xf32> to vector<8x128xf32>
    %387 = arith.addf %384, %386 : vector<8x128xf32>
    %c0_121 = arith.constant 0 : index
    %c0_122 = arith.constant 0 : index
    %c0_123 = arith.constant 0 : index
    %388 = vector.load %arg11[%c0_121, %c0_122, %c0_123] : memref<1x8x128xf32, #tpu.memory_space<vmem>>, vector<1x8x128xf32>
    %389 = vector.shape_cast %388 : vector<1x8x128xf32> to vector<8x128xf32>
    %390 = vector.shape_cast %387 : vector<8x128xf32> to vector<1x8x128xf32>
    tpu.vector_store %arg11[%c0_121, %c0_122, %c0_123], %390 {strides = array<i32>} : memref<1x8x128xf32, #tpu.memory_space<vmem>>, vector<1x8x128xf32>,
    return
  }
  func.func @transform_0(%arg0: i32) -> (i32, i32, i32) {
    %c0_i32 = arith.constant 0 : i32
    %c0_i32_0 = arith.constant 0 : i32
    %c0_i32_1 = arith.constant 0 : i32
    return %arg0, %c0_i32, %c0_i32_0 : i32, i32, i32
  }
  func.func @transform_1(%arg0: i32) -> (i32, i32) {
    %c0_i32 = arith.constant 0 : i32
    %c0_i32_0 = arith.constant 0 : i32
    %c0_i32_1 = arith.constant 0 : i32
    return %c0_i32, %c0_i32_0 : i32, i32
  }
  func.func @transform_2(%arg0: i32) -> (i32, i32) {
    %c0_i32 = arith.constant 0 : i32
    %c0_i32_0 = arith.constant 0 : i32
    %c0_i32_1 = arith.constant 0 : i32
    return %c0_i32, %c0_i32_0 : i32, i32
  }
  func.func @transform_3(%arg0: i32) -> (i32, i32, i32) {
    %c0_i32 = arith.constant 0 : i32
    %c0_i32_0 = arith.constant 0 : i32
    %c0_i32_1 = arith.constant 0 : i32
    %c0_i32_2 = arith.constant 0 : i32
    return %c0_i32, %c0_i32_0, %c0_i32_1 : i32, i32, i32
  }
  func.func @transform_4(%arg0: i32) -> (i32, i32, i32) {
    %c0_i32 = arith.constant 0 : i32
    %c0_i32_0 = arith.constant 0 : i32
    %c0_i32_1 = arith.constant 0 : i32
    %c0_i32_2 = arith.constant 0 : i32
    return %c0_i32, %c0_i32_0, %c0_i32_1 : i32, i32, i32
  }
  func.func @transform_5(%arg0: i32) -> (i32, i32, i32) {
    %c0_i32 = arith.constant 0 : i32
    %c0_i32_0 = arith.constant 0 : i32
    %c0_i32_1 = arith.constant 0 : i32
    %c0_i32_2 = arith.constant 0 : i32
    return %c0_i32, %c0_i32_0, %c0_i32_1 : i32, i32, i32
  }
  func.func @transform_6(%arg0: i32) -> (i32, i32, i32) {
    %c0_i32 = arith.constant 0 : i32
    %c0_i32_0 = arith.constant 0 : i32
    %c0_i32_1 = arith.constant 0 : i32
    %c0_i32_2 = arith.constant 0 : i32
    return %c0_i32, %c0_i32_0, %c0_i32_1 : i32, i32, i32
  }
  func.func @transform_7(%arg0: i32) -> (i32, i32, i32) {
    %c0_i32 = arith.constant 0 : i32
    %c0_i32_0 = arith.constant 0 : i32
    %c0_i32_1 = arith.constant 0 : i32
    %c0_i32_2 = arith.constant 0 : i32
    return %c0_i32, %c0_i32_0, %c0_i32_1 : i32, i32, i32
  }
  func.func @transform_8(%arg0: i32) -> (i32, i32) {
    %c0_i32 = arith.constant 0 : i32
    %c0_i32_0 = arith.constant 0 : i32
    %c0_i32_1 = arith.constant 0 : i32
    return %c0_i32, %c0_i32_0 : i32, i32
  }
  func.func @transform_9(%arg0: i32) -> (i32, i32) {
    %c0_i32 = arith.constant 0 : i32
    %c0_i32_0 = arith.constant 0 : i32
    %c0_i32_1 = arith.constant 0 : i32
    return %c0_i32, %c0_i32_0 : i32, i32
  }
  func.func @transform_10(%arg0: i32) -> (i32, i32, i32) {
    %c0_i32 = arith.constant 0 : i32
    %c0_i32_0 = arith.constant 0 : i32
    %c0_i32_1 = arith.constant 0 : i32
    return %arg0, %c0_i32, %c0_i32_0 : i32, i32, i32
  }
}

</mosaic_0001>

<bundles_post_ra>
// kernel: tpu_custom_call.1
= control target key start
LH: loop header
LB: loop body
LE: loop exit
PB: predicated region body
PF: predicated region fallthrough
CT: control target
= control target key end

     0   :  { %s5746_s0 = inlined_call_operand.hbm [shape: bf16[2,8,768], index: 0, kind: input, shape index: {}]   ;;  %s5747_s1 = inlined_call_operand.hbm [shape: bf16[768,128], index: 1, kind: input, shape index: {}]   ;;  %s5748_s2 = inlined_call_operand.hbm [shape: f32[8,128], index: 2, kind: input, shape index: {}]   ;;  %s5749_s3 = inlined_call_operand.hbm [shape: bf16[2,128,384], index: 3, kind: input, shape index: {}]   ;;  %s5750_s4 = inlined_call_operand.hbm [shape: bf16[2,128,128], index: 4, kind: input, shape index: {}]   ;;  %s5751_s5 = inlined_call_operand.hbm [shape: bf16[2,128,256], index: 5, kind: input, shape index: {}]   ;;  %s5752_s6 = inlined_call_operand.hbm [shape: bf16[2,256,128], index: 6, kind: input, shape index: {}]   ;;  %s5753_s7 = inlined_call_operand.hbm [shape: f32[2,8,384], index: 7, kind: input, shape index: {}]   ;;  %s5754_s8 = inlined_call_operand.hbm [shape: bf16[128,128], index: 8, kind: input, shape index: {}]   ;;  %s5755_s9 = inlined_call_operand.vmem [shape: f32[8,128], index: 9, kind: input, shape index: {}]   ;;  %s5756_s10 = inlined_call_operand.hbm [shape: f32[2,8,128], index: 10, kind: output, shape index: {}]  }
   0x1   :  { %5763 = sst [smem:[#allocation24_spill]] %s5747_s1 }
   0x2   :  { %5764 = sst [smem:[#allocation25_spill]] %s5748_s2 }
   0x3   :  { %5765 = sst [smem:[#allocation26_spill]] %s5749_s3 }
   0x4   :  { %5766 = sst [smem:[#allocation27_spill]] %s5750_s4 }
   0x5   :  { %5767 = sst [smem:[#allocation28_spill]] %s5751_s5 }
   0x6   :  { %15 = vsyncpa [#allocation3], 0 }
   0x7   :  { %17 = vsyncpa [#allocation3 + $0x1], 0 }
   0x8   :  { %18 = vsyncpa [#allocation6], 0 }
   0x9   :  { %19 = vsyncpa [#allocation9], 0 }
   0xa   :  { %20 = vsyncpa [#allocation12], 0 }
   0xb   :  { %21 = vsyncpa [#allocation15], 0 }
   0xc   :  { %22 = vsyncpa [#allocation4], 0 }
   0xd   :  { %24 = vsyncpa [#allocation4 + $0x1], 0  ;;  %s5168_s13 = smov 0   ;;  %s5170_s14 = smov 0  }
   0xe   :  { %s5172_s15 = smov 0   ;;  %s5174_s16 = smov 0  }
   0xf LB: > { %s5089_s17 = smov [#allocation5]   ;;  %s5189_s19 = sadd.s32 4294967295, %s5087_s16   ;;  %s5087_s16 = sphi %s5174_s16, %s5798_s16   ;;  %s5083_s15 = sphi %s5172_s15, %s5797_s15   ;;  %s5079_s14 = sphi %s5170_s14, %s5796_s14   ;;  %s5075_s13 = sphi %s5168_s13, %s5795_s13  }
  0x10   : > { %s288_s18 = sshll.u32 %s5089_s17, 4  ;;  %p3741_p0 = scmp.ge.s32.totalorder %s5087_s16, 1  ;;  %s289_s18 = int_to_ptr.vmem [resolvable:$true] %s288_s18 }
  0x11   : > { %p5759_p1 = scmp.eq.s32.totalorder %s5189_s19, 0  ;;  %p276_p2 = scmp.lt.s32.totalorder %s5087_s16, 3 }
  0x12   : > { %s5090_s21 = smov [#allocation8]   ;;  %s5091_s24 = smov [#allocation11]  }
  0x13   : > { %p5194_p3 = pnand %p3741_p0, %p276_p2  ;;  %s312_s22 = sshll.u32 %s5090_s21, 4  ;;  %s5207_s22 = int_to_ptr.vmem [resolvable:$true] %s312_s22 }
  0x14   : > { %s5209_s25 = sshll.u32 %s5091_s24, 4  ;;  %s4782_s27 = scalar_lea.vmem %s289_s18, 6144  ;;  %s339_s25 = int_to_ptr.vmem [resolvable:$true] %s5209_s25 }
  0x15   : > { %s5768_s20 = scalar_select %p5194_p3, 1, 0 }
  0x16   : > { %p4394_p5 = pneg %p5194_p3  ;;  %p4783_p8 = scmp.ne.s32.totalorder %s289_s18, %s4782_s27 }
  0x17   : > { %p4790_p11 = scmp.lt.s32.totalorder %s289_s18, %s289_s18  ;;  %p4791_p12 = scmp.lt.s32.totalorder %s4782_s27, %s4782_s27 }
  0x18   : > { %p5203_p6 = pnand %p4394_p5, %p5759_p1 }
  0x19   : > { %p4792_p13 = por %p4791_p12, %p4790_p11 }
  0x1a   : > { %p5213_p7 = pneg %p5203_p6 }
  0x1c   : > { %p4785_p9 = pnand %p4783_p8, %p5213_p7 }
  0x1e   : > { %p4786_p10 = pneg %p4785_p9 }
  0x20   : > { %p4793_p0 = pnand %p4792_p13, %p4786_p10 }
  0x22   : > { %4796 = shalt.err (!%p4793_p0)
}
  0x23   : > { %s5757_s28 = smov 64   ;;  %s5093_s29 = smov 4  }
  0x24   : > { %s5771_s1 = sld [smem:[#allocation24_spill]]  ;;  %s4808_s12 = scalar_lea.vmem %s5207_s22, 6144 }
  0x25   : > { %p4809_p2 = scmp.ne.s32.totalorder %s5207_s22, %s4808_s12  ;;  %p4816_p9 = scmp.lt.s32.totalorder %s5207_s22, %s5207_s22 }
  0x26   : > { %p4817_p10 = scmp.lt.s32.totalorder %s4808_s12, %s4808_s12 }
  0x27   : > { %p4811_p5 = pnand %p4809_p2, %p5213_p7 }
  0x28   : > { %p4818_p11 = por %p4817_p10, %p4816_p9 }
  0x29   : > { %p4812_p8 = pneg %p4811_p5 }
  0x2a   : > { %4397 = dma.hbm_to_vmem [thread:$0]  (!%p5203_p6), %s5771_s1, 6144, %s289_s18, [#allocation6], %s5757_s28, %s5757_s28, %s5093_s29  }
  0x2b   : > { %p4819_p12 = pnand %p4818_p11, %p4812_p8 }
  0x2d   : > { %4822 = shalt.err (!%p4819_p12)
}
  0x2e   : > { %s5094_s17 = smov 192   ;;  %s5095_s21 = smov 12  }
  0x2f   : > { %s5772_s3 = sld [smem:[#allocation26_spill]]  ;;  %s4834_s27 = scalar_lea.vmem %s339_s25, 4096 }
  0x30   : > { %p4835_p13 = scmp.ne.s32.totalorder %s339_s25, %s4834_s27  ;;  %p4842_p5 = scmp.lt.s32.totalorder %s339_s25, %s339_s25 }
  0x31   : > { %p4843_p8 = scmp.lt.s32.totalorder %s4834_s27, %s4834_s27 }
  0x32   : > { %p4837_p0 = pnand %p4835_p13, %p5213_p7 }
  0x33   : > { %p4844_p9 = por %p4843_p8, %p4842_p5 }
  0x34   : > { %p4838_p2 = pneg %p4837_p0 }
  0x35   : > { %4403 = dma.hbm_to_vmem [thread:$0]  (!%p5203_p6), %s5772_s3, 6144, %s5207_s22, [#allocation9], %s5094_s17, %s5094_s17, %s5095_s21  }
  0x36   : > { %p4845_p10 = pnand %p4844_p9, %p4838_p2 }
  0x38   : > { %4848 = shalt.err (!%p4845_p10)
}
  0x39   : > { %s5096_s30 = smov 128   ;;  %s5097_s11 = smov 8  }
  0x3a   : > { %s5773_s5 = sld [smem:[#allocation28_spill]]  ;;  %s5098_s22 = smov [#allocation14]  }
  0x3b   : > { %s364_s17 = sshll.u32 %s5098_s22, 4  ;;  %s365_s17 = int_to_ptr.vmem [resolvable:$true] %s364_s17 }
  0x3c   : > { %s4860_s21 = scalar_lea.vmem %s365_s17, 768  ;;  %p4868_p0 = scmp.lt.s32.totalorder %s365_s17, %s365_s17 }
  0x3d   : > { %p4861_p11 = scmp.ne.s32.totalorder %s365_s17, %s4860_s21  ;;  %p4869_p2 = scmp.lt.s32.totalorder %s4860_s21, %s4860_s21 }
  0x3f   : > { %p4863_p12 = pnand %p4861_p11, %p5213_p7  ;;  %p4870_p5 = por %p4869_p2, %p4868_p0 }
  0x40   : > { %4409 = dma.hbm_to_vmem [thread:$0]  (!%p5203_p6), %s5773_s5, 4096, %s339_s25, [#allocation12], %s5096_s30, %s5096_s30, %s5097_s11  }
  0x41   : > { %p4864_p13 = pneg %p4863_p12 }
  0x43   : > { %p4871_p8 = pnand %p4870_p5, %p4864_p13 }
  0x45   : > { %4874 = shalt.err (!%p4871_p8)
}
  0x46   : > { %s5099_s24 = smov 384   ;;  %s5100_s18 = smov 24  }
  0x47   : > { %4415 = dma.hbm_to_vmem [thread:$0]  (!%p5203_p6), %s5753_s7, 768, %s365_s17, [#allocation15], %s5099_s24, %s5099_s24, %s5100_s18  }
  0x48   : > { %s5101_s27 = smov [#allocation7]   ;;  %s5102_s11 = smov [#allocation10]  }
  0x49   : > { %s302_s30 = sshll.u32 %s5101_s27, 4  ;;  %s325_s12 = sshll.u32 %s5102_s11, 4  ;;  %s303_s30 = int_to_ptr.vmem [resolvable:$true] %s302_s30  ;;  %s326_s12 = int_to_ptr.vmem [resolvable:$true] %s325_s12 }
  0x4a   : > { %s4886_s22 = scalar_lea.vmem %s303_s30, 128  ;;  %p4894_p12 = scmp.lt.s32.totalorder %s303_s30, %s303_s30 }
  0x4b   : > { %p4887_p9 = scmp.ne.s32.totalorder %s303_s30, %s4886_s22  ;;  %p4895_p13 = scmp.lt.s32.totalorder %s4886_s22, %s4886_s22 }
  0x4d   : > { %p4889_p10 = pnand %p4887_p9, %p5213_p7  ;;  %p4896_p0 = por %p4895_p13, %p4894_p12 }
  0x4f   : > { %p4890_p11 = pneg %p4889_p10 }
  0x51   : > { %p4897_p2 = pnand %p4896_p0, %p4890_p11 }
  0x53   : > { %4900 = shalt.err (!%p4897_p2)
}
  0x54   : > { %s5774_s2 = sld [smem:[#allocation25_spill]]  ;;  %s4912_s24 = scalar_lea.vmem %s326_s12, 2048 }
  0x55   : > { %p4913_p5 = scmp.ne.s32.totalorder %s326_s12, %s4912_s24  ;;  %p4920_p1 = scmp.lt.s32.totalorder %s326_s12, %s326_s12 }
  0x56   : > { %p4921_p9 = scmp.lt.s32.totalorder %s4912_s24, %s4912_s24 }
  0x57   : > { %p4915_p8 = pnand %p4913_p5, %p5213_p7 }
  0x58   : > { %p4922_p10 = por %p4921_p9, %p4920_p1 }
  0x59   : > { %p4916_p4 = pneg %p4915_p8 }
  0x5a   : > { %4400 = dma.hbm_to_vmem [thread:$0]  (!%p5203_p6), %s5774_s2, 128, %s303_s30, [#allocation6]  }
  0x5b   : > { %p4923_p3 = pnand %p4922_p10, %p4916_p4 }
  0x5d   : > { %4926 = shalt.err (!%p4923_p3)
}
  0x5e   : > { %s5775_s18 = smov 64   ;;  %s5776_s4 = sld [smem:[#allocation27_spill]] }
  0x5f   : > { %s5103_s27 = smov [#allocation13]   ;;  %s5104_s11 = smov [#allocation16]  }
  0x60   : > { %s351_s30 = sshll.u32 %s5103_s27, 4  ;;  %s377_s22 = sshll.u32 %s5104_s11, 4  ;;  %s352_s30 = int_to_ptr.vmem [resolvable:$true] %s351_s30  ;;  %s378_s22 = int_to_ptr.vmem [resolvable:$true] %s377_s22 }
  0x61   : > { %s4938_s21 = scalar_lea.vmem %s352_s30, 4096  ;;  %p4946_p11 = scmp.lt.s32.totalorder %s352_s30, %s352_s30 }
  0x62   : > { %p4939_p1 = scmp.ne.s32.totalorder %s352_s30, %s4938_s21  ;;  %p4947_p12 = scmp.lt.s32.totalorder %s4938_s21, %s4938_s21 }
  0x64   : > { %4406 = dma.hbm_to_vmem [thread:$0]  (!%p5203_p6), %s5776_s4, 2048, %s326_s12, [#allocation9], %s5775_s18, %s5775_s18, %s5093_s29  }
  0x65   : > { %p4941_p3 = pnand %p4939_p1, %p5213_p7  ;;  %p4948_p13 = por %p4947_p12, %p4946_p11 }
  0x67   : > { %p4942_p4 = pneg %p4941_p3 }
  0x69   : > { %p4949_p0 = pnand %p4948_p13, %p4942_p4 }
  0x6b   : > { %4952 = shalt.err (!%p4949_p0)
}
  0x6c   : > { %4412 = dma.hbm_to_vmem [thread:$0]  (!%p5203_p6), %s5752_s6, 4096, %s352_s30, [#allocation12], %s5775_s18, %s5775_s18, %s5093_s29  }
  0x6d   : > { %s4964_s24 = scalar_lea.vmem %s378_s22, 1024  ;;  %p4972_p9 = scmp.lt.s32.totalorder %s378_s22, %s378_s22 }
  0x6e   : > { %p4965_p2 = scmp.ne.s32.totalorder %s378_s22, %s4964_s24  ;;  %p4973_p10 = scmp.lt.s32.totalorder %s4964_s24, %s4964_s24 }
  0x70   : > { %p4967_p5 = pnand %p4965_p2, %p5213_p7  ;;  %p4974_p1 = por %p4973_p10, %p4972_p9 }
  0x72   : > { %p4968_p8 = pneg %p4967_p5 }
  0x74   : > { %p4975_p3 = pnand %p4974_p1, %p4968_p8 }
  0x76   : > { %4978 = shalt.err (!%p4975_p3)
}
  0x77   : > { %4418 = dma.hbm_to_vmem [thread:$0]  (!%p5203_p6), %s5754_s8, 1024, %s378_s22, [#allocation15], %s5775_s18, %s5775_s18, %s5093_s29  }
  0x78   : > { %s3740_s23 = sadd.s32 4294967294, %s5087_s16   ;;  %s5293_s26 = sadd.s32 1, %s5087_s16  }
  0x79   : > { %s34_s27 = ssub.s32 %s5087_s16, %s5293_s26  ;;  %s37_s30 = sadd.s32 1, %s5083_s15 }
  0x7a   : > { %p35_p7 = scmp.eq.s32.totalorder %s34_s27, 0  ;;  %p44_p4 = scmp.ne.s32.totalorder %s5083_s15, %s5079_s14 }
  0x7b   : > { %p45_p11 = scmp.eq.s32.totalorder %s5087_s16, 0  ;;  %p50_p12 = scmp.ne.s32.totalorder %s5079_s14, %s5075_s13 }
  0x7c   : > { %s5304_s11 = scalar_select %p35_p7, %s5083_s15, %s37_s30  }
  0x7d   : > { %p46_p13 = por %p45_p11, %p44_p4  ;;  %p5777_p0 = scmp.eq.s32.totalorder %s5189_s19, 0 }
  0x7e   : > { %p263_p6 = scmp.eq.s32.totalorder %s5189_s19, 1  ;;  %p269_p5 = scmp.eq.s32.totalorder %s3740_s23, 1 }
  0x7f   : > { %p5308_p2 = por %p5777_p0, %p50_p12  ;;  %p4435_p8 = scmp.lt.s32.totalorder %s5087_s16, 2 }
  0x80   : > { %s394_s29 = sand.u32 1, %s5083_s15   ;;  %p5315_p9 = por %p263_p6, %p44_p4 }
  0x81   : > { %s5778_s21 = scalar_select %p5308_p2, 1, 0 }
  0x82   : > { %s5779_s18 = scalar_select %p5315_p9, 1, 0 }
  0x83   : > { %p5319_p10 = por %p269_p5, %p50_p12  ;;  %s4355_s12 = smul.u32 24, %s394_s29 }
  0x84   : > { %s4356_s17 = smul.u32 384, %s5087_s16  ;;  %p5324_p1 = pnand %p4435_p8, %p46_p13 }
  0x85   : > { %s5780_s22 = scalar_select %p5319_p10, 1, 0 }
  0x86   : > { %s5331_s23 = scalar_lea.hbm %s5746_s0, %s4356_s17  ;;  %s398_s27 = scalar_lea.vmem [#allocation2], %s4355_s12 }
  0x87   : > { %s406_s30 = sshll.u32 %s398_s27, 4  ;;  %s395_s1 = scalar_lea.sflag [#allocation3], %s394_s29  ;;  %s407_s30 = int_to_ptr.vmem [resolvable:$true] %s406_s30 }
  0x88   : > { %s4979_s2 = scalar_lea.hbm %s5331_s23, 384  ;;  %p4981_p7 = pneg %p5324_p1 }
  0x89   : > { %p4980_p3 = scmp.ne.s32.totalorder %s5331_s23, %s4979_s2  ;;  %s4984_s28 = scalar_lea.hbm %s5746_s0, 768 }
  0x8a   : > { %p4985_p12 = scmp.lt.s32.totalorder %s5331_s23, %s5746_s0  ;;  %p4986_p13 = scmp.lt.s32.totalorder %s4984_s28, %s4979_s2 }
  0x8b   : > { %p4982_p4 = pnand %p4981_p7, %p4980_p3 }
  0x8c   : > { %p4987_p0 = por %p4986_p13, %p4985_p12 }
  0x8d   : > { %p4983_p11 = pneg %p4982_p4 }
  0x8f   : > { %p4988_p6 = pnand %p4987_p0, %p4983_p11 }
  0x91   : > { %4991 = shalt.err (!%p4988_p6)
}
  0x92   : > { %s4992_s12 = scalar_lea.vmem %s407_s30, 384  ;;  %s5105_s29 = smov [#allocation2]  }
  0x93   : > { %p4993_p5 = scmp.ne.s32.totalorder %s407_s30, %s4992_s12  ;;  %s4997_s27 = sshll.u32 %s5105_s29, 4  ;;  %s4998_s27 = int_to_ptr.vmem [resolvable:$false] %s4997_s27 }
  0x94   : > { %s4999_s5 = scalar_lea.vmem %s4998_s27, 768  ;;  %p5000_p3 = scmp.lt.s32.totalorder %s407_s30, %s4998_s27 }
  0x95   : > { %p4995_p8 = pnand %p4993_p5, %p4981_p7  ;;  %p5001_p4 = scmp.lt.s32.totalorder %s4999_s5, %s4992_s12 }
  0x97   : > { %p4996_p10 = pneg %p4995_p8  ;;  %p5002_p9 = por %p5001_p4, %p5000_p3 }
  0x99   : > { %p5003_p2 = pnand %p5002_p9, %p4996_p10 }
  0x9b   : > { %5006 = shalt.err (!%p5003_p2)
}
  0x9c   : > { %4422 = dma.hbm_to_vmem [thread:$0]  (!%p5324_p1), %s5331_s23, 384, %s407_s30, %s395_s1  }
  0x9d   : > { %p5782_p11 = scmp.ne.s32.totalorder %s5768_s20, 0 }
  0x9e   : > { %s5350_s2 = sand.u32 (!%p5782_p11), 1, %s5079_s14   ;;  %p5783_p7 = scmp.ne.s32.totalorder (!%p5782_p11), %s5778_s21, 0 }
  0x9f   : > { %415 = sbr.rel (%p5782_p11) target bundleno = 6559 (0x199f), region = 60  ;;  %s418_s4 = scalar_lea.sflag (!%p5782_p11), [#allocation3], %s5350_s2 }
  0xa0   : > { %s4357_s3 = smul.u32 (!%p5782_p11), 24, %s5350_s2 }
  0xa2   : > { %s5354_s28 = scalar_lea.vmem (!%p5782_p11), [#allocation2], %s4357_s3 }
  0xa4   : > { %5050 = dma.done.wait (%p5783_p7), %s418_s4, 384  }
  0xa5   : > { %5052 = vsyncadd (%p5783_p7), %s418_s4, 4294966912  ;;  %p5784_p2 = scmp.eq.s32.totalorder %s5189_s19, 0 }
  0xa7   : > { %5054 = dma.done.wait (%p5784_p2), [#allocation6], 6272   ;;  %p5785_p9 = pmov %p5784_p2 }
  0xa8   : > { %p5786_p10 = pmov %p5784_p2 }
  0xa9   : > { %5056 = vsyncadd (%p5785_p9), [#allocation6], 4294961024 }
  0xaa   : > { %5058 = dma.done.wait (%p5786_p10), [#allocation9], 8192   ;;  %p5787_p1 = pmov %p5784_p2 }
  0xac   : > { %5060 = vsyncadd (%p5787_p1), [#allocation9], 4294959104  ;;  %p5788_p12 = pmov %p5787_p1 }
  0xad   : > { %p5789_p13 = pmov %p5787_p1 }
  0xae   : > { %5062 = dma.done.wait (%p5788_p12), [#allocation12], 8192  }
  0xaf   : > { %5064 = vsyncadd (%p5789_p13), [#allocation12], 4294959104  ;;  %p5790_p0 = pmov %p5787_p1 }
  0xb1   : > { %5066 = dma.done.wait (%p5790_p0), [#allocation15], 1792   ;;  %p5791_p6 = pmov %p5790_p0 }
  0xb2   : > { %v4499_v0 = vld [vmem:[#allocation5 + $0x78] sm:$0xff]   ;;  %v4503_v4 = vld [vmem:[#allocation5 + $0x70] sm:$0xff]   ;;  %v4507_v8 = vld [vmem:[#allocation5 + $0x68] sm:$0xff]   ;;  %vm5108_vm0 = vmmov 0   ;;  %vm1305_vm1 = vcmask 261120   ;;  %s5109_s1 = smov 96  }
  0xb3   : > { %5068 = vsyncadd (%p5791_p6), [#allocation15], 4294965504  ;;  %v4500_v1 = vld [vmem:[#allocation5 + $0x38] sm:$0xff]   ;;  %3972 = vmatprep.subr.bf16.mxu0 %v4499_v0  ;;  %v4504_v5 = vld [vmem:[#allocation5 + $0x30] sm:$0xff]   ;;  %s5110_s5 = smov 32   ;;  %vm1369_vm2 = vcmask 1043456  }
  0xb4   : > { %v4501_v2 = vld [vmem:[#allocation5 + $0xf8] sm:$0xff]   ;;  %3973 = vmatpush3.bf16.msra.mxu0 %v4500_v1  ;;  %v4505_v6 = vld [vmem:[#allocation5 + $0xf0] sm:$0xff]   ;;  %v4508_v9 = vld [vmem:[#allocation5 + $0x28] sm:$0xff]   ;;  %vm1353_vm4 = vcmask 64512   ;;  %s5111_s20 = smov 64   ;;  %vm1762_vm5 = vcmask 523264  }
  0xb5   : > { %v4502_v3 = vld [vmem:[#allocation5 + $0xb8] sm:$0xff]   ;;  %3994 = vmatprep.subr.bf16.mxu1 %v4501_v2  ;;  %3974 = vmatprep.subr.bf16.mxu0 %v4503_v4  ;;  %v4506_v7 = vld [vmem:[#allocation5 + $0xb0] sm:$0xff]   ;;  %v4509_v10 = vld [vmem:[#allocation5 + $0xe8] sm:$0xff]   ;;  %vm1764_vm6 = vcmask 785408   ;;  %s3761_s23 = sshll.u32 %s5350_s2, 3  ;;  %s3969_s30 = sshll.u32 %s5189_s19, 7 }
  0xb6   : > { %3995 = vmatpush3.bf16.msra.mxu1 %v4502_v3  ;;  %v4510_v11 = vld [vmem:[#allocation5 + $0xa8] sm:$0xff]   ;;  %v4511_v12 = vld [vmem:[#allocation5 + $0x60] sm:$0xff]   ;;  %v4515_v16 = vld [vmem:[#allocation5 + $0x58] sm:$0xff]   ;;  %s489_s25 = scalar_lea.vmem [#allocation17], %s3761_s23  ;;  %s5703_s27 = scalar_lea.hbm %s5756_s10, %s3969_s30 }
  0xb7   : > { %3996 = vmatprep.subr.bf16.mxu1 %v4505_v6  ;;  %v4512_v13 = vld [vmem:[#allocation5 + $0x20] sm:$0xff]   ;;  %v4516_v17 = vld [vmem:[#allocation5 + $0x18] sm:$0xff]   ;;  %v4519_v20 = vld [vmem:[#allocation5 + $0x50] sm:$0xff]   ;;  %s3594_s17 = sshll.u32 %s489_s25, 4  ;;  %s3581_s3 = scalar_lea.sflag [#allocation4], %s5350_s2  ;;  %s5705_s17 = int_to_ptr.vmem [resolvable:$true] %s3594_s17 }
  0xb8   : > { %3975 = vmatpush3.bf16.msra.mxu0 %v4504_v5  ;;  %v4513_v14 = vld [vmem:[#allocation5 + $0xe0] sm:$0xff]   ;;  %v4517_v18 = vld [vmem:[#allocation5 + $0xd8] sm:$0xff]   ;;  %v4520_v21 = vld [vmem:[#allocation5 + $0x10] sm:$0xff]   ;;  %s5007_s4 = scalar_lea.vmem %s5705_s17, 128  ;;  %p5792_p8 = scmp.ne.s32.totalorder %s5779_s18, 0 }
  0xb9   : > { %3976 = vmatprep.subr.bf16.mxu0 %v4507_v8  ;;  %v4514_v15 = vld [vmem:[#allocation5 + $0xa0] sm:$0xff]   ;;  %v4518_v19 = vld [vmem:[#allocation5 + $0x98] sm:$0xff]   ;;  %v4521_v22 = vld [vmem:[#allocation5 + $0xd0] sm:$0xff]   ;;  %p5008_p5 = scmp.ne.s32.totalorder %s5705_s17, %s5007_s4  ;;  %s5112_s19 = smov [#allocation17]  }
  0xba   : > { %3997 = vmatpush3.bf16.msra.mxu1 %v4506_v7  ;;  %v4522_v23 = vld [vmem:[#allocation5 + $0x90] sm:$0xff]   ;;  %v4523_v24 = vld [vmem:[#allocation5 + $0x48] sm:$0xff]   ;;  %v4527_v28 = vld [vmem:[#allocation5 + $0x40] sm:$0xff]  }
  0xbb   : > { %3998 = vmatprep.subr.bf16.mxu1 %v4509_v10  ;;  %v4524_v25 = vld [vmem:[#allocation5 + $0x8] sm:$0xff]   ;;  %v4528_v29 = vld [vmem:[#allocation5] sm:$0xff]   ;;  %v4533_v35 = vld [vmem:[#allocation5 + $0x178] sm:$0xff]   ;;  %p5009_p3 = pnand %p5008_p5, %p5792_p8 }
  0xbc   : > { %3977 = vmatpush3.bf16.msra.mxu0 %v4508_v9  ;;  %v4525_v26 = vld [vmem:[#allocation5 + $0xc8] sm:$0xff]   ;;  %v4529_v30 = vld [vmem:[#allocation5 + $0xc0] sm:$0xff]   ;;  %v492_v36 = vld [vmem:[%s5354_s28 + $0x8] sm:$0xff] }
  0xbd   : > { %3978 = vmatprep.subr.bf16.mxu0 %v4511_v12  ;;  %v4526_v27 = vld [vmem:[#allocation5 + $0x88] sm:$0xff]   ;;  %v4532_v34 = vld [vmem:[#allocation5 + $0x80] sm:$0xff]   ;;  %v3764_v37 = vcombine.low %v492_v36, %v492_v36  ;;  %v3765_v38 = vcombine.high %v492_v36, %v492_v36  ;;  %v4536_v39 = vld [vmem:[#allocation5 + $0x138] sm:$0xff]   ;;  %p5010_p4 = pneg %p5009_p3 }
  0xbe   : > { %3999 = vmatpush3.bf16.msra.mxu1 %v4510_v11  ;;  %v491_v31 = vld [vmem:[%s5354_s28] sm:$0xff]  ;;  %v4541_v44 = vld [vmem:[#allocation5 + $0x160] sm:$0xff]   ;;  %v4543_v46 = vld [vmem:[#allocation5 + $0x158] sm:$0xff]  }
  0xbf   : > { %4000 = vmatprep.subr.bf16.mxu1 %v4513_v14  ;;  %v3762_v32 = vcombine.low %v491_v31, %v491_v31  ;;  %v3763_v33 = vcombine.high %v491_v31, %v491_v31  ;;  %v4537_v40 = vld [vmem:[#allocation5 + $0x170] sm:$0xff]   ;;  %972 = vmatprep.mubr.bf16.mxu1 %v3765_v38  ;;  %v4539_v42 = vld [vmem:[#allocation5 + $0x168] sm:$0xff]   ;;  %v4542_v45 = vld [vmem:[#allocation5 + $0x120] sm:$0xff]   ;;  %v5106_v14 = vmov 0.0  }
  0xc0   : > { %3979 = vmatpush3.bf16.msra.mxu0 %v4512_v13  ;;  %v4538_v41 = vld [vmem:[#allocation5 + $0x130] sm:$0xff]   ;;  %v4540_v43 = vld [vmem:[#allocation5 + $0x128] sm:$0xff]   ;;  %v4544_v47 = vld [vmem:[#allocation5 + $0x118] sm:$0xff]  }
  0xc1   : > { %3980 = vmatprep.subr.bf16.mxu0 %v4515_v16  ;;  %932 = vmatprep.mubr.bf16.mxu0 %v3763_v33  ;;  %v4545_v48 = vld [vmem:[#allocation5 + $0x150] sm:$0xff]   ;;  %v493_v49 = vld [vmem:[%s5354_s28 + $0x10] sm:$0xff]  ;;  %v4547_v52 = vld [vmem:[#allocation5 + $0x148] sm:$0xff]   ;;  %v5107_v33 = vmov 0   ;;  %s5011_s28 = sshll.u32 %s5112_s19, 4  ;;  %s5012_s28 = int_to_ptr.vmem [resolvable:$false] %s5011_s28 }
  0xc2   : > { %4001 = vmatpush3.bf16.msra.mxu1 %v4514_v15  ;;  %v3767_v50 = vcombine.high %v493_v49, %v493_v49  ;;  %v4546_v51 = vld [vmem:[#allocation5 + $0x110] sm:$0xff]   ;;  %v4548_v53 = vld [vmem:[#allocation5 + $0x108] sm:$0xff]   ;;  %v4549_v54 = vld [vmem:[#allocation5 + $0x140] sm:$0xff]   ;;  %v3766_v56 = vcombine.low %v493_v49, %v493_v49  ;;  %p5014_p11 = scmp.lt.s32.totalorder %s5705_s17, %s5012_s28 }
  0xc3   : > { %4002 = vmatprep.subr.bf16.mxu1 %v4517_v18  ;;  %v4550_v55 = vld [vmem:[#allocation5 + $0x100] sm:$0xff]   ;;  %v4553_v12 = vld [vmem:[#allocation8 + $0xa8] ss:$12 sps:$4 sm:$0xff]   ;;  %v4580_v38 = vld [vmem:[#allocation8 + $0x20] ss:$12 sps:$4 sm:$0xff]  }
  0xc4   : > { %3981 = vmatpush3.bf16.msra.mxu0 %v4516_v17  ;;  %v590_v2 = vld [vmem:[#allocation7] sm:$0xff]  ;;  %v4559_v16 = vld [vmem:[#allocation8 + $0x94] ss:$12 sps:$4 sm:$0xff]  }
  0xc5   : > { %3982 = vmatprep.subr.bf16.mxu0 %v4519_v20  ;;  %v4555_v13 = vld [vmem:[#allocation8 + $0xac] ss:$12 sps:$4 sm:$0xff]   ;;  %v4556_v15 = vld [vmem:[#allocation8 + $0xb0] ss:$12 sps:$4 sm:$0xff]  }
  0xc6   : > { %4003 = vmatpush3.bf16.msra.mxu1 %v4518_v19  ;;  %v4557_v17 = vld [vmem:[#allocation8 + $0x90] ss:$12 sps:$4 sm:$0xff]   ;;  %v4560_v18 = vld [vmem:[#allocation8 + $0x98] ss:$12 sps:$4 sm:$0xff]  }
  0xc7   : > { %4004 = vmatprep.subr.bf16.mxu1 %v4521_v22  ;;  %v4572_v31 = vld [vmem:[#allocation8 + $0x50] ss:$12 sps:$4 sm:$0xff]  }
  0xc8   : > { %3983 = vmatpush3.bf16.msra.mxu0 %v4520_v21  ;;  %v4579_v36 = vld [vmem:[#allocation8 + $0x1c] ss:$12 sps:$4 sm:$0xff]  }
  0xc9   : > { %3984 = vmatprep.subr.bf16.mxu0 %v4523_v24  ;;  %v4561_v24 = vld [vmem:[#allocation8 + $0x78] ss:$12 sps:$4 sm:$0xff]  }
  0xca   : > { %4005 = vmatpush3.bf16.msra.mxu1 %v4522_v23  ;;  %v4563_v23 = vld [vmem:[#allocation8 + $0x7c] ss:$12 sps:$4 sm:$0xff]  }
  0xcb   : > { %4006 = vmatprep.subr.bf16.mxu1 %v4525_v26  ;;  %v4565_v26 = vld [vmem:[#allocation8 + $0x60] ss:$12 sps:$4 sm:$0xff]  }
  0xcc   : > { %3985 = vmatpush3.bf16.msra.mxu0 %v4524_v25  ;;  %v4564_v25 = vld [vmem:[#allocation8 + $0x80] ss:$12 sps:$4 sm:$0xff]  }
  0xcd   : > { %3986 = vmatprep.subr.bf16.mxu0 %v4527_v28  ;;  %v4568_v28 = vld [vmem:[#allocation8 + $0x68] ss:$12 sps:$4 sm:$0xff]  }
  0xce   : > { %4007 = vmatpush3.bf16.msra.mxu1 %v4526_v27  ;;  %v4567_v27 = vld [vmem:[#allocation8 + $0x64] ss:$12 sps:$4 sm:$0xff]  }
  0xcf   : > { %4008 = vmatprep.subr.bf16.mxu1 %v4529_v30  ;;  %v4569_v30 = vld [vmem:[#allocation8 + $0x48] ss:$12 sps:$4 sm:$0xff]  }
  0xd0   : > { %3987 = vmatpush3.bf16.msra.mxu0 %v4528_v29  ;;  %v4571_v29 = vld [vmem:[#allocation8 + $0x4c] ss:$12 sps:$4 sm:$0xff]  }
  0xd1   : > { %4016 = vmatprep.subr.bf16.mxu0 %v4533_v35  ;;  %v4576_v35 = vld [vmem:[#allocation8 + $0x38] ss:$12 sps:$4 sm:$0xff]  }
  0xd2   : > { %4009 = vmatpush3.bf16.msra.mxu1 %v4532_v34  ;;  %v4573_v34 = vld [vmem:[#allocation8 + $0x30] ss:$12 sps:$4 sm:$0xff]  }
  0xd3   : > { %933 = vmatmul.mubr.bf16.vlgmr.msra.gmra.mxu0 %v3762_v32  ;;  %1221 = vmatprep.subr.bf16.mxu1 %v4555_v13  ;;  %v4575_v32 = vld [vmem:[#allocation8 + $0x34] ss:$12 sps:$4 sm:$0xff]  }
  0xd4   : > { %4017 = vmatpush3.bf16.msra.mxu0 %v4536_v39  ;;  %1012 = vmatprep.mubr.bf16.mxu0 %v3767_v50  ;;  %v4583_v39 = vld [vmem:[#allocation8 + $0x4] ss:$12 sps:$4 sm:$0xff]  }
  0xd5   : > { %973 = vmatmul.mubr.bf16.vlgmr.msra.gmra.mxu1 %v3764_v37  ;;  %4018 = vmatprep.subr.bf16.mxu0 %v4537_v40  ;;  %v4577_v37 = vld [vmem:[#allocation8 + $0x18] ss:$12 sps:$4 sm:$0xff]   ;;  %v4581_v40 = vld [vmem:[#allocation8] ss:$12 sps:$4 sm:$0xff]  }
  0xd6   : > { %1222 = vmatpush1.bf16.msra.mxu1 %v4553_v12  ;;  %1253 = vmatprep.mubr.bf16.mxu1 %v5107_v33 }
  0xd7   : > { %1223 = vmatprep.subr.bf16.mxu1 %v4559_v16 }
  0xd8   : > { %4019 = vmatpush3.bf16.msra.mxu0 %v4538_v41  ;;  %v4584_v41 = vld [vmem:[#allocation8 + $0x8] ss:$12 sps:$4 sm:$0xff]  }
  0xd9   : > { %4020 = vmatprep.subr.bf16.mxu0 %v4539_v42 }
  0xda   : > { %1224 = vmatpush1.bf16.msra.mxu1 %v4557_v17 }
  0xdb   : > { %1225 = vmatprep.subr.bf16.mxu1 %v4563_v23 }
  0xdc   : > { %4021 = vmatpush3.bf16.msra.mxu0 %v4540_v43 }
  0xdd   : > { %4022 = vmatprep.subr.bf16.mxu0 %v4541_v44 }
  0xde   : > { %1226 = vmatpush1.bf16.msra.mxu1 %v4561_v24 }
  0xdf   : > { %1227 = vmatprep.subr.bf16.mxu1 %v4567_v27 }
  0xe0   : > { %4023 = vmatpush3.bf16.msra.mxu0 %v4542_v45  ;;  %v1020_v45 = vlaneseq }
  0xe1   : > { %4024 = vmatprep.subr.bf16.mxu0 %v4543_v46 }
  0xe2   : > { %1228 = vmatpush1.bf16.msra.mxu1 %v4565_v26  ;;  %v5396_v46 = vshrl.u32 %v1020_v45, 7  ;;  %v5436_v17 = vand.u32 127, %v1020_v45 }
  0xe3   : > { %1229 = vmatprep.subr.bf16.mxu1 %v4571_v29 }
  0xe4   : > { %4025 = vmatpush3.bf16.msra.mxu0 %v4544_v47  ;;  %v5399_v47 = vsub.s32 0, %v5396_v46  ;;  %v5404_v49 = vsub.s32 1, %v5396_v46  ;;  %vm1022_vm3 = vcmp.le.s32.totalorder %v5436_v17, 4 }
  0xe5   : > { %4026 = vmatprep.subr.bf16.mxu0 %v4545_v48  ;;  %v5401_v48 = vld [vmem:[#allocation14] sm:$0xff] }
  0xe6   : > { %1230 = vmatpush1.bf16.msra.mxu1 %v4569_v30  ;;  %v1041_v50 = vrot.slane %v5401_v48, %v5399_v47 }
  0xe7   : > { %1231 = vmatprep.subr.bf16.mxu1 %v4575_v32 }
  0xe8   : > { %4027 = vmatpush3.bf16.msra.mxu0 %v4546_v51 }
  0xe9   : > { %4028 = vmatprep.subr.bf16.mxu0 %v4547_v52 }
  0xea   : > { %1232 = vmatpush1.bf16.msra.mxu1 %v4573_v34 }
  0xeb   : > { %1233 = vmatprep.subr.bf16.mxu1 %v4579_v36 }
  0xec   : > { %4029 = vmatpush3.bf16.msra.mxu0 %v4548_v53  ;;  %v1046_v53 = vrot.slane %v5401_v48, %v5404_v49 }
  0xed   : > { %4030 = vmatprep.subr.bf16.mxu0 %v4549_v54 }
  0xee   : > { %1234 = vmatpush1.bf16.msra.mxu1 %v4577_v37 }
  0xef   : > { %1235 = vmatprep.subr.bf16.mxu1 %v4583_v39 }
  0xf0   : > { %4031 = vmatpush3.bf16.msra.mxu0 %v4550_v55 }
  0xf1   : > { %4159 = vmatprep.subr.bf16.mxu0 %v5106_v14 }
  0xf2   : > { %1236 = vmatpush1.bf16.msra.mxu1 %v4581_v40 }
  0xf3   : > { %1013 = vmatmul.mubr.bf16.vlgmr.msra.gmra.mxu0 %v3766_v56  ;;  %4179 = vmatprep.subr.bf16.mxu1 %v5106_v14 }
  0xf4   : > { %4160 = vmatpush3.bf16.msra.mxu0 %v4556_v15  ;;  %4175 = vmatprep.mubr.msk.bf16.mxu0 %vm5108_vm0, %v5106_v14 }
  0xf5   : > { %4161 = vmatprep.subr.bf16.mxu0 %v5106_v14 }
  0xf8   : > { %4162 = vmatpush3.bf16.msra.mxu0 %v4560_v18 }
  0xf9   : > { %4163 = vmatprep.subr.bf16.mxu0 %v5106_v14 }
  0xfc   : > { %4164 = vmatpush3.bf16.msra.mxu0 %v4564_v25 }
  0xfd   : > { %4165 = vmatprep.subr.bf16.mxu0 %v5106_v14 }
 0x100   : > { %4166 = vmatpush3.bf16.msra.mxu0 %v4568_v28 }
 0x101   : > { %4167 = vmatprep.subr.bf16.mxu0 %v5106_v14 }
 0x104   : > { %4168 = vmatpush3.bf16.msra.mxu0 %v4572_v31 }
 0x105   : > { %4169 = vmatprep.subr.bf16.mxu0 %v5106_v14 }
 0x108   : > { %4170 = vmatpush3.bf16.msra.mxu0 %v4576_v35 }
 0x109   : > { %4171 = vmatprep.subr.bf16.mxu0 %v5106_v14 }
 0x10c   : > { %4172 = vmatpush3.bf16.msra.mxu0 %v4580_v38 }
 0x10d   : > { %4173 = vmatprep.subr.bf16.mxu0 %v5106_v14 }
 0x110   : > { %4174 = vmatpush3.bf16.msra.mxu0 %v4584_v41 }
 0x111   : > { %4203 = vmatprep.subr.bf16.mxu0 %v5106_v14 }
 0x193   : > { %v3988_v57 = vpop.f32.mrf.mxu0 }
 0x195   : > { %v3989_v58 = vpop.f32.mrf.mxu0  ;;  %v4010_v59 = vpop.f32.mrf.mxu1 }
 0x196   : > { %v3990_v1 = vadd.f32 %v3989_v58, %v3988_v57  ;;  %v5414_v57 = vld [vmem:[#allocation14 + $0x8] sm:$0xff]  ;;  %v5417_v58 = vsub.s32 2, %v5396_v46 }
 0x197   : > { %v3991_v60 = vpop.f32.mrf.mxu0  ;;  %v4011_v61 = vpop.f32.mrf.mxu1 }
 0x198   : > { %v935_v3 = vadd.f32 %v3990_v1, %v590_v2  ;;  %v4012_v4 = vadd.f32 %v4011_v61, %v4010_v59  ;;  %v1088_v59 = vrot.slane %v5414_v57, %v5417_v58  ;;  %v1025_v61 = vld [vmem:[#allocation14 + $0x10] sm:$0xff] }
 0x199   : > { %v3992_v62 = vpop.f32.mrf.mxu0  ;;  %v4013_v63 = vpop.f32.mrf.mxu1  ;;  %v1092_v1 = vrot.slane %v1025_v61, %v5417_v58 }
 0x19a   : > { %v975_v7 = vadd.f32 %v4012_v4, %v935_v3 }
 0x19b   : > { %v4014_v0 = vpop.f32.mrf.mxu1 }
 0x1b3   : > { %v4032_v5 = vpop.f32.mrf.mxu0 }
 0x1b5   : > { %v4033_v6 = vpop.f32.mrf.mxu0 }
 0x1b6   : > { %v4034_v8 = vadd.f32 %v4033_v6, %v4032_v5  ;;  %v1084_v5 = vrot.slane %v5401_v48, %v5417_v58 }
 0x1b7   : > { %v4035_v9 = vpop.f32.mrf.mxu0 }
 0x1b8   : > { %v5379_v10 = vadd.f32 %v4034_v8, %v975_v7 }
 0x1b9   : > { %v4036_v11 = vpop.f32.mrf.mxu0 }
 0x1ba   : > { %1026 = vadd.xlane.f32.xlu0 %v5379_v10 }
 0x243   : > { %v1027_v19 = vpop.xlane.xlu0 %1026 }
 0x244   : > { %v1029_v20 = vmul.f32 0.0078125, %v1027_v19 }
 0x246   : > { %v1030_v21 = vsub.f32 %v5379_v10, %v1029_v20 }
 0x248   : > { %v1031_v22 = vmul.f32 %v1030_v21, %v1030_v21 }
 0x24a   : > { %1032 = vadd.xlane.f32.xlu0 %v1031_v22 }
 0x2d3   : > { %v1033_v42 = vpop.xlane.xlu0 %1032 }
 0x2d4   : > { %v1034_v43 = vmul.f32 0.0078125, %v1033_v42 }
 0x2d6   : > { %v1035_v44 = vadd.f32 1e-05, %v1034_v43 }
 0x2d8   : > { %4721 = vrsqrt.f32 %v1035_v44 }
 0x2e5   : > { %v4722_v51 = vpop.eup %4721 }
 0x2e6   : > { %v1037_v52 = vmul.f32 %v4722_v51, %v1030_v21 }
 0x2e8   : > { %v1042_v54 = vmul.f32 %v1041_v50, %v1037_v52 }
 0x2ea   : > { %v1047_v55 = vadd.f32 %v1046_v53, %v1042_v54 }
 0x2ec   : > { %v1048_v56 = vpack.c.bf16 %v1047_v55, %v1047_v55 }
 0x2ee   : > { %1254 = vmatmul.mubr.bf16.vlgmr.msra.gmra.mxu1 %v1048_v56  ;;  %4176 = vmatmul.mubr.bf16.vlgmr.msra.gmra.mxu0 %v1048_v56 }
 0x2ef   : > { %4181 = vmatprep.mubr.msk.bf16.mxu1 %vm5108_vm0, %v5106_v14  ;;  %4205 = vmatprep.mubr.msk.bf16.mxu0 %vm5108_vm0, %v5106_v14 }
 0x3ae   : > { %v1255_v60 = vpop.f32.mrf.mxu1  ;;  %v1296_v62 = vpop.f32.mrf.mxu0 }
 0x3af   : > { %v1297_v9 = vadd.f32 %v1296_v62, %v1092_v1  ;;  %v1256_v12 = vadd.f32 %v1255_v60, %v1084_v5 }
 0x3b0   : > { %v1257_v63 = vpop.f32.mrf.mxu1  ;;  %v4177_v0 = vpop.f32.mrf.mxu0 }
 0x3b1   : > { %v1258_v2 = vadd.f32 %v1257_v63, %v1088_v59  ;;  %v5427_v13 = vpack.c.bf16 %v1297_v9, %v1297_v9  ;;  %v1302_v15 = vpack.c.bf16 %v1256_v12, %v1256_v12 }
 0x3b2   : > { %v1259_v3 = vpop.f32.mrf.mxu1  ;;  %v1299_v4 = vpop.f32.mrf.mxu0 }
 0x3b3   : > { %v1303_v6 = vpack.c.bf16 %v1258_v2, %v1258_v2  ;;  %v1371_v16 = vsel %vm1369_vm2, %v5427_v13, 0 }
 0x3b4   : > { %v1260_v7 = vpop.f32.mrf.mxu1  ;;  %v4178_v8 = vpop.f32.mrf.mxu0 }
 0x3b5   : > { %1417 = vrot.lane.b32.xlu0 %v1303_v6, %s5109_s1  ;;  %v1310_v11 = vsel %vm1305_vm1, %v1303_v6, 0 }
 0x3b6   : > { %4180 = vmatpush3.bf16.xpose.msra.mxu1 %v1310_v11 }
 0x3b7   : > { %4185 = vmatprep.subr.bf16.mxu1 %v5106_v14 }
 0x3b9   : > { %1640 = vrot.lane.b32.xlu0 %v1303_v6, %s5110_s5 }
 0x3bd   : > { %4182 = vmatmul.mubr.msk.bf16.vlgmr.msra.gmra.mxu1 %vm1305_vm1, %v1302_v15 }
 0x3be   : > { %4186 = vmatpush3.bf16.msra.mxu1 %v1371_v16  ;;  %4187 = vmatprep.mubr.msk.bf16.mxu1 %vm5108_vm0, %v5106_v14 }
 0x3bf   : > { %4191 = vmatprep.subr.bf16.mxu1 %v5106_v14 }
 0x427   : > { %v1418_v31 = vpop.permute.xlu0 %1417 }
 0x428   : > { %v1423_v41 = vsel %vm1305_vm1, %v1418_v31, 0 }
 0x42b   : > { %v1641_v36 = vpop.permute.xlu0 %1640 }
 0x42c   : > { %v1646_v39 = vsel %vm1305_vm1, %v1641_v36, 0 }
 0x47d   : > { %v1346_v18 = vpop.f32.mrf.mxu1 }
 0x47e   : > { %v1352_v19 = vsel %vm1022_vm3, %v1346_v18, -1e+30 }
 0x47f   : > { %v4183_v20 = vpop.f32.mrf.mxu1  ;;  %v1354_v21 = vsel %vm1353_vm4, %v1352_v19, -inf }
 0x480   : > { %1355 = vmax.xlane.f32.xlu1 %v1354_v21 }
 0x481   : > { %v1349_v22 = vpop.f32.mrf.mxu1 }
 0x483   : > { %v4184_v23 = vpop.f32.mrf.mxu1 }
 0x509   : > { %v1356_v24 = vpop.xlane.xlu1 %1355 }
 0x50a   : > { %v1357_v25 = vsub.f32 %v1352_v19, %v1356_v24 }
 0x50c   : > { %v1358_v26 = vmul.f32 1.442695, %v1357_v25 }
 0x50e   : > { %4723 = vpow2.f32 %v1358_v26 }
 0x51b   : > { %v4724_v27 = vpop.eup %4723 }
 0x51c   : > { %v1360_v28 = vsel %vm1353_vm4, %v4724_v27, 0.0 }
 0x51d   : > { %1361 = vadd.xlane.f32.xlu1 %v1360_v28 }
 0x52e   : > { %1414 = vrot.lane.b32.xlu1 %v1302_v15, %s5109_s1 }
 0x532   : > { %1529 = vrot.lane.b32.xlu1 %v1303_v6, %s5111_s20 }
 0x536   : > { %1527 = vrot.lane.b32.xlu1 %v1302_v15, %s5111_s20 }
 0x53a   : > { %1638 = vrot.lane.b32.xlu1 %v1302_v15, %s5110_s5 }
 0x5a6   : > { %v1362_v29 = vpop.xlane.xlu1 %1361 }
 0x5a7   : > { %4725 = vrcp.f32 %v1362_v29 }
 0x5aa   : > { %v1415_v30 = vpop.permute.xlu1 %1414 }
 0x5ae   : > { %v1530_v32 = vpop.permute.xlu1 %1529 }
 0x5af   : > { %v1535_v34 = vsel %vm1305_vm1, %v1530_v32, 0 }
 0x5b0   : > { %4204 = vmatpush3.bf16.xpose.msra.mxu0 %v1535_v34 }
 0x5b1   : > { %4215 = vmatprep.subr.bf16.mxu0 %v5106_v14 }
 0x5b2   : > { %v1528_v38 = vpop.permute.xlu1 %1527 }
 0x5b4   : > { %v4726_v35 = vpop.eup %4725 }
 0x5b5   : > { %v1364_v37 = vmul.f32 %v4726_v35, %v4724_v27 }
 0x5b6   : > { %v1639_v42 = vpop.permute.xlu1 %1638 }
 0x5b7   : > { %4206 = vmatmul.mubr.msk.bf16.vlgmr.msra.gmra.mxu0 %vm1305_vm1, %v1528_v38  ;;  %v1365_v40 = vpack.c.bf16 %v1364_v37, %v1364_v37 }
 0x5b8   : > { %4216 = vmatpush3.bf16.xpose.msra.mxu0 %v1646_v39  ;;  %4217 = vmatprep.mubr.msk.bf16.mxu0 %vm5108_vm0, %v5106_v14 }
 0x5b9   : > { %4188 = vmatmul.mubr.msk.bf16.vlgmr.msra.gmra.mxu1 %vm1353_vm4, %v1365_v40  ;;  %4227 = vmatprep.subr.bf16.mxu0 %v5106_v14 }
 0x5ba   : > { %4192 = vmatpush3.bf16.xpose.msra.mxu1 %v1423_v41  ;;  %4193 = vmatprep.mubr.msk.bf16.mxu1 %vm5108_vm0, %v5106_v14 }
 0x5bb   : > { %4197 = vmatprep.subr.bf16.mxu1 %v5106_v14 }
 0x5bf   : > { %4218 = vmatmul.mubr.msk.bf16.vlgmr.msra.gmra.mxu0 %vm1305_vm1, %v1639_v42 }
 0x5c0   : > { %4243 = vmatprep.mubr.msk.bf16.mxu0 %vm5108_vm0, %v5106_v14 }
 0x5c1   : > { %4194 = vmatmul.mubr.msk.bf16.vlgmr.msra.gmra.mxu1 %vm1305_vm1, %v1415_v30 }
 0x5c2   : > { %4199 = vmatprep.mubr.msk.bf16.mxu1 %vm5108_vm0, %v5106_v14 }
 0x677   : > { %v1571_v43 = vpop.f32.mrf.mxu0 }
 0x678   : > { %v1577_v44 = vsel %vm1022_vm3, %v1571_v43, -1e+30 }
 0x679   : > { %v5467_v45 = vpop.f32.mrf.mxu1  ;;  %v4207_v50 = vpop.f32.mrf.mxu0  ;;  %v1578_v51 = vsel %vm1353_vm4, %v1577_v44, -inf }
 0x67a   : > { %1579 = vmax.xlane.f32.xlu1 %v1578_v51  ;;  %v4586_v50 = vld [vmem:[#allocation10 + $0x30] sm:$0xff]   ;;  %v4587_v51 = vld [vmem:[#allocation10 + $0x28] sm:$0xff]  }
 0x67b   : > { %v4189_v52 = vpop.f32.mrf.mxu1  ;;  %v1574_v53 = vpop.f32.mrf.mxu0 }
 0x67c   : > { %v4588_v52 = vld [vmem:[#allocation10 + $0x20] sm:$0xff]   ;;  %v4589_v53 = vld [vmem:[#allocation10 + $0x18] sm:$0xff]  }
 0x67d   : > { %v1410_v54 = vpop.f32.mrf.mxu1  ;;  %v4208_v55 = vpop.f32.mrf.mxu0 }
 0x67e   : > { %v4590_v54 = vld [vmem:[#allocation10 + $0x10] sm:$0xff]   ;;  %v4591_v55 = vld [vmem:[#allocation10 + $0x8] sm:$0xff]  }
 0x67f   : > { %v4190_v56 = vpop.f32.mrf.mxu1  ;;  %v1682_v59 = vpop.f32.mrf.mxu0 }
 0x680   : > { %v1688_v2 = vsel %vm1022_vm3, %v1682_v59, -1e+30 }
 0x681   : > { %v1459_v60 = vpop.f32.mrf.mxu1  ;;  %v4219_v61 = vpop.f32.mrf.mxu0  ;;  %v1689_v6 = vsel %vm1353_vm4, %v1688_v2, -inf }
 0x682   : > { %v1465_v62 = vsel %vm1022_vm3, %v1459_v60, -1e+30  ;;  %v4592_v60 = vld [vmem:[#allocation10] sm:$0xff]  }
 0x683   : > { %v4195_v63 = vpop.f32.mrf.mxu1  ;;  %v1685_v0 = vpop.f32.mrf.mxu0  ;;  %v1466_v1 = vsel %vm1353_vm4, %v1465_v62, -inf }
 0x684   : > { %1467 = vmax.xlane.f32.xlu0 %v1466_v1 }
 0x685   : > { %v1462_v3 = vpop.f32.mrf.mxu1  ;;  %v4220_v4 = vpop.f32.mrf.mxu0 }
 0x687   : > { %v4196_v5 = vpop.f32.mrf.mxu1 }
 0x688   : > { %1690 = vmax.xlane.f32.xlu0 %v1689_v6 }
 0x703   : > { %v1580_v7 = vpop.xlane.xlu1 %1579 }
 0x704   : > { %v1581_v8 = vsub.f32 %v1577_v44, %v1580_v7  ;;  %v4585_v44 = vld [vmem:[#allocation10 + $0x38] sm:$0xff]  }
 0x705   : > { %4228 = vmatpush3.bf16.msra.mxu0 %v4585_v44 }
 0x706   : > { %v1582_v9 = vmul.f32 1.442695, %v1581_v8  ;;  %4229 = vmatprep.subr.bf16.mxu0 %v5106_v14 }
 0x708   : > { %4727 = vpow2.f32 %v1582_v9 }
 0x709   : > { %4230 = vmatpush3.bf16.msra.mxu0 %v4586_v50 }
 0x70a   : > { %4231 = vmatprep.subr.bf16.mxu0 %v5106_v14 }
 0x70d   : > { %v1468_v11 = vpop.xlane.xlu0 %1467  ;;  %4232 = vmatpush3.bf16.msra.mxu0 %v4587_v51 }
 0x70e   : > { %v1469_v12 = vsub.f32 %v1465_v62, %v1468_v11  ;;  %4233 = vmatprep.subr.bf16.mxu0 %v5106_v14 }
 0x710   : > { %v1470_v15 = vmul.f32 1.442695, %v1469_v12 }
 0x711   : > { %v1691_v16 = vpop.xlane.xlu0 %1690  ;;  %4234 = vmatpush3.bf16.msra.mxu0 %v4588_v52  ;;  %v1889_v52 = vsub.s32 4, %v5396_v46 }
 0x712   : > { %4729 = vpow2.f32 %v1470_v15  ;;  %v1692_v18 = vsub.f32 %v1688_v2, %v1691_v16  ;;  %4235 = vmatprep.subr.bf16.mxu0 %v5106_v14 }
 0x714   : > { %v1693_v19 = vmul.f32 1.442695, %v1692_v18  ;;  %v1785_v18 = vsub.s32 3, %v5396_v46 }
 0x715   : > { %v4728_v20 = vpop.eup %4727  ;;  %4236 = vmatpush3.bf16.msra.mxu0 %v4589_v53  ;;  %v1894_v53 = vsub.s32 5, %v5396_v46 }
 0x716   : > { %4731 = vpow2.f32 %v1693_v19  ;;  %v1584_v21 = vsel %vm1353_vm4, %v4728_v20, 0.0  ;;  %4237 = vmatprep.subr.bf16.mxu0 %v5106_v14  ;;  %v1786_v19 = vrot.slane %v5401_v48, %v1785_v18 }
 0x717   : > { %1585 = vadd.xlane.f32.xlu0 %v1584_v21 }
 0x719   : > { %4238 = vmatpush3.bf16.msra.mxu0 %v4590_v54  ;;  %v1890_v54 = vrot.slane %v5401_v48, %v1889_v52 }
 0x71a   : > { %4239 = vmatprep.subr.bf16.mxu0 %v5106_v14 }
 0x71d   : > { %4240 = vmatpush3.bf16.msra.mxu0 %v4591_v55 }
 0x71e   : > { %4241 = vmatprep.subr.bf16.mxu0 %v5106_v14 }
 0x71f   : > { %v4730_v22 = vpop.eup %4729 }
 0x720   : > { %v1472_v23 = vsel %vm1353_vm4, %v4730_v22, 0.0 }
 0x721   : > { %1473 = vadd.xlane.f32.xlu0 %v1472_v23  ;;  %4242 = vmatpush3.bf16.msra.mxu0 %v4592_v60 }
 0x723   : > { %v4732_v24 = vpop.eup %4731 }
 0x724   : > { %v1695_v25 = vsel %vm1353_vm4, %v4732_v24, 0.0 }
 0x725   : > { %1696 = vadd.xlane.f32.xlu1 %v1695_v25  ;;  %v4593_v25 = vld [vmem:[#allocation11 + $0x70] ss:$8 sps:$4 sm:$0xff]  }
 0x736   : > { %1590 = vrot.lane.b32.xlu1 %v5427_v13, %s5111_s20 }
 0x737   : > { %1479 = vrot.lane.b32.xlu0 %v5427_v13, %s5109_s1 }
 0x73a   : > { %1701 = vrot.lane.b32.xlu1 %v5427_v13, %s5110_s5 }
 0x7a0   : > { %v1586_v26 = vpop.xlane.xlu0 %1585 }
 0x7aa   : > { %v1474_v27 = vpop.xlane.xlu0 %1473 }
 0x7ab   : > { %4733 = vrcp.f32 %v1474_v27  ;;  %v4598_v27 = vld [vmem:[#allocation11 + $0x64] ss:$8 sps:$4 sm:$0xff]  }
 0x7ac   : > { %4735 = vrcp.f32 %v1586_v26  ;;  %v4595_v26 = vld [vmem:[#allocation11 + $0x74] ss:$8 sps:$4 sm:$0xff]  }
 0x7ae   : > { %v1480_v28 = vpop.permute.xlu0 %1479  ;;  %v1697_v30 = vpop.xlane.xlu1 %1696 }
 0x7af   : > { %v1485_v29 = vsel %vm1369_vm2, %v1480_v28, 0  ;;  %4737 = vrcp.f32 %v1697_v30  ;;  %v4596_v28 = vld [vmem:[#allocation11 + $0x60] ss:$8 sps:$4 sm:$0xff]  }
 0x7b0   : > { %4198 = vmatpush3.bf16.msra.mxu1 %v1485_v29 }
 0x7b1   : > { %4209 = vmatprep.subr.bf16.mxu1 %v5106_v14 }
 0x7b2   : > { %v1591_v34 = vpop.permute.xlu1 %1590 }
 0x7b3   : > { %v1596_v37 = vsel %vm1369_vm2, %v1591_v34, 0  ;;  %v4599_v34 = vld [vmem:[#allocation11 + $0x50] ss:$8 sps:$4 sm:$0xff]  }
 0x7b6   : > { %v1702_v38 = vpop.permute.xlu1 %1701 }
 0x7b7   : > { %v1707_v41 = vsel %vm1369_vm2, %v1702_v38, 0  ;;  %v4610_v38 = vld [vmem:[#allocation11 + $0x24] ss:$8 sps:$4 sm:$0xff]  }
 0x7b8   : > { %v4734_v31 = vpop.eup %4733 }
 0x7b9   : > { %v1476_v32 = vmul.f32 %v4734_v31, %v4730_v22  ;;  %v4736_v36 = vpop.eup %4735 }
 0x7ba   : > { %v1588_v13 = vmul.f32 %v4736_v36, %v4728_v20  ;;  %v4604_v36 = vld [vmem:[#allocation11 + $0x44] ss:$8 sps:$4 sm:$0xff]  }
 0x7bb   : > { %v1477_v35 = vpack.c.bf16 %v1476_v32, %v1476_v32 }
 0x7bc   : > { %v1589_v39 = vpack.c.bf16 %v1588_v13, %v1588_v13  ;;  %v4738_v40 = vpop.eup %4737  ;;  %v4605_v13 = vld [vmem:[#allocation11 + $0x30] ss:$8 sps:$4 sm:$0xff]  }
 0x7bd   : > { %4200 = vmatmul.mubr.msk.bf16.vlgmr.msra.gmra.mxu1 %vm1353_vm4, %v1477_v35  ;;  %v1699_v42 = vmul.f32 %v4738_v40, %v4732_v24  ;;  %v4602_v35 = vld [vmem:[#allocation11 + $0x40] ss:$8 sps:$4 sm:$0xff]   ;;  %v4613_v40 = vld [vmem:[#allocation11 + $0x14] ss:$8 sps:$4 sm:$0xff]  }
 0x7be   : > { %4210 = vmatpush3.bf16.msra.mxu1 %v1596_v37  ;;  %4211 = vmatprep.mubr.msk.bf16.mxu1 %vm5108_vm0, %v5106_v14  ;;  %v4607_v37 = vld [vmem:[#allocation11 + $0x34] ss:$8 sps:$4 sm:$0xff]  }
 0x7bf   : > { %4221 = vmatprep.subr.bf16.mxu1 %v5106_v14  ;;  %v1700_v43 = vpack.c.bf16 %v1699_v42, %v1699_v42  ;;  %v4616_v42 = vld [vmem:[#allocation11 + $0x4] ss:$8 sps:$4 sm:$0xff]  }
 0x7c5   : > { %4212 = vmatmul.mubr.msk.bf16.vlgmr.msra.gmra.mxu1 %vm1353_vm4, %v1589_v39  ;;  %v4608_v39 = vld [vmem:[#allocation11 + $0x20] ss:$8 sps:$4 sm:$0xff]  }
 0x7c6   : > { %4222 = vmatpush3.bf16.msra.mxu1 %v1707_v41  ;;  %4223 = vmatprep.mubr.msk.bf16.mxu1 %vm5108_vm0, %v5106_v14  ;;  %v4611_v41 = vld [vmem:[#allocation11 + $0x10] ss:$8 sps:$4 sm:$0xff]  }
 0x7c7   : > { %2002 = vmatprep.subr.bf16.mxu1 %v4595_v26 }
 0x7cd   : > { %4224 = vmatmul.mubr.msk.bf16.vlgmr.msra.gmra.mxu1 %vm1353_vm4, %v1700_v43  ;;  %v4614_v43 = vld [vmem:[#allocation11] ss:$8 sps:$4 sm:$0xff]  }
 0x7ce   : > { %2034 = vmatprep.mubr.bf16.mxu1 %v5107_v33  ;;  %2003 = vmatpush1.bf16.msra.mxu1 %v4593_v25 }
 0x7cf   : > { %2004 = vmatprep.subr.bf16.mxu1 %v4598_v27 }
 0x7d2   : > { %2005 = vmatpush1.bf16.msra.mxu1 %v4596_v28 }
 0x87d   : > { %v1521_v56 = vpop.f32.mrf.mxu1 }
 0x87e   : > { %1750 = vrot.lane.b32.xlu1 %v1521_v56, %s5110_s5 }
 0x87f   : > { %v4201_v59 = vpop.f32.mrf.mxu1 }
 0x880   : > { %v1895_v59 = vrot.slane %v5401_v48, %v1894_v53 }
 0x881   : > { %v1524_v61 = vpop.f32.mrf.mxu1 }
 0x883   : > { %v4202_v62 = vpop.f32.mrf.mxu1 }
 0x885   : > { %v1632_v63 = vpop.f32.mrf.mxu1 }
 0x886   : > { %1754 = vrot.lane.b32.xlu0 %v1632_v63, %s5111_s20  ;;  %v4617_v63 = vld [vmem:[#allocation13 + $0x78] sm:$0xff]  }
 0x887   : > { %v4213_v0 = vpop.f32.mrf.mxu1  ;;  %4072 = vmatprep.subr.bf16.mxu0 %v4617_v63 }
 0x888   : > { %v4618_v0 = vld [vmem:[#allocation13 + $0x38] sm:$0xff]  }
 0x889   : > { %v1635_v1 = vpop.f32.mrf.mxu1 }
 0x88a   : > { %v4619_v1 = vld [vmem:[#allocation13 + $0x70] sm:$0xff]  }
 0x88b   : > { %v4214_v2 = vpop.f32.mrf.mxu1 }
 0x88c   : > { %v4620_v2 = vld [vmem:[#allocation13 + $0x30] sm:$0xff]  }
 0x88d   : > { %v1743_v3 = vpop.f32.mrf.mxu1 }
 0x88e   : > { %1758 = vrot.lane.b32.xlu1 %v1743_v3, %s5109_s1  ;;  %v4621_v3 = vld [vmem:[#allocation13 + $0x68] sm:$0xff]  }
 0x88f   : > { %v4225_v4 = vpop.f32.mrf.mxu1 }
 0x890   : > { %v4622_v4 = vld [vmem:[#allocation13 + $0x28] sm:$0xff]  }
 0x891   : > { %v1746_v5 = vpop.f32.mrf.mxu1 }
 0x892   : > { %v4623_v5 = vld [vmem:[#allocation13 + $0x60] sm:$0xff]  }
 0x893   : > { %v4226_v6 = vpop.f32.mrf.mxu1 }
 0x894   : > { %v4624_v6 = vld [vmem:[#allocation13 + $0x20] sm:$0xff]  }
 0x8f0   : > { %v1751_v7 = vpop.permute.xlu1 %1750 }
 0x8f1   : > { %v1761_v9 = vsel %vm1305_vm1, %v5467_v45, %v1751_v7  ;;  %v4625_v7 = vld [vmem:[#allocation13 + $0x58] sm:$0xff]  }
 0x8f8   : > { %v1755_v8 = vpop.permute.xlu0 %1754 }
 0x8f9   : > { %v1763_v11 = vsel %vm1762_vm5, %v1761_v9, %v1755_v8  ;;  %v4626_v8 = vld [vmem:[#allocation13 + $0x18] sm:$0xff]   ;;  %v4627_v9 = vld [vmem:[#allocation13 + $0x50] sm:$0xff]  }
 0x900   : > { %v1759_v12 = vpop.permute.xlu1 %1758 }
 0x901   : > { %v1765_v15 = vsel %vm1764_vm6, %v1763_v11, %v1759_v12  ;;  %v4628_v11 = vld [vmem:[#allocation13 + $0x10] sm:$0xff]   ;;  %v4629_v12 = vld [vmem:[#allocation13 + $0x48] sm:$0xff]  }
 0x902   : > { %v1766_v16 = vpack.c.bf16 %v1765_v15, %v1765_v15  ;;  %v4630_v15 = vld [vmem:[#allocation13 + $0x8] sm:$0xff]  }
 0x904   : > { %4244 = vmatmul.mubr.bf16.vlgmr.msra.gmra.mxu0 %v1766_v16  ;;  %v4631_v16 = vld [vmem:[#allocation13 + $0x40] sm:$0xff]  }
 0x905   : > { %4073 = vmatpush3.bf16.msra.mxu0 %v4618_v0 }
 0x906   : > { %4074 = vmatprep.subr.bf16.mxu0 %v4619_v1  ;;  %v4633_v1 = vld [vmem:[#allocation8 + $0x168] ss:$12 sps:$4 sm:$0xff]  }
 0x909   : > { %4075 = vmatpush3.bf16.msra.mxu0 %v4620_v2  ;;  %v4635_v2 = vld [vmem:[#allocation8 + $0x16c] ss:$12 sps:$4 sm:$0xff]  }
 0x90a   : > { %4076 = vmatprep.subr.bf16.mxu0 %v4621_v3  ;;  %v4636_v3 = vld [vmem:[#allocation8 + $0x170] ss:$12 sps:$4 sm:$0xff]  }
 0x90d   : > { %4077 = vmatpush3.bf16.msra.mxu0 %v4622_v4  ;;  %v4639_v4 = vld [vmem:[#allocation8 + $0x154] ss:$12 sps:$4 sm:$0xff]  }
 0x90e   : > { %4078 = vmatprep.subr.bf16.mxu0 %v4623_v5  ;;  %v4640_v5 = vld [vmem:[#allocation8 + $0x158] ss:$12 sps:$4 sm:$0xff]  }
 0x911   : > { %4079 = vmatpush3.bf16.msra.mxu0 %v4624_v6  ;;  %v4637_v6 = vld [vmem:[#allocation8 + $0x150] ss:$12 sps:$4 sm:$0xff]  }
 0x912   : > { %4080 = vmatprep.subr.bf16.mxu0 %v4625_v7 }
 0x915   : > { %4081 = vmatpush3.bf16.msra.mxu0 %v4626_v8 }
 0x916   : > { %4082 = vmatprep.subr.bf16.mxu0 %v4627_v9  ;;  %v4643_v9 = vld [vmem:[#allocation8 + $0x13c] ss:$12 sps:$4 sm:$0xff]  }
 0x919   : > { %4083 = vmatpush3.bf16.msra.mxu0 %v4628_v11  ;;  %v4641_v11 = vld [vmem:[#allocation8 + $0x138] ss:$12 sps:$4 sm:$0xff]  }
 0x91a   : > { %4084 = vmatprep.subr.bf16.mxu0 %v4629_v12  ;;  %v4644_v12 = vld [vmem:[#allocation8 + $0x140] ss:$12 sps:$4 sm:$0xff]  }
 0x91d   : > { %4085 = vmatpush3.bf16.msra.mxu0 %v4630_v15  ;;  %v4645_v15 = vld [vmem:[#allocation8 + $0x120] ss:$12 sps:$4 sm:$0xff]  }
 0x91e   : > { %4086 = vmatprep.subr.bf16.mxu0 %v4631_v16  ;;  %v4647_v16 = vld [vmem:[#allocation8 + $0x124] ss:$12 sps:$4 sm:$0xff]  }
 0x9c4   : > { %v1869_v20 = vpop.f32.mrf.mxu0 }
 0x9c5   : > { %v1870_v21 = vadd.f32 %v1869_v20, %v1786_v19  ;;  %v4632_v19 = vld [vmem:[#allocation13] sm:$0xff]   ;;  %v5532_v20 = vsub.s32 6, %v5396_v46 }
 0x9c6   : > { %v4245_v22 = vpop.f32.mrf.mxu0  ;;  %4087 = vmatpush3.bf16.msra.mxu0 %v4632_v19  ;;  %v4648_v19 = vld [vmem:[#allocation8 + $0x128] ss:$12 sps:$4 sm:$0xff]  }
 0x9c7   : > { %v5517_v23 = vadd.f32 %v1870_v21, %v5379_v10  ;;  %v4601_v10 = vld [vmem:[#allocation11 + $0x54] ss:$8 sps:$4 sm:$0xff]   ;;  %4247 = vmatprep.subr.bf16.mxu0 %v5106_v14  ;;  %v1917_v21 = vrot.slane %v5401_v48, %v5532_v20  ;;  %v1921_v22 = vrot.slane %v5414_v57, %v5532_v20 }
 0x9c8   : > { %v1872_v45 = vpop.f32.mrf.mxu0  ;;  %2006 = vmatprep.subr.bf16.mxu1 %v4601_v10 }
 0x9c9   : > { %1876 = vadd.xlane.f32.xlu0 %v5517_v23  ;;  %2007 = vmatpush1.bf16.msra.mxu1 %v4599_v34 }
 0x9ca   : > { %v4246_v24 = vpop.f32.mrf.mxu0  ;;  %2008 = vmatprep.subr.bf16.mxu1 %v4604_v36 }
 0x9cd   : > { %2009 = vmatpush1.bf16.msra.mxu1 %v4602_v35 }
 0x9ce   : > { %2010 = vmatprep.subr.bf16.mxu1 %v4607_v37 }
 0x9d1   : > { %2011 = vmatpush1.bf16.msra.mxu1 %v4605_v13 }
 0x9d2   : > { %2012 = vmatprep.subr.bf16.mxu1 %v4610_v38 }
 0x9d5   : > { %2013 = vmatpush1.bf16.msra.mxu1 %v4608_v39 }
 0x9d6   : > { %2014 = vmatprep.subr.bf16.mxu1 %v4613_v40 }
 0x9d9   : > { %2015 = vmatpush1.bf16.msra.mxu1 %v4611_v41 }
 0x9da   : > { %2016 = vmatprep.subr.bf16.mxu1 %v4616_v42 }
 0x9dd   : > { %2017 = vmatpush1.bf16.msra.mxu1 %v4614_v43 }
 0x9de   : > { %2435 = vmatprep.subr.bf16.mxu1 %v4635_v2 }
 0xa52   : > { %v1877_v29 = vpop.xlane.xlu0 %1876 }
 0xa53   : > { %v1878_v30 = vmul.f32 0.0078125, %v1877_v29 }
 0xa55   : > { %v1879_v31 = vsub.f32 %v5517_v23, %v1878_v30 }
 0xa57   : > { %v1880_v32 = vmul.f32 %v1879_v31, %v1879_v31 }
 0xa59   : > { %1881 = vadd.xlane.f32.xlu1 %v1880_v32 }
 0xae2   : > { %v1882_v44 = vpop.xlane.xlu1 %1881 }
 0xae3   : > { %v1883_v50 = vmul.f32 0.0078125, %v1882_v44 }
 0xae5   : > { %v1884_v51 = vadd.f32 1e-05, %v1883_v50 }
 0xae7   : > { %4739 = vrsqrt.f32 %v1884_v51 }
 0xaf4   : > { %v4740_v55 = vpop.eup %4739 }
 0xaf5   : > { %v1886_v56 = vmul.f32 %v4740_v55, %v1879_v31 }
 0xaf7   : > { %v1891_v60 = vmul.f32 %v1890_v54, %v1886_v56  ;;  %v2097_v54 = vsub.s32 7, %v5396_v46 }
 0xaf9   : > { %v1896_v61 = vadd.f32 %v1895_v59, %v1891_v60  ;;  %v2098_v56 = vrot.slane %v5401_v48, %v2097_v54 }
 0xafb   : > { %v1897_v62 = vpack.c.bf16 %v1896_v61, %v1896_v61 }
 0xafd   : > { %2035 = vmatmul.mubr.bf16.vlgmr.msra.gmra.mxu1 %v1897_v62 }
 0xafe   : > { %2467 = vmatprep.mubr.bf16.mxu1 %v5107_v33  ;;  %2436 = vmatpush1.bf16.msra.mxu1 %v4633_v1 }
 0xaff   : > { %2437 = vmatprep.subr.bf16.mxu1 %v4639_v4 }
 0xb02   : > { %2438 = vmatpush1.bf16.msra.mxu1 %v4637_v6 }
 0xb03   : > { %2439 = vmatprep.subr.bf16.mxu1 %v4643_v9 }
 0xb06   : > { %2440 = vmatpush1.bf16.msra.mxu1 %v4641_v11 }
 0xb07   : > { %2441 = vmatprep.subr.bf16.mxu1 %v4647_v16 }
 0xb0a   : > { %2442 = vmatpush1.bf16.msra.mxu1 %v4645_v15 }
 0xbbd   : > { %v2036_v45 = vpop.f32.mrf.mxu1 }
 0xbbe   : > { %v2037_v24 = vadd.f32 %v2036_v45, %v1917_v21  ;;  %v4651_v21 = vld [vmem:[#allocation8 + $0x10c] ss:$12 sps:$4 sm:$0xff]   ;;  %v4652_v45 = vld [vmem:[#allocation8 + $0x110] ss:$12 sps:$4 sm:$0xff]  }
 0xbbf   : > { %v2038_v25 = vpop.f32.mrf.mxu1  ;;  %2443 = vmatprep.subr.bf16.mxu1 %v4651_v21 }
 0xbc0   : > { %v2045_v26 = vmul.f32 0.044715, %v2037_v24  ;;  %v2039_v27 = vadd.f32 %v2038_v25, %v1921_v22  ;;  %v2043_v40 = vmul.f32 0.5, %v2037_v24  ;;  %v4649_v22 = vld [vmem:[#allocation8 + $0x108] ss:$12 sps:$4 sm:$0xff]  }
 0xbc1   : > { %v2040_v28 = vpop.f32.mrf.mxu1  ;;  %2444 = vmatpush1.bf16.msra.mxu1 %v4649_v22  ;;  %v4653_v25 = vld [vmem:[#allocation8 + $0xf0] ss:$12 sps:$4 sm:$0xff]  }
 0xbc2   : > { %v2047_v29 = vmul.f32 %v2045_v26, %v2037_v24  ;;  %v2046_v30 = vmul.f32 0.044715, %v2039_v27  ;;  %v2044_v41 = vmul.f32 0.5, %v2039_v27  ;;  %v4656_v26 = vld [vmem:[#allocation8 + $0xf8] ss:$12 sps:$4 sm:$0xff]  }
 0xbc3   : > { %v2041_v31 = vpop.f32.mrf.mxu1  ;;  %v4657_v28 = vld [vmem:[#allocation8 + $0xd8] ss:$12 sps:$4 sm:$0xff]  }
 0xbc4   : > { %v2049_v32 = vmul.f32 %v2047_v29, %v2037_v24  ;;  %v2048_v10 = vmul.f32 %v2046_v30, %v2039_v27  ;;  %v4660_v29 = vld [vmem:[#allocation8 + $0xe0] ss:$12 sps:$4 sm:$0xff]   ;;  %v4663_v30 = vld [vmem:[#allocation8 + $0xc4] ss:$12 sps:$4 sm:$0xff]  }
 0xbc5   : > { %v4661_v31 = vld [vmem:[#allocation8 + $0xc0] ss:$12 sps:$4 sm:$0xff]  }
 0xbc6   : > { %v2051_v34 = vadd.f32 %v2049_v32, %v2037_v24  ;;  %v2050_v35 = vmul.f32 %v2048_v10, %v2039_v27  ;;  %v4655_v24 = vld [vmem:[#allocation8 + $0xf4] ss:$12 sps:$4 sm:$0xff]  }
 0xbc7   : > { %2445 = vmatprep.subr.bf16.mxu1 %v4655_v24  ;;  %v4664_v32 = vld [vmem:[#allocation8 + $0xc8] ss:$12 sps:$4 sm:$0xff]  }
 0xbc8   : > { %v2053_v36 = vmul.f32 0.7978846, %v2051_v34  ;;  %v2052_v37 = vadd.f32 %v2050_v35, %v2039_v27  ;;  %v4659_v27 = vld [vmem:[#allocation8 + $0xdc] ss:$12 sps:$4 sm:$0xff]   ;;  %2446 = vmatpush1.bf16.msra.mxu1 %v4653_v25 }
 0xbc9   : > { %2447 = vmatprep.subr.bf16.mxu1 %v4659_v27 }
 0xbca   : > { %v2054_v13 = vmul.f32 0.7978846, %v2052_v37  ;;  %4741 = vtanh.f32 %v2053_v36  ;;  %v5558_v36 = vld [vmem:[#allocation14 + $0x18] sm:$0xff] }
 0xbcb   : > { %v2254_v37 = vrot.slane %v5558_v36, %v5399_v47 }
 0xbcc   : > { %4743 = vtanh.f32 %v2054_v13  ;;  %2448 = vmatpush1.bf16.msra.mxu1 %v4657_v28 }
 0xbcd   : > { %2449 = vmatprep.subr.bf16.mxu1 %v4663_v30 }
 0xbd0   : > { %2450 = vmatpush1.bf16.msra.mxu1 %v4661_v31 }
 0xbd1   : > { %4267 = vmatprep.subr.bf16.mxu1 %v5106_v14 }
 0xbd7   : > { %v4742_v38 = vpop.eup %4741 }
 0xbd8   : > { %v2057_v57 = vadd.f32 1.0, %v4742_v38 }
 0xbd9   : > { %v4744_v39 = vpop.eup %4743 }
 0xbda   : > { %v2058_v42 = vadd.f32 1.0, %v4744_v39  ;;  %v2059_v43 = vmul.f32 %v2057_v57, %v2043_v40  ;;  %v2259_v57 = vrot.slane %v5558_v36, %v5404_v49 }
 0xbdc   : > { %v2060_v44 = vmul.f32 %v2058_v42, %v2044_v41  ;;  %v2061_v51 = vpack.c.bf16 %v2059_v43, %v2059_v43  ;;  %v5568_v42 = vld [vmem:[#allocation14 + $0x20] sm:$0xff] }
 0xbdd   : > { %v2302_v43 = vrot.slane %v5568_v42, %v5417_v58 }
 0xbde   : > { %v2062_v50 = vpack.c.bf16 %v2060_v44, %v2060_v44 }
 0xbe0   : > { %2227 = vmatprep.mubr.bf16.mxu0 %v2062_v50  ;;  %v2239_v50 = vld [vmem:[#allocation14 + $0x28] sm:$0xff] }
 0xbe1   : > { %2228 = vmatmul.mubr.bf16.vlgmr.msra.gmra.mxu0 %v2061_v51 }
 0xbe2   : > { %4263 = vmatprep.mubr.msk.bf16.mxu0 %vm5108_vm0, %v5106_v14  ;;  %4248 = vmatpush3.bf16.msra.mxu0 %v4636_v3 }
 0xbe3   : > { %4249 = vmatprep.subr.bf16.mxu0 %v5106_v14 }
 0xbe6   : > { %4250 = vmatpush3.bf16.msra.mxu0 %v4640_v5 }
 0xbe7   : > { %4251 = vmatprep.subr.bf16.mxu0 %v5106_v14 }
 0xbea   : > { %4252 = vmatpush3.bf16.msra.mxu0 %v4644_v12 }
 0xbeb   : > { %4253 = vmatprep.subr.bf16.mxu0 %v5106_v14 }
 0xbee   : > { %4254 = vmatpush3.bf16.msra.mxu0 %v4648_v19 }
 0xbef   : > { %4255 = vmatprep.subr.bf16.mxu0 %v5106_v14 }
 0xbf2   : > { %4256 = vmatpush3.bf16.msra.mxu0 %v4652_v45 }
 0xbf3   : > { %4257 = vmatprep.subr.bf16.mxu0 %v5106_v14 }
 0xbf6   : > { %4258 = vmatpush3.bf16.msra.mxu0 %v4656_v26 }
 0xbf7   : > { %4259 = vmatprep.subr.bf16.mxu0 %v5106_v14 }
 0xbfa   : > { %4260 = vmatpush3.bf16.msra.mxu0 %v4660_v29 }
 0xbfb   : > { %4261 = vmatprep.subr.bf16.mxu0 %v5106_v14 }
 0xbfe   : > { %4262 = vmatpush3.bf16.msra.mxu0 %v4664_v32 }
 0xbff   : > { %4291 = vmatprep.subr.bf16.mxu0 %v5106_v14 }
 0xca1   : > { %v4088_v55 = vpop.f32.mrf.mxu0 }
 0xca3   : > { %v4089_v59 = vpop.f32.mrf.mxu0 }
 0xca4   : > { %v4090_v60 = vadd.f32 %v4089_v59, %v4088_v55  ;;  %v2306_v59 = vrot.slane %v2239_v50, %v5417_v58 }
 0xca5   : > { %v4091_v61 = vpop.f32.mrf.mxu0 }
 0xca6   : > { %v2230_v62 = vadd.f32 %v4090_v60, %v2098_v56 }
 0xca7   : > { %v4092_v63 = vpop.f32.mrf.mxu0 }
 0xca8   : > { %v5545_v0 = vadd.f32 %v2230_v62, %v5517_v23  ;;  %v2298_v63 = vrot.slane %v5558_v36, %v5417_v58 }
 0xcaa   : > { %2240 = vadd.xlane.f32.xlu0 %v5545_v0 }
 0xd33   : > { %v2241_v48 = vpop.xlane.xlu0 %2240 }
 0xd34   : > { %v2242_v23 = vmul.f32 0.0078125, %v2241_v48 }
 0xd36   : > { %v2243_v7 = vsub.f32 %v5545_v0, %v2242_v23 }
 0xd38   : > { %v2244_v8 = vmul.f32 %v2243_v7, %v2243_v7 }
 0xd3a   : > { %2245 = vadd.xlane.f32.xlu0 %v2244_v8 }
 0xdc3   : > { %v2246_v10 = vpop.xlane.xlu0 %2245 }
 0xdc4   : > { %v2247_v34 = vmul.f32 0.0078125, %v2246_v10 }
 0xdc6   : > { %v2248_v35 = vadd.f32 1e-05, %v2247_v34 }
 0xdc8   : > { %4745 = vrsqrt.f32 %v2248_v35 }
 0xdd5   : > { %v4746_v13 = vpop.eup %4745 }
 0xdd6   : > { %v2250_v38 = vmul.f32 %v4746_v13, %v2243_v7 }
 0xdd8   : > { %v2255_v39 = vmul.f32 %v2254_v37, %v2250_v38 }
 0xdda   : > { %v2260_v40 = vadd.f32 %v2259_v57, %v2255_v39 }
 0xddc   : > { %v2261_v41 = vpack.c.bf16 %v2260_v40, %v2260_v40 }
 0xdde   : > { %2468 = vmatmul.mubr.bf16.vlgmr.msra.gmra.mxu1 %v2261_v41  ;;  %4264 = vmatmul.mubr.bf16.vlgmr.msra.gmra.mxu0 %v2261_v41 }
 0xddf   : > { %4269 = vmatprep.mubr.msk.bf16.mxu1 %vm5108_vm0, %v5106_v14  ;;  %4293 = vmatprep.mubr.msk.bf16.mxu0 %vm5108_vm0, %v5106_v14 }
 0xe9e   : > { %v2469_v44 = vpop.f32.mrf.mxu1  ;;  %v2510_v51 = vpop.f32.mrf.mxu0 }
 0xe9f   : > { %v2511_v4 = vadd.f32 %v2510_v51, %v2306_v59  ;;  %v2470_v6 = vadd.f32 %v2469_v44, %v2298_v63 }
 0xea0   : > { %v2471_v55 = vpop.f32.mrf.mxu1  ;;  %v4265_v56 = vpop.f32.mrf.mxu0 }
 0xea1   : > { %v2472_v60 = vadd.f32 %v2471_v55, %v2302_v43  ;;  %v5577_v48 = vpack.c.bf16 %v2511_v4, %v2511_v4  ;;  %v2516_v23 = vpack.c.bf16 %v2470_v6, %v2470_v6 }
 0xea2   : > { %v2473_v61 = vpop.f32.mrf.mxu1  ;;  %v2513_v62 = vpop.f32.mrf.mxu0 }
 0xea3   : > { %v2517_v1 = vpack.c.bf16 %v2472_v60, %v2472_v60  ;;  %v2582_v7 = vsel %vm1369_vm2, %v5577_v48, 0 }
 0xea4   : > { %v2474_v2 = vpop.f32.mrf.mxu1  ;;  %v4266_v3 = vpop.f32.mrf.mxu0 }
 0xea5   : > { %v2523_v5 = vsel %vm1305_vm1, %v2517_v1, 0 }
 0xea6   : > { %4268 = vmatpush3.bf16.xpose.msra.mxu1 %v2523_v5 }
 0xea7   : > { %4273 = vmatprep.subr.bf16.mxu1 %v5106_v14 }
 0xead   : > { %4270 = vmatmul.mubr.msk.bf16.vlgmr.msra.gmra.mxu1 %vm1305_vm1, %v2516_v23 }
 0xeae   : > { %4274 = vmatpush3.bf16.msra.mxu1 %v2582_v7  ;;  %4275 = vmatprep.mubr.msk.bf16.mxu1 %vm5108_vm0, %v5106_v14 }
 0xeaf   : > { %4279 = vmatprep.subr.bf16.mxu1 %v5106_v14 }
 0xf6d   : > { %v2559_v8 = vpop.f32.mrf.mxu1 }
 0xf6e   : > { %v2565_v9 = vsel %vm1022_vm3, %v2559_v8, -1e+30 }
 0xf6f   : > { %v4271_v11 = vpop.f32.mrf.mxu1  ;;  %v2566_v12 = vsel %vm1353_vm4, %v2565_v9, -inf }
 0xf70   : > { %2567 = vmax.xlane.f32.xlu0 %v2566_v12 }
 0xf71   : > { %v2562_v15 = vpop.f32.mrf.mxu1 }
 0xf73   : > { %v4272_v16 = vpop.f32.mrf.mxu1 }
 0xf86   : > { %2628 = vrot.lane.b32.xlu0 %v2517_v1, %s5109_s1 }
 0xf8a   : > { %2851 = vrot.lane.b32.xlu0 %v2517_v1, %s5110_s5 }
 0xff9   : > { %v2568_v19 = vpop.xlane.xlu0 %2567 }
 0xffa   : > { %v2569_v21 = vsub.f32 %v2565_v9, %v2568_v19 }
 0xffc   : > { %v2570_v22 = vmul.f32 1.442695, %v2569_v21 }
 0xffd   : > { %v2629_v27 = vpop.permute.xlu0 %2628 }
 0xffe   : > { %4747 = vpow2.f32 %v2570_v22  ;;  %v2634_v37 = vsel %vm1305_vm1, %v2629_v27, 0 }
0x1001   : > { %v2852_v31 = vpop.permute.xlu0 %2851 }
0x1002   : > { %v2857_v34 = vsel %vm1305_vm1, %v2852_v31, 0 }
0x100b   : > { %v4748_v45 = vpop.eup %4747 }
0x100c   : > { %v2572_v24 = vsel %vm1353_vm4, %v4748_v45, 0.0 }
0x100d   : > { %2573 = vadd.xlane.f32.xlu1 %v2572_v24 }
0x101e   : > { %2625 = vrot.lane.b32.xlu1 %v2516_v23, %s5109_s1 }
0x1022   : > { %2740 = vrot.lane.b32.xlu1 %v2517_v1, %s5111_s20 }
0x1026   : > { %2738 = vrot.lane.b32.xlu1 %v2516_v23, %s5111_s20 }
0x102a   : > { %2849 = vrot.lane.b32.xlu1 %v2516_v23, %s5110_s5 }
0x1096   : > { %v2574_v25 = vpop.xlane.xlu1 %2573 }
0x1097   : > { %4749 = vrcp.f32 %v2574_v25 }
0x109a   : > { %v2626_v26 = vpop.permute.xlu1 %2625 }
0x109e   : > { %v2741_v28 = vpop.permute.xlu1 %2740 }
0x109f   : > { %v2746_v29 = vsel %vm1305_vm1, %v2741_v28, 0 }
0x10a0   : > { %4292 = vmatpush3.bf16.xpose.msra.mxu0 %v2746_v29 }
0x10a1   : > { %4303 = vmatprep.subr.bf16.mxu0 %v5106_v14 }
0x10a2   : > { %v2739_v10 = vpop.permute.xlu1 %2738 }
0x10a4   : > { %v4750_v30 = vpop.eup %4749 }
0x10a5   : > { %v2576_v32 = vmul.f32 %v4750_v30, %v4748_v45 }
0x10a6   : > { %v2850_v13 = vpop.permute.xlu1 %2849 }
0x10a7   : > { %4294 = vmatmul.mubr.msk.bf16.vlgmr.msra.gmra.mxu0 %vm1305_vm1, %v2739_v10  ;;  %v2577_v35 = vpack.c.bf16 %v2576_v32, %v2576_v32 }
0x10a8   : > { %4304 = vmatpush3.bf16.xpose.msra.mxu0 %v2857_v34  ;;  %4305 = vmatprep.mubr.msk.bf16.mxu0 %vm5108_vm0, %v5106_v14 }
0x10a9   : > { %4276 = vmatmul.mubr.msk.bf16.vlgmr.msra.gmra.mxu1 %vm1353_vm4, %v2577_v35  ;;  %4315 = vmatprep.subr.bf16.mxu0 %v5106_v14 }
0x10aa   : > { %4280 = vmatpush3.bf16.xpose.msra.mxu1 %v2634_v37  ;;  %4281 = vmatprep.mubr.msk.bf16.mxu1 %vm5108_vm0, %v5106_v14 }
0x10ab   : > { %4285 = vmatprep.subr.bf16.mxu1 %v5106_v14 }
0x10af   : > { %4306 = vmatmul.mubr.msk.bf16.vlgmr.msra.gmra.mxu0 %vm1305_vm1, %v2850_v13 }
0x10b0   : > { %4331 = vmatprep.mubr.msk.bf16.mxu0 %vm5108_vm0, %v5106_v14 }
0x10b1   : > { %4282 = vmatmul.mubr.msk.bf16.vlgmr.msra.gmra.mxu1 %vm1305_vm1, %v2626_v26 }
0x10b2   : > { %4287 = vmatprep.mubr.msk.bf16.mxu1 %vm5108_vm0, %v5106_v14 }
0x1167   : > { %v2782_v38 = vpop.f32.mrf.mxu0 }
0x1168   : > { %v2788_v57 = vsel %vm1022_vm3, %v2782_v38, -1e+30 }
0x1169   : > { %v5615_v39 = vpop.f32.mrf.mxu1  ;;  %v4295_v40 = vpop.f32.mrf.mxu0  ;;  %v2789_v41 = vsel %vm1353_vm4, %v2788_v57, -inf }
0x116a   : > { %2790 = vmax.xlane.f32.xlu1 %v2789_v41 }
0x116b   : > { %v4277_v43 = vpop.f32.mrf.mxu1  ;;  %v2785_v44 = vpop.f32.mrf.mxu0 }
0x116c   : > { %v4665_v44 = vld [vmem:[#allocation10 + $0x78] sm:$0xff]  }
0x116d   : > { %v2621_v50 = vpop.f32.mrf.mxu1  ;;  %v4296_v51 = vpop.f32.mrf.mxu0  ;;  %4316 = vmatpush3.bf16.msra.mxu0 %v4665_v44  ;;  %v4694_v44 = vld [vmem:[#allocation11 + $0x80] ss:$8 sps:$4 sm:$0xff]  }
0x116e   : > { %v4666_v50 = vld [vmem:[#allocation10 + $0x70] sm:$0xff]   ;;  %4317 = vmatprep.subr.bf16.mxu0 %v5106_v14  ;;  %v4667_v51 = vld [vmem:[#allocation10 + $0x68] sm:$0xff]  }
0x116f   : > { %v4278_v55 = vpop.f32.mrf.mxu1  ;;  %v2893_v56 = vpop.f32.mrf.mxu0 }
0x1170   : > { %v2899_v2 = vsel %vm1022_vm3, %v2893_v56, -1e+30  ;;  %v4668_v55 = vld [vmem:[#allocation10 + $0x60] sm:$0xff]   ;;  %v4669_v56 = vld [vmem:[#allocation10 + $0x58] sm:$0xff]  }
0x1171   : > { %v2670_v59 = vpop.f32.mrf.mxu1  ;;  %v4307_v60 = vpop.f32.mrf.mxu0  ;;  %v2900_v6 = vsel %vm1353_vm4, %v2899_v2, -inf  ;;  %4318 = vmatpush3.bf16.msra.mxu0 %v4666_v50 }
0x1172   : > { %v2676_v61 = vsel %vm1022_vm3, %v2670_v59, -1e+30  ;;  %4319 = vmatprep.subr.bf16.mxu0 %v5106_v14  ;;  %v4671_v59 = vld [vmem:[#allocation10 + $0x48] sm:$0xff]  }
0x1173   : > { %v4283_v62 = vpop.f32.mrf.mxu1  ;;  %v2896_v63 = vpop.f32.mrf.mxu0  ;;  %v2677_v1 = vsel %vm1353_vm4, %v2676_v61, -inf }
0x1174   : > { %2678 = vmax.xlane.f32.xlu0 %v2677_v1  ;;  %v4672_v62 = vld [vmem:[#allocation10 + $0x40] sm:$0xff]  }
0x1175   : > { %v2673_v3 = vpop.f32.mrf.mxu1  ;;  %v4308_v4 = vpop.f32.mrf.mxu0  ;;  %4320 = vmatpush3.bf16.msra.mxu0 %v4667_v51 }
0x1176   : > { %4321 = vmatprep.subr.bf16.mxu0 %v5106_v14 }
0x1177   : > { %v4284_v5 = vpop.f32.mrf.mxu1 }
0x1178   : > { %2901 = vmax.xlane.f32.xlu0 %v2900_v6 }
0x1179   : > { %4322 = vmatpush3.bf16.msra.mxu0 %v4668_v55 }
0x117a   : > { %4323 = vmatprep.subr.bf16.mxu0 %v5106_v14 }
0x117d   : > { %4324 = vmatpush3.bf16.msra.mxu0 %v4669_v56  ;;  %v3100_v56 = vrot.slane %v5558_v36, %v1889_v52  ;;  %v4701_v52 = vld [vmem:[#allocation13 + $0xe8] sm:$0xff]  }
0x117e   : > { %4325 = vmatprep.subr.bf16.mxu0 %v5106_v14 }
0x11f3   : > { %v2791_v23 = vpop.xlane.xlu1 %2790 }
0x11f4   : > { %v2792_v7 = vsub.f32 %v2788_v57, %v2791_v23 }
0x11f6   : > { %v2793_v8 = vmul.f32 1.442695, %v2792_v7 }
0x11f8   : > { %4751 = vpow2.f32 %v2793_v8 }
0x11fd   : > { %v2679_v9 = vpop.xlane.xlu0 %2678 }
0x11fe   : > { %v2680_v11 = vsub.f32 %v2676_v61, %v2679_v9 }
0x1200   : > { %v2681_v12 = vmul.f32 1.442695, %v2680_v11 }
0x1201   : > { %v2902_v15 = vpop.xlane.xlu0 %2901 }
0x1202   : > { %4753 = vpow2.f32 %v2681_v12  ;;  %v2903_v16 = vsub.f32 %v2899_v2, %v2902_v15 }
0x1204   : > { %v2904_v19 = vmul.f32 1.442695, %v2903_v16 }
0x1205   : > { %v4752_v17 = vpop.eup %4751 }
0x1206   : > { %4755 = vpow2.f32 %v2904_v19  ;;  %v2795_v21 = vsel %vm1353_vm4, %v4752_v17, 0.0 }
0x1207   : > { %2796 = vadd.xlane.f32.xlu0 %v2795_v21  ;;  %v2996_v21 = vrot.slane %v5558_v36, %v1785_v18 }
0x120f   : > { %v4754_v22 = vpop.eup %4753 }
0x1210   : > { %v2683_v45 = vsel %vm1353_vm4, %v4754_v22, 0.0 }
0x1211   : > { %2684 = vadd.xlane.f32.xlu0 %v2683_v45 }
0x1213   : > { %v4756_v24 = vpop.eup %4755 }
0x1214   : > { %v2906_v25 = vsel %vm1353_vm4, %v4756_v24, 0.0 }
0x1215   : > { %2907 = vadd.xlane.f32.xlu1 %v2906_v25 }
0x1226   : > { %2801 = vrot.lane.b32.xlu1 %v5577_v48, %s5111_s20 }
0x1227   : > { %2690 = vrot.lane.b32.xlu0 %v5577_v48, %s5109_s1 }
0x122a   : > { %2912 = vrot.lane.b32.xlu1 %v5577_v48, %s5110_s5 }
0x1290   : > { %v2797_v26 = vpop.xlane.xlu0 %2796 }
0x129a   : > { %v2685_v27 = vpop.xlane.xlu0 %2684 }
0x129b   : > { %4757 = vrcp.f32 %v2685_v27  ;;  %v4673_v27 = vld [vmem:[#allocation11 + $0xf0] ss:$8 sps:$4 sm:$0xff]  }
0x129c   : > { %4759 = vrcp.f32 %v2797_v26 }
0x129e   : > { %v2691_v28 = vpop.permute.xlu0 %2690  ;;  %v2908_v30 = vpop.xlane.xlu1 %2907 }
0x129f   : > { %v2696_v29 = vsel %vm1369_vm2, %v2691_v28, 0  ;;  %4761 = vrcp.f32 %v2908_v30  ;;  %v4675_v28 = vld [vmem:[#allocation11 + $0xf4] ss:$8 sps:$4 sm:$0xff]   ;;  %v4676_v30 = vld [vmem:[#allocation11 + $0xe0] ss:$8 sps:$4 sm:$0xff]  }
0x12a0   : > { %4286 = vmatpush3.bf16.msra.mxu1 %v2696_v29  ;;  %v4678_v29 = vld [vmem:[#allocation11 + $0xe4] ss:$8 sps:$4 sm:$0xff]  }
0x12a1   : > { %4297 = vmatprep.subr.bf16.mxu1 %v5106_v14 }
0x12a2   : > { %v2802_v10 = vpop.permute.xlu1 %2801 }
0x12a3   : > { %v2807_v37 = vsel %vm1369_vm2, %v2802_v10, 0 }
0x12a6   : > { %v2913_v13 = vpop.permute.xlu1 %2912 }
0x12a7   : > { %v2918_v40 = vsel %vm1369_vm2, %v2913_v13, 0  ;;  %v4685_v13 = vld [vmem:[#allocation11 + $0xb0] ss:$8 sps:$4 sm:$0xff]  }
0x12a8   : > { %v4758_v31 = vpop.eup %4757 }
0x12a9   : > { %v2687_v32 = vmul.f32 %v4758_v31, %v4754_v22  ;;  %v4760_v35 = vpop.eup %4759 }
0x12aa   : > { %v2799_v48 = vmul.f32 %v4760_v35, %v4752_v17  ;;  %v4682_v35 = vld [vmem:[#allocation11 + $0xc0] ss:$8 sps:$4 sm:$0xff]  }
0x12ab   : > { %v2688_v34 = vpack.c.bf16 %v2687_v32, %v2687_v32 }
0x12ac   : > { %v2800_v38 = vpack.c.bf16 %v2799_v48, %v2799_v48  ;;  %v4762_v57 = vpop.eup %4761  ;;  %v4687_v48 = vld [vmem:[#allocation11 + $0xb4] ss:$8 sps:$4 sm:$0xff]  }
0x12ad   : > { %4288 = vmatmul.mubr.msk.bf16.vlgmr.msra.gmra.mxu1 %vm1353_vm4, %v2688_v34  ;;  %v2910_v41 = vmul.f32 %v4762_v57, %v4756_v24  ;;  %v4679_v34 = vld [vmem:[#allocation11 + $0xd0] ss:$8 sps:$4 sm:$0xff]   ;;  %v4688_v57 = vld [vmem:[#allocation11 + $0xa0] ss:$8 sps:$4 sm:$0xff]  }
0x12ae   : > { %4298 = vmatpush3.bf16.msra.mxu1 %v2807_v37  ;;  %4299 = vmatprep.mubr.msk.bf16.mxu1 %vm5108_vm0, %v5106_v14  ;;  %v4684_v37 = vld [vmem:[#allocation11 + $0xc4] ss:$8 sps:$4 sm:$0xff]  }
0x12af   : > { %4309 = vmatprep.subr.bf16.mxu1 %v5106_v14  ;;  %v2911_v43 = vpack.c.bf16 %v2910_v41, %v2910_v41  ;;  %v4691_v41 = vld [vmem:[#allocation11 + $0x90] ss:$8 sps:$4 sm:$0xff]  }
0x12b5   : > { %4300 = vmatmul.mubr.msk.bf16.vlgmr.msra.gmra.mxu1 %vm1353_vm4, %v2800_v38  ;;  %v4690_v38 = vld [vmem:[#allocation11 + $0xa4] ss:$8 sps:$4 sm:$0xff]  }
0x12b6   : > { %4310 = vmatpush3.bf16.msra.mxu1 %v2918_v40  ;;  %4311 = vmatprep.mubr.msk.bf16.mxu1 %vm5108_vm0, %v5106_v14  ;;  %v4693_v40 = vld [vmem:[#allocation11 + $0x94] ss:$8 sps:$4 sm:$0xff]  }
0x12b7   : > { %3213 = vmatprep.subr.bf16.mxu1 %v4675_v28 }
0x12bd   : > { %4312 = vmatmul.mubr.msk.bf16.vlgmr.msra.gmra.mxu1 %vm1353_vm4, %v2911_v43  ;;  %v4696_v43 = vld [vmem:[#allocation11 + $0x84] ss:$8 sps:$4 sm:$0xff]  }
0x12be   : > { %3245 = vmatprep.mubr.bf16.mxu1 %v5107_v33  ;;  %v4670_v33 = vld [vmem:[#allocation10 + $0x50] sm:$0xff]   ;;  %3214 = vmatpush1.bf16.msra.mxu1 %v4673_v27 }
0x12bf   : > { %4326 = vmatpush3.bf16.msra.mxu0 %v4670_v33  ;;  %3215 = vmatprep.subr.bf16.mxu1 %v4678_v29 }
0x12c0   : > { %4327 = vmatprep.subr.bf16.mxu0 %v5106_v14 }
0x12c2   : > { %3216 = vmatpush1.bf16.msra.mxu1 %v4676_v30 }
0x12c3   : > { %4328 = vmatpush3.bf16.msra.mxu0 %v4671_v59 }
0x12c4   : > { %4329 = vmatprep.subr.bf16.mxu0 %v5106_v14 }
0x12c7   : > { %4330 = vmatpush3.bf16.msra.mxu0 %v4672_v62 }
0x136d   : > { %v2732_v60 = vpop.f32.mrf.mxu1 }
0x136e   : > { %2961 = vrot.lane.b32.xlu1 %v2732_v60, %s5110_s5  ;;  %v3105_v60 = vrot.slane %v5558_v36, %v1894_v53  ;;  %v4704_v53 = vld [vmem:[#allocation13 + $0xa0] sm:$0xff]  }
0x136f   : > { %v4289_v61 = vpop.f32.mrf.mxu1 }
0x1371   : > { %v2735_v63 = vpop.f32.mrf.mxu1 }
0x1373   : > { %v4290_v1 = vpop.f32.mrf.mxu1 }
0x1374   : > { %v4697_v1 = vld [vmem:[#allocation13 + $0xf8] sm:$0xff]  }
0x1375   : > { %v2843_v2 = vpop.f32.mrf.mxu1  ;;  %4128 = vmatprep.subr.bf16.mxu0 %v4697_v1  ;;  %v4716_v1 = vld [vmem:[#allocation16 + $0x20] sm:$0xff]  }
0x1376   : > { %2965 = vrot.lane.b32.xlu0 %v2843_v2, %s5111_s20  ;;  %v4698_v2 = vld [vmem:[#allocation13 + $0xb8] sm:$0xff]  }
0x1377   : > { %v4301_v3 = vpop.f32.mrf.mxu1 }
0x1378   : > { %v4699_v3 = vld [vmem:[#allocation13 + $0xf0] sm:$0xff]  }
0x1379   : > { %v2846_v4 = vpop.f32.mrf.mxu1 }
0x137a   : > { %v4700_v4 = vld [vmem:[#allocation13 + $0xb0] sm:$0xff]  }
0x137b   : > { %v4302_v5 = vpop.f32.mrf.mxu1 }
0x137c   : > { %v4702_v5 = vld [vmem:[#allocation13 + $0xa8] sm:$0xff]  }
0x137d   : > { %v2954_v6 = vpop.f32.mrf.mxu1 }
0x137e   : > { %2969 = vrot.lane.b32.xlu1 %v2954_v6, %s5109_s1  ;;  %v4703_v6 = vld [vmem:[#allocation13 + $0xe0] sm:$0xff]   ;;  %s5013_s1 = scalar_lea.vmem %s5012_s28, 256 }
0x137f   : > { %v4313_v23 = vpop.f32.mrf.mxu1  ;;  %p5015_p7 = scmp.lt.s32.totalorder %s5013_s1, %s5007_s4 }
0x1380   : > { %v4705_v23 = vld [vmem:[#allocation13 + $0xd8] sm:$0xff]  }
0x1381   : > { %v2957_v7 = vpop.f32.mrf.mxu1  ;;  %p5016_p2 = por %p5015_p7, %p5014_p11 }
0x1382   : > { %v4706_v7 = vld [vmem:[#allocation13 + $0x98] sm:$0xff]  }
0x1383   : > { %v4314_v8 = vpop.f32.mrf.mxu1  ;;  %p5017_p9 = pnand %p5016_p2, %p5010_p4 }
0x1384   : > { %v4707_v8 = vld [vmem:[#allocation13 + $0xd0] sm:$0xff]  }
0x13e0   : > { %v2962_v9 = vpop.permute.xlu1 %2961 }
0x13e1   : > { %v2972_v12 = vsel %vm1305_vm1, %v5615_v39, %v2962_v9  ;;  %v4708_v9 = vld [vmem:[#allocation13 + $0x90] sm:$0xff]  }
0x13e8   : > { %v2966_v11 = vpop.permute.xlu0 %2965 }
0x13e9   : > { %v2973_v15 = vsel %vm1762_vm5, %v2972_v12, %v2966_v11  ;;  %v4709_v11 = vld [vmem:[#allocation13 + $0xc8] sm:$0xff]  }
0x13ea   : > { %v4710_v12 = vld [vmem:[#allocation13 + $0x88] sm:$0xff]  }
0x13f0   : > { %v2970_v16 = vpop.permute.xlu1 %2969 }
0x13f1   : > { %v2974_v19 = vsel %vm1764_vm6, %v2973_v15, %v2970_v16  ;;  %v4711_v15 = vld [vmem:[#allocation13 + $0xc0] sm:$0xff]  }
0x13f2   : > { %v2975_v17 = vpack.c.bf16 %v2974_v19, %v2974_v19  ;;  %v4712_v16 = vld [vmem:[#allocation13 + $0x80] sm:$0xff]   ;;  %v3128_v19 = vrot.slane %v5558_v36, %v5532_v20 }
0x13f4   : > { %4332 = vmatmul.mubr.bf16.vlgmr.msra.gmra.mxu0 %v2975_v17  ;;  %v3132_v17 = vrot.slane %v5568_v42, %v5532_v20 }
0x13f5   : > { %4129 = vmatpush3.bf16.msra.mxu0 %v4698_v2  ;;  %v4718_v2 = vld [vmem:[#allocation16 + $0x10] sm:$0xff]  }
0x13f6   : > { %4130 = vmatprep.subr.bf16.mxu0 %v4699_v3  ;;  %v4719_v3 = vld [vmem:[#allocation16 + $0x8] sm:$0xff]  }
0x13f9   : > { %4131 = vmatpush3.bf16.msra.mxu0 %v4700_v4  ;;  %v4720_v4 = vld [vmem:[#allocation16] sm:$0xff]  }
0x13fa   : > { %4132 = vmatprep.subr.bf16.mxu0 %v4701_v52 }
0x13fd   : > { %4133 = vmatpush3.bf16.msra.mxu0 %v4702_v5 }
0x13fe   : > { %4134 = vmatprep.subr.bf16.mxu0 %v4703_v6 }
0x1401   : > { %4135 = vmatpush3.bf16.msra.mxu0 %v4704_v53  ;;  %v3448_v53 = vld [vmem:[%s5755_s9] sm:$0xff] }
0x1402   : > { %4136 = vmatprep.subr.bf16.mxu0 %v4705_v23  ;;  %v3463_v23 = vrot.slane %v3448_v53, %v5399_v47 }
0x1405   : > { %4137 = vmatpush3.bf16.msra.mxu0 %v4706_v7 }
0x1406   : > { %4138 = vmatprep.subr.bf16.mxu0 %v4707_v8 }
0x1409   : > { %4139 = vmatpush3.bf16.msra.mxu0 %v4708_v9  ;;  %v3468_v9 = vrot.slane %v3448_v53, %v5404_v49 }
0x140a   : > { %4140 = vmatprep.subr.bf16.mxu0 %v4709_v11 }
0x140d   : > { %4141 = vmatpush3.bf16.msra.mxu0 %v4710_v12 }
0x140e   : > { %4142 = vmatprep.subr.bf16.mxu0 %v4711_v15  ;;  %v3490_v15 = vrot.slane %v3448_v53, %v5417_v58 }
0x1411   : > { %4143 = vmatpush3.bf16.msra.mxu0 %v4712_v16 }
0x14b4   : > { %v3079_v22 = vpop.f32.mrf.mxu0 }
0x14b5   : > { %v3080_v45 = vadd.f32 %v3079_v22, %v2996_v21 }
0x14b6   : > { %v4333_v24 = vpop.f32.mrf.mxu0 }
0x14b7   : > { %v5664_v25 = vadd.f32 %v3080_v45, %v5545_v0  ;;  %v4681_v0 = vld [vmem:[#allocation11 + $0xd4] ss:$8 sps:$4 sm:$0xff]  }
0x14b8   : > { %v3082_v26 = vpop.f32.mrf.mxu0  ;;  %3217 = vmatprep.subr.bf16.mxu1 %v4681_v0 }
0x14b9   : > { %3086 = vadd.xlane.f32.xlu0 %v5664_v25  ;;  %3218 = vmatpush1.bf16.msra.mxu1 %v4679_v34 }
0x14ba   : > { %v4334_v39 = vpop.f32.mrf.mxu0  ;;  %3219 = vmatprep.subr.bf16.mxu1 %v4684_v37 }
0x14bd   : > { %3220 = vmatpush1.bf16.msra.mxu1 %v4682_v35 }
0x14be   : > { %3221 = vmatprep.subr.bf16.mxu1 %v4687_v48 }
0x14c1   : > { %3222 = vmatpush1.bf16.msra.mxu1 %v4685_v13 }
0x14c2   : > { %3223 = vmatprep.subr.bf16.mxu1 %v4690_v38 }
0x14c5   : > { %3224 = vmatpush1.bf16.msra.mxu1 %v4688_v57 }
0x14c6   : > { %3225 = vmatprep.subr.bf16.mxu1 %v4693_v40 }
0x14c9   : > { %3226 = vmatpush1.bf16.msra.mxu1 %v4691_v41 }
0x14ca   : > { %3227 = vmatprep.subr.bf16.mxu1 %v4696_v43 }
0x14cd   : > { %3228 = vmatpush1.bf16.msra.mxu1 %v4694_v44  ;;  %v3310_v44 = vrot.slane %v5558_v36, %v2097_v54  ;;  %v4715_v36 = vld [vmem:[#allocation16 + $0x28] sm:$0xff]  }
0x14ce   : > { %4335 = vmatprep.subr.bf16.mxu1 %v5106_v14 }
0x1542   : > { %v3087_v31 = vpop.xlane.xlu0 %3086 }
0x1543   : > { %v3088_v18 = vmul.f32 0.0078125, %v3087_v31 }
0x1545   : > { %v3089_v32 = vsub.f32 %v5664_v25, %v3088_v18 }
0x1547   : > { %v3090_v10 = vmul.f32 %v3089_v32, %v3089_v32 }
0x1549   : > { %3091 = vadd.xlane.f32.xlu1 %v3090_v10 }
0x15d2   : > { %v3092_v50 = vpop.xlane.xlu1 %3091 }
0x15d3   : > { %v3093_v51 = vmul.f32 0.0078125, %v3092_v50 }
0x15d5   : > { %v3094_v55 = vadd.f32 1e-05, %v3093_v51 }
0x15d7   : > { %4763 = vrsqrt.f32 %v3094_v55 }
0x15e4   : > { %v4764_v33 = vpop.eup %4763 }
0x15e5   : > { %v3096_v59 = vmul.f32 %v4764_v33, %v3089_v32 }
0x15e7   : > { %v3101_v61 = vmul.f32 %v3100_v56, %v3096_v59 }
0x15e9   : > { %v3106_v62 = vadd.f32 %v3105_v60, %v3101_v61  ;;  %v4713_v60 = vld [vmem:[#allocation16 + $0x38] sm:$0xff]   ;;  %v4714_v61 = vld [vmem:[#allocation16 + $0x30] sm:$0xff]  }
0x15eb   : > { %v3107_v63 = vpack.c.bf16 %v3106_v62, %v3106_v62 }
0x15ed   : > { %3246 = vmatmul.mubr.bf16.vlgmr.msra.gmra.mxu1 %v3107_v63 }
0x15ee   : > { %4351 = vmatprep.mubr.msk.bf16.mxu1 %vm5108_vm0, %v5106_v14  ;;  %4336 = vmatpush3.bf16.msra.mxu1 %v4713_v60 }
0x15ef   : > { %4337 = vmatprep.subr.bf16.mxu1 %v5106_v14 }
0x15f2   : > { %4338 = vmatpush3.bf16.msra.mxu1 %v4714_v61 }
0x15f3   : > { %4339 = vmatprep.subr.bf16.mxu1 %v5106_v14 }
0x15f6   : > { %4340 = vmatpush3.bf16.msra.mxu1 %v4715_v36 }
0x15f7   : > { %4341 = vmatprep.subr.bf16.mxu1 %v5106_v14 }
0x15fa   : > { %4342 = vmatpush3.bf16.msra.mxu1 %v4716_v1 }
0x15fb   : > { %4343 = vmatprep.subr.bf16.mxu1 %v5106_v14 }
0x16ad   : > { %v3247_v21 = vpop.f32.mrf.mxu1 }
0x16ae   : > { %v3248_v22 = vadd.f32 %v3247_v21, %v3128_v19 }
0x16af   : > { %v3249_v45 = vpop.f32.mrf.mxu1 }
0x16b0   : > { %v3256_v24 = vmul.f32 0.044715, %v3248_v22  ;;  %v3250_v26 = vadd.f32 %v3249_v45, %v3132_v17  ;;  %v3254_v37 = vmul.f32 0.5, %v3248_v22 }
0x16b1   : > { %v3251_v39 = vpop.f32.mrf.mxu1 }
0x16b2   : > { %v3258_v27 = vmul.f32 %v3256_v24, %v3248_v22  ;;  %v3257_v28 = vmul.f32 0.044715, %v3250_v26  ;;  %v3255_v48 = vmul.f32 0.5, %v3250_v26 }
0x16b3   : > { %v3252_v29 = vpop.f32.mrf.mxu1 }
0x16b4   : > { %v3260_v30 = vmul.f32 %v3258_v27, %v3248_v22  ;;  %v3259_v31 = vmul.f32 %v3257_v28, %v3250_v26 }
0x16b6   : > { %v3262_v18 = vadd.f32 %v3260_v30, %v3248_v22  ;;  %v3261_v32 = vmul.f32 %v3259_v31, %v3250_v26 }
0x16b8   : > { %v3264_v10 = vmul.f32 0.7978846, %v3262_v18  ;;  %v3263_v0 = vadd.f32 %v3261_v32, %v3250_v26 }
0x16ba   : > { %v3265_v34 = vmul.f32 0.7978846, %v3263_v0  ;;  %4765 = vtanh.f32 %v3264_v10 }
0x16bc   : > { %4767 = vtanh.f32 %v3265_v34 }
0x16c7   : > { %v4766_v35 = vpop.eup %4765 }
0x16c8   : > { %v3268_v20 = vadd.f32 1.0, %v4766_v35 }
0x16c9   : > { %v4768_v42 = vpop.eup %4767 }
0x16ca   : > { %v3269_v13 = vadd.f32 1.0, %v4768_v42  ;;  %v3270_v38 = vmul.f32 %v3268_v20, %v3254_v37 }
0x16cc   : > { %v3271_v57 = vmul.f32 %v3269_v13, %v3255_v48  ;;  %v3272_v41 = vpack.c.bf16 %v3270_v38, %v3270_v38 }
0x16ce   : > { %v3273_v40 = vpack.c.bf16 %v3271_v57, %v3271_v57 }
0x16d0   : > { %3439 = vmatprep.mubr.bf16.mxu0 %v3273_v40 }
0x16d1   : > { %3440 = vmatmul.mubr.bf16.vlgmr.msra.gmra.mxu0 %v3272_v41 }
0x1791   : > { %v4144_v43 = vpop.f32.mrf.mxu0 }
0x1793   : > { %v4145_v50 = vpop.f32.mrf.mxu0 }
0x1794   : > { %v4146_v51 = vadd.f32 %v4145_v50, %v4144_v43 }
0x1795   : > { %v4147_v55 = vpop.f32.mrf.mxu0 }
0x1796   : > { %v3442_v56 = vadd.f32 %v4146_v51, %v3310_v44 }
0x1797   : > { %v4148_v33 = vpop.f32.mrf.mxu0 }
0x1798   : > { %v3447_v59 = vadd.f32 %v3442_v56, %v5664_v25  ;;  %v4717_v25 = vld [vmem:[#allocation16 + $0x18] sm:$0xff]  }
0x1799   : > { %4344 = vmatpush3.bf16.msra.mxu1 %v4717_v25 }
0x179a   : > { %3449 = vadd.xlane.f32.xlu0 %v3447_v59  ;;  %4345 = vmatprep.subr.bf16.mxu1 %v5106_v14 }
0x179d   : > { %4346 = vmatpush3.bf16.msra.mxu1 %v4718_v2 }
0x179e   : > { %4347 = vmatprep.subr.bf16.mxu1 %v5106_v14 }
0x17a1   : > { %4348 = vmatpush3.bf16.msra.mxu1 %v4719_v3 }
0x17a2   : > { %4349 = vmatprep.subr.bf16.mxu1 %v5106_v14 }
0x17a5   : > { %4350 = vmatpush3.bf16.msra.mxu1 %v4720_v4 }
0x1823   : > { %v3450_v62 = vpop.xlane.xlu0 %3449 }
0x1824   : > { %v3451_v46 = vmul.f32 0.0078125, %v3450_v62 }
0x1826   : > { %v3452_v63 = vsub.f32 %v3447_v59, %v3451_v46 }
0x1828   : > { %v3453_v54 = vmul.f32 %v3452_v63, %v3452_v63 }
0x182a   : > { %3454 = vadd.xlane.f32.xlu0 %v3453_v54 }
0x18b3   : > { %v3455_v52 = vpop.xlane.xlu0 %3454 }
0x18b4   : > { %v3456_v5 = vmul.f32 0.0078125, %v3455_v52 }
0x18b6   : > { %v3457_v6 = vadd.f32 1e-05, %v3456_v5 }
0x18b8   : > { %4769 = vrsqrt.f32 %v3457_v6 }
0x18c5   : > { %v4770_v7 = vpop.eup %4769 }
0x18c6   : > { %v3459_v8 = vmul.f32 %v4770_v7, %v3452_v63 }
0x18c8   : > { %v3464_v11 = vmul.f32 %v3463_v23, %v3459_v8 }
0x18ca   : > { %v3469_v12 = vadd.f32 %v3468_v9, %v3464_v11 }
0x18cc   : > { %v3470_v14 = vpack.c.bf16 %v3469_v12, %v3469_v12 }
0x18ce   : > { %4352 = vmatmul.mubr.bf16.vlgmr.msra.gmra.mxu1 %v3470_v14 }
0x198e   : > { %v3573_v16 = vpop.f32.mrf.mxu1 }
0x198f   : > { %v3574_v19 = vadd.f32 %v3573_v16, %v3490_v15 }
0x1990   : > { %v4353_v47 = vpop.f32.mrf.mxu1 }
0x1991   : > { %3579 = vst [vmem:[%s489_s25] sm:$0xff] %v3574_v19 }
0x1992   : > { %v3576_v49 = vpop.f32.mrf.mxu1 }
0x1993   : > { %5020 = shalt.err (!%p5017_p9)
}
0x1994   : > { %s5021_s5 = scalar_lea.hbm %s5703_s27, 128  ;;  %s5025_s21 = scalar_lea.hbm %s5756_s10, 256 }
0x1995   : > { %p5022_p10 = scmp.ne.s32.totalorder %s5703_s27, %s5021_s5  ;;  %p5026_p13 = scmp.lt.s32.totalorder %s5703_s27, %s5756_s10 }
0x1996   : > { %p5027_p0 = scmp.lt.s32.totalorder %s5025_s21, %s5021_s5 }
0x1997   : > { %p5023_p1 = pnand %p5022_p10, %p5792_p8 }
0x1998   : > { %p5028_p6 = por %p5027_p0, %p5026_p13 }
0x1999   : > { %p5024_p12 = pneg %p5023_p1 }
0x199b   : > { %p5029_p5 = pnand %p5028_p6, %p5024_p12 }
0x199d   : > { %5032 = shalt.err (!%p5029_p5)
}
0x199e   : > { %4392 = dma.vmem_to_hbm [thread:$0]  (%p5792_p8), %s5705_s17, 128, %s5703_s27, %s3581_s3   ;;  %v4354_v58 = vpop.f32.mrf.mxu1 }
0x199f PF: > { %s3606_s30 = sand.u32 1, %s5075_s13   ;;  %p5793_p3 = scmp.ne.s32.totalorder %s5780_s22, 0 }
0x19a0   : > { %p5794_p4 = scmp.ge.s32.totalorder %s5087_s16, 2  ;;  %s3607_s25 = scalar_lea.sflag [#allocation4], %s3606_s30 }
0x19a2   : > { %p4424_p11 = pnand %p5794_p4, %p5793_p3 }
0x19a4   : > { %p4425_p7 = pneg %p4424_p11 }
0x19a6   : > { %5070 = dma.done.wait (%p4425_p7), %s3607_s25, 128  }
0x19a7   : > { %5072 = vsyncadd (%p4425_p7), %s3607_s25, 4294967168  ;;  %p27_p2 = scmp.ge.s32.totalorder %s5293_s26, 4   ;;  %s5795_s13 = smov %s5079_s14 }
0x19a8   : > { %s5796_s14 = smov %s5083_s15  ;;  %s5797_s15 = smov %s5304_s11 }
0x19a9   : > { %s5798_s16 = smov %s5293_s26  ;;  %29 = sbr.rel (!%p27_p2) target bundleno = 15 (0xf), region = 142 }
0x19ae   :  { %3612 = vsyncpa [#allocation3], 1 }
0x19af   :  { %3614 = vsyncpa [#allocation3 + $0x1], 1 }
0x19b0   :  { %3615 = vsyncpa [#allocation6], 1 }
0x19b1   :  { %3616 = vsyncpa [#allocation9], 1 }
0x19b2   :  { %3617 = vsyncpa [#allocation12], 1 }
0x19b3   :  { %3618 = vsyncpa [#allocation15], 1 }
0x19b4   :  { %3619 = vsyncpa [#allocation4], 1 }
0x19b5   :  { %3621 = vsyncpa [#allocation4 + $0x1], 1 }

</bundles_post_ra>
